<compile_context>
chip_gen: v6e
topology: v6e:2x2x1
jax: 0.10.0
libtpu: 0.0.40
codegen_flags: <defaults>
</compile_context>

<pallas_src>
import functools

import jax
import jax.numpy as jnp
from jax.experimental import pallas as pl
from jax.experimental.pallas import tpu as pltpu


def _maxpool3x3_kernel(x_ref, o_ref, xp_ref, rp_ref, *, stride, H, W, Ho, Wo):
    """3x3 / stride / padding=1 max pool on one [H, W, ts, L] tile.

    x_ref : [H,   W,   ts, L]  input tile (spatial on leading dims, N*C on (sublane, lane))
    o_ref : [Ho,  Wo,  ts, L]  pooled output tile
    xp_ref: [H+2, W+2, ts, L]  scratch: -inf padded copy of the tile
    rp_ref: [H+2, Wo,  ts, L]  scratch: W-direction pooled rows
    """
    if jnp.issubdtype(x_ref.dtype, jnp.floating):
        neg = -jnp.inf
    else:
        neg = jnp.iinfo(x_ref.dtype).min

    # The -inf border never changes across grid steps (scratch persists) -> fill it once.
    @pl.when(pl.program_id(0) == 0)
    def _():
        xp_ref[...] = jnp.full(xp_ref.shape, neg, dtype=xp_ref.dtype)

    # Interior = current tile (padding=1 on each spatial side).
    xp_ref[pl.ds(1, H), pl.ds(1, W), :, :] = x_ref[...]

    def ds(start, size):
        return pl.ds(start, size, stride=stride) if stride > 1 else pl.ds(start, size)

    # Separable max: pool along W (stride folded into leading-dim strided reads) ...
    rp_ref[...] = jnp.maximum(
        jnp.maximum(xp_ref[:, ds(0, Wo), :, :], xp_ref[:, ds(1, Wo), :, :]),
        xp_ref[:, ds(2, Wo), :, :],
    )
    # ... then along H.
    o_ref[...] = jnp.maximum(
        jnp.maximum(rp_ref[ds(0, Ho), :, :, :], rp_ref[ds(1, Ho), :, :, :]),
        rp_ref[ds(2, Ho), :, :, :],
    ).astype(o_ref.dtype)


def _pick_layout(R):
    """Factor R = N*C into (S, L): L on lanes (prefer dense 128), S on sublanes."""
    L = 128 if R % 128 == 0 else R          # small-R fallback: everything on lanes
    return R // L, L


def _pick_sublane_tile(S, per_sublane_bytes, budget_bytes=6 * 1024 * 1024):
    """Largest sublane tile (multiple of 8 dividing S) under the VMEM budget,
    preferring >= 2 grid steps so the DMA pipeline / megacore have work."""
    if S <= 8 or S % 8 != 0:
        return S
    cands = [t for t in range(8, S + 1, 8) if S % t == 0]
    good = [t for t in cands if t * per_sublane_bytes <= budget_bytes and S // t >= 2]
    if good:
        return max(good)
    fit = [t for t in cands if t * per_sublane_bytes <= budget_bytes]
    return max(fit) if fit else min(cands)


def maxpool_layer_forward(x, stride, splits=4):
    """Forward of MaxPoolLayer: per-split MaxPool2d(3, stride, padding=1), concat on dim 1.

    All splits are fused into one whole-tensor pooling pass (mathematically identical),
    so `splits` only matters for the reference semantics.
    """
    N, C, H, W = x.shape
    Ho = (H + 2 - 3) // stride + 1
    Wo = (W + 2 - 3) // stride + 1
    R = N * C
    S, L = _pick_layout(R)

    elem = x.dtype.itemsize
    per_sublane = L * elem * (H * W + (H + 2) * (W + 2) + (H + 2) * Wo + 2 * Ho * Wo)
    ts = _pick_sublane_tile(S, per_sublane)
    grid = (S // ts,)

    # NCHW -> [H, W, S, L]: spatial dims on untiled leading axes, N*C on (sublane, lane)
    # so every vector load/store is lane-dense no matter how small H/W/Wo are.
    xt = jnp.transpose(x.reshape(R, H, W), (1, 2, 0)).reshape(H, W, S, L)

    kernel = functools.partial(_maxpool3x3_kernel, stride=stride, H=H, W=W, Ho=Ho, Wo=Wo)
    out_t = pl.pallas_call(
        kernel,
        out_shape=jax.ShapeDtypeStruct((Ho, Wo, S, L), x.dtype),
        grid=grid,
        in_specs=[pl.BlockSpec((H, W, ts, L), lambda i: (0, 0, i, 0))],
        out_specs=pl.BlockSpec((Ho, Wo, ts, L), lambda i: (0, 0, i, 0)),
        scratch_shapes=[
            pltpu.VMEM((H + 2, W + 2, ts, L), x.dtype),
            pltpu.VMEM((H + 2, Wo, ts, L), x.dtype),
        ],
        compiler_params=pltpu.CompilerParams(
            dimension_semantics=("parallel",),
            vmem_limit_bytes=48 * 1024 * 1024,   # budgeted with v7x's 64 MiB VMEM in mind
        ),
    )(xt)

    # [Ho, Wo, S, L] -> NCHW.
    # TODO(synk): if the consumer accepts channel-last output ([N, Ho, Wo, C]), drop this
    # transpose (and the input one) to remove the two wrapper-side HBM relayout passes.
    return jnp.transpose(out_t.reshape(Ho, Wo, R), (2, 0, 1)).reshape(N, C, Ho, Wo)


def reference(x, stride, splits=4):
    """Pure-JAX mirror of the PyTorch forward (per-split pool + concat)."""
    N, C, H, W = x.shape
    init = jnp.asarray(-jnp.inf, dtype=x.dtype)
    outs = []
    for i in range(splits):
        lo, hi = i * C // splits, (i + 1) * C // splits
        outs.append(jax.lax.reduce_window(
            x[:, lo:hi], init, jax.lax.max,
            window_dimensions=(1, 1, 3, 3),
            window_strides=(1, 1, stride, stride),
            padding=((0, 0), (0, 0), (1, 1), (1, 1))))
    return jnp.concatenate(outs, axis=1)


if __name__ == "__main__":
    splits = 4
    N, C_per_split, H, W = 2, 4, 16, 16
    C = splits * C_per_split

    key = jax.random.PRNGKey(0)
    x = jax.random.normal(key, (N, C, H, W), jnp.float32)

    for stride in (2, 1):
        out = jax.block_until_ready(maxpool_layer_forward(x, stride, splits=splits))
        ref = reference(x, stride, splits=splits)
        assert out.shape == ref.shape, (out.shape, ref.shape)
        assert jnp.array_equal(out, ref), float(jnp.max(jnp.abs(out - ref)))

    print("KERNEL_OK")
</pallas_src>

<mosaic_0001>
module attributes {stable_mosaic.version = 11 : i64} {
  func.func @_maxpool3x3_kernel(%arg0: i32, %arg1: memref<16x16x1x32xf32, #tpu.memory_space<vmem>>, %arg2: memref<8x8x1x32xf32, #tpu.memory_space<vmem>>, %arg3: memref<18x18x1x32xf32, #tpu.memory_space<vmem>>, %arg4: memref<18x8x1x32xf32, #tpu.memory_space<vmem>>) attributes {dimension_semantics = [#tpu.dimension_semantics<parallel>], iteration_bounds = array<i64: 1>, scalar_prefetch = 0 : i64, scratch_operands = 2 : i64, tpu.core_type = #tpu.core_type<tc>, window_params = [{transform_indices = @transform_0, window_bounds = array<i64: 16, 16, 1, 32>}, {transform_indices = @transform_1, window_bounds = array<i64: 8, 8, 1, 32>}]} {
    %c0_i32 = arith.constant 0 : i32
    %0 = arith.cmpi eq, %arg0, %c0_i32 : i32
    %1 = arith.extui %0 : i1 to i32
    %c0_i32_0 = arith.constant 0 : i32
    %2 = arith.cmpi ne, %1, %c0_i32_0 : i32
    scf.if %2 {
      %cst = arith.constant 0xFF800000 : f32
      %17 = vector.broadcast %cst : f32 to vector<18x18x1x32xf32>
      %c0_38 = arith.constant 0 : index
      %c0_39 = arith.constant 0 : index
      %c0_40 = arith.constant 0 : index
      %c0_41 = arith.constant 0 : index
      %18 = vector.load %arg3[%c0_38, %c0_39, %c0_40, %c0_41] : memref<18x18x1x32xf32, #tpu.memory_space<vmem>>, vector<18x18x1x32xf32>
      tpu.vector_store %arg3[%c0_38, %c0_39, %c0_40, %c0_41], %17 {strides = array<i32>} : memref<18x18x1x32xf32, #tpu.memory_space<vmem>>, vector<18x18x1x32xf32>,
    } else {
    }
    %c0 = arith.constant 0 : index
    %c0_1 = arith.constant 0 : index
    %c0_2 = arith.constant 0 : index
    %c0_3 = arith.constant 0 : index
    %3 = vector.load %arg1[%c0, %c0_1, %c0_2, %c0_3] : memref<16x16x1x32xf32, #tpu.memory_space<vmem>>, vector<16x16x1x32xf32>
    %c1 = arith.constant 1 : index
    %c1_4 = arith.constant 1 : index
    %c0_5 = arith.constant 0 : index
    %c0_6 = arith.constant 0 : index
    %4 = vector.load %arg3[%c1, %c1_4, %c0_5, %c0_6] : memref<18x18x1x32xf32, #tpu.memory_space<vmem>>, vector<16x16x1x32xf32>
    tpu.vector_store %arg3[%c1, %c1_4, %c0_5, %c0_6], %3 {strides = array<i32>} : memref<18x18x1x32xf32, #tpu.memory_space<vmem>>, vector<16x16x1x32xf32>,
    %c0_7 = arith.constant 0 : index
    %c0_8 = arith.constant 0 : index
    %c0_9 = arith.constant 0 : index
    %c0_10 = arith.constant 0 : index
    %5 = tpu.strided_load %arg3[%c0_7, %c0_8, %c0_9, %c0_10] {strides = array<i32: 1, 2, 1, 1>} : memref<18x18x1x32xf32, #tpu.memory_space<vmem>>, vector<18x8x1x32xf32>
    %c0_11 = arith.constant 0 : index
    %c1_12 = arith.constant 1 : index
    %c0_13 = arith.constant 0 : index
    %c0_14 = arith.constant 0 : index
    %6 = tpu.strided_load %arg3[%c0_11, %c1_12, %c0_13, %c0_14] {strides = array<i32: 1, 2, 1, 1>} : memref<18x18x1x32xf32, #tpu.memory_space<vmem>>, vector<18x8x1x32xf32>
    %7 = arith.maximumf %5, %6 : vector<18x8x1x32xf32>
    %c0_15 = arith.constant 0 : index
    %c2 = arith.constant 2 : index
    %c0_16 = arith.constant 0 : index
    %c0_17 = arith.constant 0 : index
    %8 = tpu.strided_load %arg3[%c0_15, %c2, %c0_16, %c0_17] {strides = array<i32: 1, 2, 1, 1>} : memref<18x18x1x32xf32, #tpu.memory_space<vmem>>, vector<18x8x1x32xf32>
    %9 = arith.maximumf %7, %8 : vector<18x8x1x32xf32>
    %c0_18 = arith.constant 0 : index
    %c0_19 = arith.constant 0 : index
    %c0_20 = arith.constant 0 : index
    %c0_21 = arith.constant 0 : index
    %10 = vector.load %arg4[%c0_18, %c0_19, %c0_20, %c0_21] : memref<18x8x1x32xf32, #tpu.memory_space<vmem>>, vector<18x8x1x32xf32>
    tpu.vector_store %arg4[%c0_18, %c0_19, %c0_20, %c0_21], %9 {strides = array<i32>} : memref<18x8x1x32xf32, #tpu.memory_space<vmem>>, vector<18x8x1x32xf32>,
    %c0_22 = arith.constant 0 : index
    %c0_23 = arith.constant 0 : index
    %c0_24 = arith.constant 0 : index
    %c0_25 = arith.constant 0 : index
    %11 = tpu.strided_load %arg4[%c0_22, %c0_23, %c0_24, %c0_25] {strides = array<i32: 2, 1, 1, 1>} : memref<18x8x1x32xf32, #tpu.memory_space<vmem>>, vector<8x8x1x32xf32>
    %c1_26 = arith.constant 1 : index
    %c0_27 = arith.constant 0 : index
    %c0_28 = arith.constant 0 : index
    %c0_29 = arith.constant 0 : index
    %12 = tpu.strided_load %arg4[%c1_26, %c0_27, %c0_28, %c0_29] {strides = array<i32: 2, 1, 1, 1>} : memref<18x8x1x32xf32, #tpu.memory_space<vmem>>, vector<8x8x1x32xf32>
    %13 = arith.maximumf %11, %12 : vector<8x8x1x32xf32>
    %c2_30 = arith.constant 2 : index
    %c0_31 = arith.constant 0 : index
    %c0_32 = arith.constant 0 : index
    %c0_33 = arith.constant 0 : index
    %14 = tpu.strided_load %arg4[%c2_30, %c0_31, %c0_32, %c0_33] {strides = array<i32: 2, 1, 1, 1>} : memref<18x8x1x32xf32, #tpu.memory_space<vmem>>, vector<8x8x1x32xf32>
    %15 = arith.maximumf %13, %14 : vector<8x8x1x32xf32>
    %c0_34 = arith.constant 0 : index
    %c0_35 = arith.constant 0 : index
    %c0_36 = arith.constant 0 : index
    %c0_37 = arith.constant 0 : index
    %16 = vector.load %arg2[%c0_34, %c0_35, %c0_36, %c0_37] : memref<8x8x1x32xf32, #tpu.memory_space<vmem>>, vector<8x8x1x32xf32>
    tpu.vector_store %arg2[%c0_34, %c0_35, %c0_36, %c0_37], %15 {strides = array<i32>} : memref<8x8x1x32xf32, #tpu.memory_space<vmem>>, vector<8x8x1x32xf32>,
    return
  }
  func.func @transform_0(%arg0: i32) -> (i32, i32, i32, i32) {
    %c0_i32 = arith.constant 0 : i32
    %c0_i32_0 = arith.constant 0 : i32
    %c0_i32_1 = arith.constant 0 : i32
    %c0_i32_2 = arith.constant 0 : i32
    return %c0_i32, %c0_i32_0, %arg0, %c0_i32_1 : i32, i32, i32, i32
  }
  func.func @transform_1(%arg0: i32) -> (i32, i32, i32, i32) {
    %c0_i32 = arith.constant 0 : i32
    %c0_i32_0 = arith.constant 0 : i32
    %c0_i32_1 = arith.constant 0 : i32
    %c0_i32_2 = arith.constant 0 : i32
    return %c0_i32, %c0_i32_0, %arg0, %c0_i32_1 : i32, i32, i32, i32
  }
}

</mosaic_0001>

<bundles_post_ra>
// kernel: tpu_custom_call.1
= control target key start
LH: loop header
LB: loop body
LE: loop exit
PB: predicated region body
PF: predicated region fallthrough
CT: control target
= control target key end

     0   :  { %6 = vsyncpa [#allocation5], 0  ;;  %s3279_s0 = inlined_call_operand.hbm [shape: f32[16,16,1,32], index: 0, kind: input, shape index: {}]   ;;  %s3280_s1 = inlined_call_operand.hbm [shape: f32[8,8,1,32], index: 1, kind: output, shape index: {}]  }
   0x1   :  { %7 = vsyncpa [#allocation6], 0  ;;  %s2184_s6 = smov [#allocation4]  }
   0x2   :  { %s13_s7 = sshll.u32 %s2184_s6, 4  ;;  %s14_s7 = int_to_ptr.vmem [resolvable:$true] %s13_s7 }
   0x3   :  { %s2148_s8 = scalar_lea.vmem %s14_s7, 4096  ;;  %p2153_p1 = scmp.lt.s32.totalorder %s14_s7, %s14_s7 }
   0x4   :  { %p2149_p0 = scmp.ne.s32.totalorder %s14_s7, %s2148_s8  ;;  %p2154_p2 = scmp.lt.s32.totalorder %s2148_s8, %s2148_s8 }
   0x6   :  { %p2155_p3 = por %p2154_p2, %p2153_p1 }
   0x8   :  { %p2156_p4 = pnand %p2155_p3, %p2149_p0 }
   0xa   :  { %2159 = shalt.err (!%p2156_p4)
}
   0xb   :  { %s2185_s9 = smov 16   ;;  %s2186_s10 = smov 1  }
   0xc   :  { %19 = dma.hbm_to_vmem [thread:$0]  %s3279_s0, 4096, %s14_s7, [#allocation5], %s2185_s9, %s2185_s9, %s2186_s10  }
   0xd   :  { %2180 = dma.done.wait [#allocation5], 4096  }
   0xe   :  { %2181 = vsyncadd [#allocation5], 4294963200  ;;  %vm27_vm0 = vcmask 253952   ;;  %v2187_v0 = vmov -inf   ;;  %v352_v1 = vld [vmem:[#allocation4] sm:$0x1] }
   0xf   :  { %28 = vst.msk [vmem:[#allocation2] sm:$0x1] %vm27_vm0, %v2187_v0  ;;  %29 = vst.msk [vmem:[#allocation2 + $0x1] sm:$0x1] %vm27_vm0, %v2187_v0  ;;  %v353_v2 = vld [vmem:[#allocation4 + $0x1] sm:$0x1] }
  0x10   :  { %30 = vst.msk [vmem:[#allocation2 + $0x2] sm:$0x1] %vm27_vm0, %v2187_v0  ;;  %31 = vst.msk [vmem:[#allocation2 + $0x3] sm:$0x1] %vm27_vm0, %v2187_v0  ;;  %v354_v3 = vld [vmem:[#allocation4 + $0x2] sm:$0x1] }
  0x11   :  { %32 = vst.msk [vmem:[#allocation2 + $0x4] sm:$0x1] %vm27_vm0, %v2187_v0  ;;  %33 = vst.msk [vmem:[#allocation2 + $0x5] sm:$0x1] %vm27_vm0, %v2187_v0  ;;  %v355_v4 = vld [vmem:[#allocation4 + $0x3] sm:$0x1] }
  0x12   :  { %34 = vst.msk [vmem:[#allocation2 + $0x6] sm:$0x1] %vm27_vm0, %v2187_v0  ;;  %35 = vst.msk [vmem:[#allocation2 + $0x7] sm:$0x1] %vm27_vm0, %v2187_v0  ;;  %v356_v5 = vld [vmem:[#allocation4 + $0x4] sm:$0x1] }
  0x13   :  { %36 = vst.msk [vmem:[#allocation2 + $0x8] sm:$0x1] %vm27_vm0, %v2187_v0  ;;  %37 = vst.msk [vmem:[#allocation2 + $0x9] sm:$0x1] %vm27_vm0, %v2187_v0  ;;  %v357_v6 = vld [vmem:[#allocation4 + $0x5] sm:$0x1] }
  0x14   :  { %38 = vst.msk [vmem:[#allocation2 + $0xa] sm:$0x1] %vm27_vm0, %v2187_v0  ;;  %39 = vst.msk [vmem:[#allocation2 + $0xb] sm:$0x1] %vm27_vm0, %v2187_v0  ;;  %v358_v7 = vld [vmem:[#allocation4 + $0x6] sm:$0x1] }
  0x15   :  { %40 = vst.msk [vmem:[#allocation2 + $0xc] sm:$0x1] %vm27_vm0, %v2187_v0  ;;  %41 = vst.msk [vmem:[#allocation2 + $0xd] sm:$0x1] %vm27_vm0, %v2187_v0  ;;  %v359_v8 = vld [vmem:[#allocation4 + $0x7] sm:$0x1] }
  0x16   :  { %42 = vst.msk [vmem:[#allocation2 + $0xe] sm:$0x1] %vm27_vm0, %v2187_v0  ;;  %43 = vst.msk [vmem:[#allocation2 + $0xf] sm:$0x1] %vm27_vm0, %v2187_v0  ;;  %v360_v9 = vld [vmem:[#allocation4 + $0x8] sm:$0x1] }
  0x17   :  { %44 = vst.msk [vmem:[#allocation2 + $0x10] sm:$0x1] %vm27_vm0, %v2187_v0  ;;  %46 = vst.msk [vmem:[#allocation2 + $0x12] sm:$0x1] %vm27_vm0, %v2187_v0  ;;  %v361_v10 = vld [vmem:[#allocation4 + $0x9] sm:$0x1] }
  0x18   :  { %47 = vst.msk [vmem:[#allocation2 + $0x13] sm:$0x1] %vm27_vm0, %v2187_v0  ;;  %48 = vst.msk [vmem:[#allocation2 + $0x14] sm:$0x1] %vm27_vm0, %v2187_v0  ;;  %v362_v11 = vld [vmem:[#allocation4 + $0xa] sm:$0x1] }
  0x19   :  { %49 = vst.msk [vmem:[#allocation2 + $0x15] sm:$0x1] %vm27_vm0, %v2187_v0  ;;  %50 = vst.msk [vmem:[#allocation2 + $0x16] sm:$0x1] %vm27_vm0, %v2187_v0  ;;  %v363_v12 = vld [vmem:[#allocation4 + $0xb] sm:$0x1] }
  0x1a   :  { %51 = vst.msk [vmem:[#allocation2 + $0x17] sm:$0x1] %vm27_vm0, %v2187_v0  ;;  %52 = vst.msk [vmem:[#allocation2 + $0x18] sm:$0x1] %vm27_vm0, %v2187_v0  ;;  %v364_v13 = vld [vmem:[#allocation4 + $0xc] sm:$0x1] }
  0x1b   :  { %53 = vst.msk [vmem:[#allocation2 + $0x19] sm:$0x1] %vm27_vm0, %v2187_v0  ;;  %54 = vst.msk [vmem:[#allocation2 + $0x1a] sm:$0x1] %vm27_vm0, %v2187_v0  ;;  %v365_v14 = vld [vmem:[#allocation4 + $0xd] sm:$0x1] }
  0x1c   :  { %55 = vst.msk [vmem:[#allocation2 + $0x1b] sm:$0x1] %vm27_vm0, %v2187_v0  ;;  %56 = vst.msk [vmem:[#allocation2 + $0x1c] sm:$0x1] %vm27_vm0, %v2187_v0  ;;  %v366_v15 = vld [vmem:[#allocation4 + $0xe] sm:$0x1] }
  0x1d   :  { %57 = vst.msk [vmem:[#allocation2 + $0x1d] sm:$0x1] %vm27_vm0, %v2187_v0  ;;  %58 = vst.msk [vmem:[#allocation2 + $0x1e] sm:$0x1] %vm27_vm0, %v2187_v0  ;;  %v368_v16 = vld [vmem:[#allocation4 + $0x10] sm:$0x1] }
  0x1e   :  { %59 = vst.msk [vmem:[#allocation2 + $0x1f] sm:$0x1] %vm27_vm0, %v2187_v0  ;;  %60 = vst.msk [vmem:[#allocation2 + $0x20] sm:$0x1] %vm27_vm0, %v2187_v0  ;;  %v369_v17 = vld [vmem:[#allocation4 + $0x11] sm:$0x1] }
  0x1f   :  { %61 = vst.msk [vmem:[#allocation2 + $0x21] sm:$0x1] %vm27_vm0, %v2187_v0  ;;  %62 = vst.msk [vmem:[#allocation2 + $0x22] sm:$0x1] %vm27_vm0, %v2187_v0  ;;  %v370_v18 = vld [vmem:[#allocation4 + $0x12] sm:$0x1] }
  0x20   :  { %64 = vst.msk [vmem:[#allocation2 + $0x24] sm:$0x1] %vm27_vm0, %v2187_v0  ;;  %65 = vst.msk [vmem:[#allocation2 + $0x25] sm:$0x1] %vm27_vm0, %v2187_v0  ;;  %v371_v19 = vld [vmem:[#allocation4 + $0x13] sm:$0x1] }
  0x21   :  { %66 = vst.msk [vmem:[#allocation2 + $0x26] sm:$0x1] %vm27_vm0, %v2187_v0  ;;  %67 = vst.msk [vmem:[#allocation2 + $0x27] sm:$0x1] %vm27_vm0, %v2187_v0  ;;  %v372_v20 = vld [vmem:[#allocation4 + $0x14] sm:$0x1] }
  0x22   :  { %68 = vst.msk [vmem:[#allocation2 + $0x28] sm:$0x1] %vm27_vm0, %v2187_v0  ;;  %69 = vst.msk [vmem:[#allocation2 + $0x29] sm:$0x1] %vm27_vm0, %v2187_v0  ;;  %v373_v21 = vld [vmem:[#allocation4 + $0x15] sm:$0x1] }
  0x23   :  { %70 = vst.msk [vmem:[#allocation2 + $0x2a] sm:$0x1] %vm27_vm0, %v2187_v0  ;;  %71 = vst.msk [vmem:[#allocation2 + $0x2b] sm:$0x1] %vm27_vm0, %v2187_v0  ;;  %v374_v22 = vld [vmem:[#allocation4 + $0x16] sm:$0x1] }
  0x24   :  { %72 = vst.msk [vmem:[#allocation2 + $0x2c] sm:$0x1] %vm27_vm0, %v2187_v0  ;;  %73 = vst.msk [vmem:[#allocation2 + $0x2d] sm:$0x1] %vm27_vm0, %v2187_v0  ;;  %v375_v23 = vld [vmem:[#allocation4 + $0x17] sm:$0x1] }
  0x25   :  { %74 = vst.msk [vmem:[#allocation2 + $0x2e] sm:$0x1] %vm27_vm0, %v2187_v0  ;;  %75 = vst.msk [vmem:[#allocation2 + $0x2f] sm:$0x1] %vm27_vm0, %v2187_v0  ;;  %v376_v24 = vld [vmem:[#allocation4 + $0x18] sm:$0x1] }
  0x26   :  { %76 = vst.msk [vmem:[#allocation2 + $0x30] sm:$0x1] %vm27_vm0, %v2187_v0  ;;  %77 = vst.msk [vmem:[#allocation2 + $0x31] sm:$0x1] %vm27_vm0, %v2187_v0  ;;  %v377_v25 = vld [vmem:[#allocation4 + $0x19] sm:$0x1] }
  0x27   :  { %78 = vst.msk [vmem:[#allocation2 + $0x32] sm:$0x1] %vm27_vm0, %v2187_v0  ;;  %79 = vst.msk [vmem:[#allocation2 + $0x33] sm:$0x1] %vm27_vm0, %v2187_v0  ;;  %v378_v26 = vld [vmem:[#allocation4 + $0x1a] sm:$0x1] }
  0x28   :  { %80 = vst.msk [vmem:[#allocation2 + $0x34] sm:$0x1] %vm27_vm0, %v2187_v0  ;;  %82 = vst.msk [vmem:[#allocation2 + $0x36] sm:$0x1] %vm27_vm0, %v2187_v0  ;;  %v379_v27 = vld [vmem:[#allocation4 + $0x1b] sm:$0x1] }
  0x29   :  { %83 = vst.msk [vmem:[#allocation2 + $0x37] sm:$0x1] %vm27_vm0, %v2187_v0  ;;  %84 = vst.msk [vmem:[#allocation2 + $0x38] sm:$0x1] %vm27_vm0, %v2187_v0  ;;  %v380_v28 = vld [vmem:[#allocation4 + $0x1c] sm:$0x1] }
  0x2a   :  { %85 = vst.msk [vmem:[#allocation2 + $0x39] sm:$0x1] %vm27_vm0, %v2187_v0  ;;  %86 = vst.msk [vmem:[#allocation2 + $0x3a] sm:$0x1] %vm27_vm0, %v2187_v0  ;;  %v381_v29 = vld [vmem:[#allocation4 + $0x1d] sm:$0x1] }
  0x2b   :  { %87 = vst.msk [vmem:[#allocation2 + $0x3b] sm:$0x1] %vm27_vm0, %v2187_v0  ;;  %88 = vst.msk [vmem:[#allocation2 + $0x3c] sm:$0x1] %vm27_vm0, %v2187_v0  ;;  %v382_v30 = vld [vmem:[#allocation4 + $0x1e] sm:$0x1] }
  0x2c   :  { %89 = vst.msk [vmem:[#allocation2 + $0x3d] sm:$0x1] %vm27_vm0, %v2187_v0  ;;  %90 = vst.msk [vmem:[#allocation2 + $0x3e] sm:$0x1] %vm27_vm0, %v2187_v0  ;;  %v384_v31 = vld [vmem:[#allocation4 + $0x20] sm:$0x1] }
  0x2d   :  { %91 = vst.msk [vmem:[#allocation2 + $0x3f] sm:$0x1] %vm27_vm0, %v2187_v0  ;;  %92 = vst.msk [vmem:[#allocation2 + $0x40] sm:$0x1] %vm27_vm0, %v2187_v0  ;;  %v385_v32 = vld [vmem:[#allocation4 + $0x21] sm:$0x1] }
  0x2e   :  { %93 = vst.msk [vmem:[#allocation2 + $0x41] sm:$0x1] %vm27_vm0, %v2187_v0  ;;  %94 = vst.msk [vmem:[#allocation2 + $0x42] sm:$0x1] %vm27_vm0, %v2187_v0  ;;  %v386_v33 = vld [vmem:[#allocation4 + $0x22] sm:$0x1] }
  0x2f   :  { %95 = vst.msk [vmem:[#allocation2 + $0x43] sm:$0x1] %vm27_vm0, %v2187_v0  ;;  %96 = vst.msk [vmem:[#allocation2 + $0x44] sm:$0x1] %vm27_vm0, %v2187_v0  ;;  %v387_v34 = vld [vmem:[#allocation4 + $0x23] sm:$0x1] }
  0x30   :  { %97 = vst.msk [vmem:[#allocation2 + $0x45] sm:$0x1] %vm27_vm0, %v2187_v0  ;;  %98 = vst.msk [vmem:[#allocation2 + $0x46] sm:$0x1] %vm27_vm0, %v2187_v0  ;;  %v388_v35 = vld [vmem:[#allocation4 + $0x24] sm:$0x1] }
  0x31   :  { %100 = vst.msk [vmem:[#allocation2 + $0x48] sm:$0x1] %vm27_vm0, %v2187_v0  ;;  %101 = vst.msk [vmem:[#allocation2 + $0x49] sm:$0x1] %vm27_vm0, %v2187_v0  ;;  %v389_v36 = vld [vmem:[#allocation4 + $0x25] sm:$0x1] }
  0x32   :  { %102 = vst.msk [vmem:[#allocation2 + $0x4a] sm:$0x1] %vm27_vm0, %v2187_v0  ;;  %103 = vst.msk [vmem:[#allocation2 + $0x4b] sm:$0x1] %vm27_vm0, %v2187_v0  ;;  %v390_v37 = vld [vmem:[#allocation4 + $0x26] sm:$0x1] }
  0x33   :  { %104 = vst.msk [vmem:[#allocation2 + $0x4c] sm:$0x1] %vm27_vm0, %v2187_v0  ;;  %105 = vst.msk [vmem:[#allocation2 + $0x4d] sm:$0x1] %vm27_vm0, %v2187_v0  ;;  %v391_v38 = vld [vmem:[#allocation4 + $0x27] sm:$0x1] }
  0x34   :  { %106 = vst.msk [vmem:[#allocation2 + $0x4e] sm:$0x1] %vm27_vm0, %v2187_v0  ;;  %107 = vst.msk [vmem:[#allocation2 + $0x4f] sm:$0x1] %vm27_vm0, %v2187_v0  ;;  %v392_v39 = vld [vmem:[#allocation4 + $0x28] sm:$0x1] }
  0x35   :  { %108 = vst.msk [vmem:[#allocation2 + $0x50] sm:$0x1] %vm27_vm0, %v2187_v0  ;;  %109 = vst.msk [vmem:[#allocation2 + $0x51] sm:$0x1] %vm27_vm0, %v2187_v0  ;;  %v393_v40 = vld [vmem:[#allocation4 + $0x29] sm:$0x1] }
  0x36   :  { %110 = vst.msk [vmem:[#allocation2 + $0x52] sm:$0x1] %vm27_vm0, %v2187_v0  ;;  %111 = vst.msk [vmem:[#allocation2 + $0x53] sm:$0x1] %vm27_vm0, %v2187_v0  ;;  %v394_v41 = vld [vmem:[#allocation4 + $0x2a] sm:$0x1] }
  0x37   :  { %112 = vst.msk [vmem:[#allocation2 + $0x54] sm:$0x1] %vm27_vm0, %v2187_v0  ;;  %113 = vst.msk [vmem:[#allocation2 + $0x55] sm:$0x1] %vm27_vm0, %v2187_v0  ;;  %v395_v42 = vld [vmem:[#allocation4 + $0x2b] sm:$0x1] }
  0x38   :  { %114 = vst.msk [vmem:[#allocation2 + $0x56] sm:$0x1] %vm27_vm0, %v2187_v0  ;;  %115 = vst.msk [vmem:[#allocation2 + $0x57] sm:$0x1] %vm27_vm0, %v2187_v0  ;;  %v396_v43 = vld [vmem:[#allocation4 + $0x2c] sm:$0x1] }
  0x39   :  { %116 = vst.msk [vmem:[#allocation2 + $0x58] sm:$0x1] %vm27_vm0, %v2187_v0  ;;  %118 = vst.msk [vmem:[#allocation2 + $0x5a] sm:$0x1] %vm27_vm0, %v2187_v0  ;;  %v397_v44 = vld [vmem:[#allocation4 + $0x2d] sm:$0x1] }
  0x3a   :  { %119 = vst.msk [vmem:[#allocation2 + $0x5b] sm:$0x1] %vm27_vm0, %v2187_v0  ;;  %120 = vst.msk [vmem:[#allocation2 + $0x5c] sm:$0x1] %vm27_vm0, %v2187_v0  ;;  %v398_v45 = vld [vmem:[#allocation4 + $0x2e] sm:$0x1] }
  0x3b   :  { %121 = vst.msk [vmem:[#allocation2 + $0x5d] sm:$0x1] %vm27_vm0, %v2187_v0  ;;  %122 = vst.msk [vmem:[#allocation2 + $0x5e] sm:$0x1] %vm27_vm0, %v2187_v0  ;;  %v400_v46 = vld [vmem:[#allocation4 + $0x30] sm:$0x1] }
  0x3c   :  { %123 = vst.msk [vmem:[#allocation2 + $0x5f] sm:$0x1] %vm27_vm0, %v2187_v0  ;;  %124 = vst.msk [vmem:[#allocation2 + $0x60] sm:$0x1] %vm27_vm0, %v2187_v0  ;;  %v401_v47 = vld [vmem:[#allocation4 + $0x31] sm:$0x1] }
  0x3d   :  { %125 = vst.msk [vmem:[#allocation2 + $0x61] sm:$0x1] %vm27_vm0, %v2187_v0  ;;  %126 = vst.msk [vmem:[#allocation2 + $0x62] sm:$0x1] %vm27_vm0, %v2187_v0  ;;  %v402_v48 = vld [vmem:[#allocation4 + $0x32] sm:$0x1] }
  0x3e   :  { %127 = vst.msk [vmem:[#allocation2 + $0x63] sm:$0x1] %vm27_vm0, %v2187_v0  ;;  %128 = vst.msk [vmem:[#allocation2 + $0x64] sm:$0x1] %vm27_vm0, %v2187_v0  ;;  %v403_v49 = vld [vmem:[#allocation4 + $0x33] sm:$0x1] }
  0x3f   :  { %129 = vst.msk [vmem:[#allocation2 + $0x65] sm:$0x1] %vm27_vm0, %v2187_v0  ;;  %130 = vst.msk [vmem:[#allocation2 + $0x66] sm:$0x1] %vm27_vm0, %v2187_v0  ;;  %v404_v50 = vld [vmem:[#allocation4 + $0x34] sm:$0x1] }
  0x40   :  { %131 = vst.msk [vmem:[#allocation2 + $0x67] sm:$0x1] %vm27_vm0, %v2187_v0  ;;  %132 = vst.msk [vmem:[#allocation2 + $0x68] sm:$0x1] %vm27_vm0, %v2187_v0  ;;  %v405_v51 = vld [vmem:[#allocation4 + $0x35] sm:$0x1] }
  0x41   :  { %133 = vst.msk [vmem:[#allocation2 + $0x69] sm:$0x1] %vm27_vm0, %v2187_v0  ;;  %134 = vst.msk [vmem:[#allocation2 + $0x6a] sm:$0x1] %vm27_vm0, %v2187_v0  ;;  %v406_v52 = vld [vmem:[#allocation4 + $0x36] sm:$0x1] }
  0x42   :  { %136 = vst.msk [vmem:[#allocation2 + $0x6c] sm:$0x1] %vm27_vm0, %v2187_v0  ;;  %137 = vst.msk [vmem:[#allocation2 + $0x6d] sm:$0x1] %vm27_vm0, %v2187_v0  ;;  %v407_v53 = vld [vmem:[#allocation4 + $0x37] sm:$0x1] }
  0x43   :  { %138 = vst.msk [vmem:[#allocation2 + $0x6e] sm:$0x1] %vm27_vm0, %v2187_v0  ;;  %139 = vst.msk [vmem:[#allocation2 + $0x6f] sm:$0x1] %vm27_vm0, %v2187_v0  ;;  %v408_v54 = vld [vmem:[#allocation4 + $0x38] sm:$0x1] }
  0x44   :  { %140 = vst.msk [vmem:[#allocation2 + $0x70] sm:$0x1] %vm27_vm0, %v2187_v0  ;;  %141 = vst.msk [vmem:[#allocation2 + $0x71] sm:$0x1] %vm27_vm0, %v2187_v0  ;;  %v409_v55 = vld [vmem:[#allocation4 + $0x39] sm:$0x1] }
  0x45   :  { %142 = vst.msk [vmem:[#allocation2 + $0x72] sm:$0x1] %vm27_vm0, %v2187_v0  ;;  %143 = vst.msk [vmem:[#allocation2 + $0x73] sm:$0x1] %vm27_vm0, %v2187_v0  ;;  %v410_v56 = vld [vmem:[#allocation4 + $0x3a] sm:$0x1] }
  0x46   :  { %144 = vst.msk [vmem:[#allocation2 + $0x74] sm:$0x1] %vm27_vm0, %v2187_v0  ;;  %145 = vst.msk [vmem:[#allocation2 + $0x75] sm:$0x1] %vm27_vm0, %v2187_v0  ;;  %v411_v57 = vld [vmem:[#allocation4 + $0x3b] sm:$0x1] }
  0x47   :  { %146 = vst.msk [vmem:[#allocation2 + $0x76] sm:$0x1] %vm27_vm0, %v2187_v0  ;;  %147 = vst.msk [vmem:[#allocation2 + $0x77] sm:$0x1] %vm27_vm0, %v2187_v0  ;;  %v412_v58 = vld [vmem:[#allocation4 + $0x3c] sm:$0x1] }
  0x48   :  { %148 = vst.msk [vmem:[#allocation2 + $0x78] sm:$0x1] %vm27_vm0, %v2187_v0  ;;  %149 = vst.msk [vmem:[#allocation2 + $0x79] sm:$0x1] %vm27_vm0, %v2187_v0  ;;  %v413_v59 = vld [vmem:[#allocation4 + $0x3d] sm:$0x1] }
  0x49   :  { %150 = vst.msk [vmem:[#allocation2 + $0x7a] sm:$0x1] %vm27_vm0, %v2187_v0  ;;  %151 = vst.msk [vmem:[#allocation2 + $0x7b] sm:$0x1] %vm27_vm0, %v2187_v0  ;;  %v414_v60 = vld [vmem:[#allocation4 + $0x3e] sm:$0x1] }
  0x4a   :  { %152 = vst.msk [vmem:[#allocation2 + $0x7c] sm:$0x1] %vm27_vm0, %v2187_v0  ;;  %154 = vst.msk [vmem:[#allocation2 + $0x7e] sm:$0x1] %vm27_vm0, %v2187_v0  ;;  %v416_v61 = vld [vmem:[#allocation4 + $0x40] sm:$0x1] }
  0x4b   :  { %155 = vst.msk [vmem:[#allocation2 + $0x7f] sm:$0x1] %vm27_vm0, %v2187_v0  ;;  %156 = vst.msk [vmem:[#allocation2 + $0x80] sm:$0x1] %vm27_vm0, %v2187_v0  ;;  %v417_v62 = vld [vmem:[#allocation4 + $0x41] sm:$0x1] }
  0x4c   :  { %157 = vst.msk [vmem:[#allocation2 + $0x81] sm:$0x1] %vm27_vm0, %v2187_v0  ;;  %158 = vst.msk [vmem:[#allocation2 + $0x82] sm:$0x1] %vm27_vm0, %v2187_v0  ;;  %v418_v63 = vld [vmem:[#allocation4 + $0x42] sm:$0x1] }
  0x4d   :  { %159 = vst.msk [vmem:[#allocation2 + $0x83] sm:$0x1] %vm27_vm0, %v2187_v0  ;;  %160 = vst.msk [vmem:[#allocation2 + $0x84] sm:$0x1] %vm27_vm0, %v2187_v0  ;;  %s2188_s0 = smov [#allocation7]  }
  0x4e   :  { %161 = vst.msk [vmem:[#allocation2 + $0x85] sm:$0x1] %vm27_vm0, %v2187_v0  ;;  %162 = vst.msk [vmem:[#allocation2 + $0x86] sm:$0x1] %vm27_vm0, %v2187_v0  ;;  %s2123_s13 = sshll.u32 %s2188_s0, 4  ;;  %s2124_s13 = int_to_ptr.vmem [resolvable:$true] %s2123_s13 }
  0x4f   :  { %163 = vst.msk [vmem:[#allocation2 + $0x87] sm:$0x1] %vm27_vm0, %v2187_v0  ;;  %164 = vst.msk [vmem:[#allocation2 + $0x88] sm:$0x1] %vm27_vm0, %v2187_v0  ;;  %s2160_s14 = scalar_lea.vmem %s2124_s13, 1024  ;;  %p2165_p6 = scmp.lt.s32.totalorder %s2124_s13, %s2124_s13 }
  0x50   :  { %165 = vst.msk [vmem:[#allocation2 + $0x89] sm:$0x1] %vm27_vm0, %v2187_v0  ;;  %166 = vst.msk [vmem:[#allocation2 + $0x8a] sm:$0x1] %vm27_vm0, %v2187_v0  ;;  %p2161_p5 = scmp.ne.s32.totalorder %s2124_s13, %s2160_s14  ;;  %p2166_p7 = scmp.lt.s32.totalorder %s2160_s14, %s2160_s14 }
  0x51   :  { %167 = vst.msk [vmem:[#allocation2 + $0x8b] sm:$0x1] %vm27_vm0, %v2187_v0  ;;  %168 = vst.msk [vmem:[#allocation2 + $0x8c] sm:$0x1] %vm27_vm0, %v2187_v0 }
  0x52   :  { %169 = vst.msk [vmem:[#allocation2 + $0x8d] sm:$0x1] %vm27_vm0, %v2187_v0  ;;  %170 = vst.msk [vmem:[#allocation2 + $0x8e] sm:$0x1] %vm27_vm0, %v2187_v0  ;;  %p2167_p8 = por %p2166_p7, %p2165_p6 }
  0x53   :  { %172 = vst.msk [vmem:[#allocation2 + $0x90] sm:$0x1] %vm27_vm0, %v2187_v0  ;;  %173 = vst.msk [vmem:[#allocation2 + $0x91] sm:$0x1] %vm27_vm0, %v2187_v0 }
  0x54   :  { %174 = vst.msk [vmem:[#allocation2 + $0x92] sm:$0x1] %vm27_vm0, %v2187_v0  ;;  %175 = vst.msk [vmem:[#allocation2 + $0x93] sm:$0x1] %vm27_vm0, %v2187_v0  ;;  %p2168_p9 = pnand %p2167_p8, %p2161_p5 }
  0x55   :  { %176 = vst.msk [vmem:[#allocation2 + $0x94] sm:$0x1] %vm27_vm0, %v2187_v0  ;;  %177 = vst.msk [vmem:[#allocation2 + $0x95] sm:$0x1] %vm27_vm0, %v2187_v0 }
  0x56   :  { %178 = vst.msk [vmem:[#allocation2 + $0x96] sm:$0x1] %vm27_vm0, %v2187_v0  ;;  %179 = vst.msk [vmem:[#allocation2 + $0x97] sm:$0x1] %vm27_vm0, %v2187_v0 }
  0x57   :  { %180 = vst.msk [vmem:[#allocation2 + $0x98] sm:$0x1] %vm27_vm0, %v2187_v0  ;;  %181 = vst.msk [vmem:[#allocation2 + $0x99] sm:$0x1] %vm27_vm0, %v2187_v0 }
  0x58   :  { %182 = vst.msk [vmem:[#allocation2 + $0x9a] sm:$0x1] %vm27_vm0, %v2187_v0  ;;  %183 = vst.msk [vmem:[#allocation2 + $0x9b] sm:$0x1] %vm27_vm0, %v2187_v0 }
  0x59   :  { %184 = vst.msk [vmem:[#allocation2 + $0x9c] sm:$0x1] %vm27_vm0, %v2187_v0  ;;  %185 = vst.msk [vmem:[#allocation2 + $0x9d] sm:$0x1] %vm27_vm0, %v2187_v0 }
  0x5a   :  { %186 = vst.msk [vmem:[#allocation2 + $0x9e] sm:$0x1] %vm27_vm0, %v2187_v0  ;;  %187 = vst.msk [vmem:[#allocation2 + $0x9f] sm:$0x1] %vm27_vm0, %v2187_v0 }
  0x5b   :  { %188 = vst.msk [vmem:[#allocation2 + $0xa0] sm:$0x1] %vm27_vm0, %v2187_v0  ;;  %190 = vst.msk [vmem:[#allocation2 + $0xa2] sm:$0x1] %vm27_vm0, %v2187_v0 }
  0x5c   :  { %191 = vst.msk [vmem:[#allocation2 + $0xa3] sm:$0x1] %vm27_vm0, %v2187_v0  ;;  %192 = vst.msk [vmem:[#allocation2 + $0xa4] sm:$0x1] %vm27_vm0, %v2187_v0 }
  0x5d   :  { %193 = vst.msk [vmem:[#allocation2 + $0xa5] sm:$0x1] %vm27_vm0, %v2187_v0  ;;  %194 = vst.msk [vmem:[#allocation2 + $0xa6] sm:$0x1] %vm27_vm0, %v2187_v0 }
  0x5e   :  { %195 = vst.msk [vmem:[#allocation2 + $0xa7] sm:$0x1] %vm27_vm0, %v2187_v0  ;;  %196 = vst.msk [vmem:[#allocation2 + $0xa8] sm:$0x1] %vm27_vm0, %v2187_v0 }
  0x5f   :  { %197 = vst.msk [vmem:[#allocation2 + $0xa9] sm:$0x1] %vm27_vm0, %v2187_v0  ;;  %198 = vst.msk [vmem:[#allocation2 + $0xaa] sm:$0x1] %vm27_vm0, %v2187_v0 }
  0x60   :  { %199 = vst.msk [vmem:[#allocation2 + $0xab] sm:$0x1] %vm27_vm0, %v2187_v0  ;;  %200 = vst.msk [vmem:[#allocation2 + $0xac] sm:$0x1] %vm27_vm0, %v2187_v0 }
  0x61   :  { %201 = vst.msk [vmem:[#allocation2 + $0xad] sm:$0x1] %vm27_vm0, %v2187_v0  ;;  %202 = vst.msk [vmem:[#allocation2 + $0xae] sm:$0x1] %vm27_vm0, %v2187_v0 }
  0x62   :  { %203 = vst.msk [vmem:[#allocation2 + $0xaf] sm:$0x1] %vm27_vm0, %v2187_v0  ;;  %204 = vst.msk [vmem:[#allocation2 + $0xb0] sm:$0x1] %vm27_vm0, %v2187_v0 }
  0x63   :  { %205 = vst.msk [vmem:[#allocation2 + $0xb1] sm:$0x1] %vm27_vm0, %v2187_v0  ;;  %206 = vst.msk [vmem:[#allocation2 + $0xb2] sm:$0x1] %vm27_vm0, %v2187_v0 }
  0x64   :  { %208 = vst.msk [vmem:[#allocation2 + $0xb4] sm:$0x1] %vm27_vm0, %v2187_v0  ;;  %209 = vst.msk [vmem:[#allocation2 + $0xb5] sm:$0x1] %vm27_vm0, %v2187_v0 }
  0x65   :  { %210 = vst.msk [vmem:[#allocation2 + $0xb6] sm:$0x1] %vm27_vm0, %v2187_v0  ;;  %211 = vst.msk [vmem:[#allocation2 + $0xb7] sm:$0x1] %vm27_vm0, %v2187_v0 }
  0x66   :  { %212 = vst.msk [vmem:[#allocation2 + $0xb8] sm:$0x1] %vm27_vm0, %v2187_v0  ;;  %213 = vst.msk [vmem:[#allocation2 + $0xb9] sm:$0x1] %vm27_vm0, %v2187_v0 }
  0x67   :  { %214 = vst.msk [vmem:[#allocation2 + $0xba] sm:$0x1] %vm27_vm0, %v2187_v0  ;;  %215 = vst.msk [vmem:[#allocation2 + $0xbb] sm:$0x1] %vm27_vm0, %v2187_v0 }
  0x68   :  { %216 = vst.msk [vmem:[#allocation2 + $0xbc] sm:$0x1] %vm27_vm0, %v2187_v0  ;;  %217 = vst.msk [vmem:[#allocation2 + $0xbd] sm:$0x1] %vm27_vm0, %v2187_v0 }
  0x69   :  { %218 = vst.msk [vmem:[#allocation2 + $0xbe] sm:$0x1] %vm27_vm0, %v2187_v0  ;;  %219 = vst.msk [vmem:[#allocation2 + $0xbf] sm:$0x1] %vm27_vm0, %v2187_v0 }
  0x6a   :  { %220 = vst.msk [vmem:[#allocation2 + $0xc0] sm:$0x1] %vm27_vm0, %v2187_v0  ;;  %221 = vst.msk [vmem:[#allocation2 + $0xc1] sm:$0x1] %vm27_vm0, %v2187_v0 }
  0x6b   :  { %222 = vst.msk [vmem:[#allocation2 + $0xc2] sm:$0x1] %vm27_vm0, %v2187_v0  ;;  %223 = vst.msk [vmem:[#allocation2 + $0xc3] sm:$0x1] %vm27_vm0, %v2187_v0 }
  0x6c   :  { %224 = vst.msk [vmem:[#allocation2 + $0xc4] sm:$0x1] %vm27_vm0, %v2187_v0  ;;  %226 = vst.msk [vmem:[#allocation2 + $0xc6] sm:$0x1] %vm27_vm0, %v2187_v0 }
  0x6d   :  { %227 = vst.msk [vmem:[#allocation2 + $0xc7] sm:$0x1] %vm27_vm0, %v2187_v0  ;;  %228 = vst.msk [vmem:[#allocation2 + $0xc8] sm:$0x1] %vm27_vm0, %v2187_v0 }
  0x6e   :  { %229 = vst.msk [vmem:[#allocation2 + $0xc9] sm:$0x1] %vm27_vm0, %v2187_v0  ;;  %230 = vst.msk [vmem:[#allocation2 + $0xca] sm:$0x1] %vm27_vm0, %v2187_v0 }
  0x6f   :  { %231 = vst.msk [vmem:[#allocation2 + $0xcb] sm:$0x1] %vm27_vm0, %v2187_v0  ;;  %232 = vst.msk [vmem:[#allocation2 + $0xcc] sm:$0x1] %vm27_vm0, %v2187_v0 }
  0x70   :  { %233 = vst.msk [vmem:[#allocation2 + $0xcd] sm:$0x1] %vm27_vm0, %v2187_v0  ;;  %234 = vst.msk [vmem:[#allocation2 + $0xce] sm:$0x1] %vm27_vm0, %v2187_v0 }
  0x71   :  { %235 = vst.msk [vmem:[#allocation2 + $0xcf] sm:$0x1] %vm27_vm0, %v2187_v0  ;;  %236 = vst.msk [vmem:[#allocation2 + $0xd0] sm:$0x1] %vm27_vm0, %v2187_v0 }
  0x72   :  { %237 = vst.msk [vmem:[#allocation2 + $0xd1] sm:$0x1] %vm27_vm0, %v2187_v0  ;;  %238 = vst.msk [vmem:[#allocation2 + $0xd2] sm:$0x1] %vm27_vm0, %v2187_v0 }
  0x73   :  { %239 = vst.msk [vmem:[#allocation2 + $0xd3] sm:$0x1] %vm27_vm0, %v2187_v0  ;;  %240 = vst.msk [vmem:[#allocation2 + $0xd4] sm:$0x1] %vm27_vm0, %v2187_v0 }
  0x74   :  { %241 = vst.msk [vmem:[#allocation2 + $0xd5] sm:$0x1] %vm27_vm0, %v2187_v0  ;;  %242 = vst.msk [vmem:[#allocation2 + $0xd6] sm:$0x1] %vm27_vm0, %v2187_v0 }
  0x75   :  { %244 = vst.msk [vmem:[#allocation2 + $0xd8] sm:$0x1] %vm27_vm0, %v2187_v0  ;;  %245 = vst.msk [vmem:[#allocation2 + $0xd9] sm:$0x1] %vm27_vm0, %v2187_v0 }
  0x76   :  { %246 = vst.msk [vmem:[#allocation2 + $0xda] sm:$0x1] %vm27_vm0, %v2187_v0  ;;  %247 = vst.msk [vmem:[#allocation2 + $0xdb] sm:$0x1] %vm27_vm0, %v2187_v0 }
  0x77   :  { %248 = vst.msk [vmem:[#allocation2 + $0xdc] sm:$0x1] %vm27_vm0, %v2187_v0  ;;  %249 = vst.msk [vmem:[#allocation2 + $0xdd] sm:$0x1] %vm27_vm0, %v2187_v0 }
  0x78   :  { %250 = vst.msk [vmem:[#allocation2 + $0xde] sm:$0x1] %vm27_vm0, %v2187_v0  ;;  %251 = vst.msk [vmem:[#allocation2 + $0xdf] sm:$0x1] %vm27_vm0, %v2187_v0 }
  0x79   :  { %252 = vst.msk [vmem:[#allocation2 + $0xe0] sm:$0x1] %vm27_vm0, %v2187_v0  ;;  %253 = vst.msk [vmem:[#allocation2 + $0xe1] sm:$0x1] %vm27_vm0, %v2187_v0 }
  0x7a   :  { %254 = vst.msk [vmem:[#allocation2 + $0xe2] sm:$0x1] %vm27_vm0, %v2187_v0  ;;  %255 = vst.msk [vmem:[#allocation2 + $0xe3] sm:$0x1] %vm27_vm0, %v2187_v0 }
  0x7b   :  { %256 = vst.msk [vmem:[#allocation2 + $0xe4] sm:$0x1] %vm27_vm0, %v2187_v0  ;;  %257 = vst.msk [vmem:[#allocation2 + $0xe5] sm:$0x1] %vm27_vm0, %v2187_v0 }
  0x7c   :  { %258 = vst.msk [vmem:[#allocation2 + $0xe6] sm:$0x1] %vm27_vm0, %v2187_v0  ;;  %259 = vst.msk [vmem:[#allocation2 + $0xe7] sm:$0x1] %vm27_vm0, %v2187_v0 }
  0x7d   :  { %260 = vst.msk [vmem:[#allocation2 + $0xe8] sm:$0x1] %vm27_vm0, %v2187_v0  ;;  %262 = vst.msk [vmem:[#allocation2 + $0xea] sm:$0x1] %vm27_vm0, %v2187_v0 }
  0x7e   :  { %263 = vst.msk [vmem:[#allocation2 + $0xeb] sm:$0x1] %vm27_vm0, %v2187_v0  ;;  %264 = vst.msk [vmem:[#allocation2 + $0xec] sm:$0x1] %vm27_vm0, %v2187_v0 }
  0x7f   :  { %265 = vst.msk [vmem:[#allocation2 + $0xed] sm:$0x1] %vm27_vm0, %v2187_v0  ;;  %266 = vst.msk [vmem:[#allocation2 + $0xee] sm:$0x1] %vm27_vm0, %v2187_v0 }
  0x80   :  { %267 = vst.msk [vmem:[#allocation2 + $0xef] sm:$0x1] %vm27_vm0, %v2187_v0  ;;  %268 = vst.msk [vmem:[#allocation2 + $0xf0] sm:$0x1] %vm27_vm0, %v2187_v0 }
  0x81   :  { %269 = vst.msk [vmem:[#allocation2 + $0xf1] sm:$0x1] %vm27_vm0, %v2187_v0  ;;  %270 = vst.msk [vmem:[#allocation2 + $0xf2] sm:$0x1] %vm27_vm0, %v2187_v0 }
  0x82   :  { %271 = vst.msk [vmem:[#allocation2 + $0xf3] sm:$0x1] %vm27_vm0, %v2187_v0  ;;  %272 = vst.msk [vmem:[#allocation2 + $0xf4] sm:$0x1] %vm27_vm0, %v2187_v0 }
  0x83   :  { %273 = vst.msk [vmem:[#allocation2 + $0xf5] sm:$0x1] %vm27_vm0, %v2187_v0  ;;  %274 = vst.msk [vmem:[#allocation2 + $0xf6] sm:$0x1] %vm27_vm0, %v2187_v0 }
  0x84   :  { %275 = vst.msk [vmem:[#allocation2 + $0xf7] sm:$0x1] %vm27_vm0, %v2187_v0  ;;  %276 = vst.msk [vmem:[#allocation2 + $0xf8] sm:$0x1] %vm27_vm0, %v2187_v0 }
  0x85   :  { %277 = vst.msk [vmem:[#allocation2 + $0xf9] sm:$0x1] %vm27_vm0, %v2187_v0  ;;  %278 = vst.msk [vmem:[#allocation2 + $0xfa] sm:$0x1] %vm27_vm0, %v2187_v0 }
  0x86   :  { %280 = vst.msk [vmem:[#allocation2 + $0xfc] sm:$0x1] %vm27_vm0, %v2187_v0  ;;  %281 = vst.msk [vmem:[#allocation2 + $0xfd] sm:$0x1] %vm27_vm0, %v2187_v0 }
  0x87   :  { %282 = vst.msk [vmem:[#allocation2 + $0xfe] sm:$0x1] %vm27_vm0, %v2187_v0  ;;  %283 = vst.msk [vmem:[#allocation2 + $0xff] sm:$0x1] %vm27_vm0, %v2187_v0 }
  0x88   :  { %284 = vst.msk [vmem:[#allocation2 + $0x100] sm:$0x1] %vm27_vm0, %v2187_v0  ;;  %285 = vst.msk [vmem:[#allocation2 + $0x101] sm:$0x1] %vm27_vm0, %v2187_v0 }
  0x89   :  { %286 = vst.msk [vmem:[#allocation2 + $0x102] sm:$0x1] %vm27_vm0, %v2187_v0  ;;  %287 = vst.msk [vmem:[#allocation2 + $0x103] sm:$0x1] %vm27_vm0, %v2187_v0 }
  0x8a   :  { %288 = vst.msk [vmem:[#allocation2 + $0x104] sm:$0x1] %vm27_vm0, %v2187_v0  ;;  %289 = vst.msk [vmem:[#allocation2 + $0x105] sm:$0x1] %vm27_vm0, %v2187_v0 }
  0x8b   :  { %290 = vst.msk [vmem:[#allocation2 + $0x106] sm:$0x1] %vm27_vm0, %v2187_v0  ;;  %291 = vst.msk [vmem:[#allocation2 + $0x107] sm:$0x1] %vm27_vm0, %v2187_v0 }
  0x8c   :  { %292 = vst.msk [vmem:[#allocation2 + $0x108] sm:$0x1] %vm27_vm0, %v2187_v0  ;;  %293 = vst.msk [vmem:[#allocation2 + $0x109] sm:$0x1] %vm27_vm0, %v2187_v0 }
  0x8d   :  { %294 = vst.msk [vmem:[#allocation2 + $0x10a] sm:$0x1] %vm27_vm0, %v2187_v0  ;;  %295 = vst.msk [vmem:[#allocation2 + $0x10b] sm:$0x1] %vm27_vm0, %v2187_v0 }
  0x8e   :  { %296 = vst.msk [vmem:[#allocation2 + $0x10c] sm:$0x1] %vm27_vm0, %v2187_v0  ;;  %298 = vst.msk [vmem:[#allocation2 + $0x10e] sm:$0x1] %vm27_vm0, %v2187_v0 }
  0x8f   :  { %299 = vst.msk [vmem:[#allocation2 + $0x10f] sm:$0x1] %vm27_vm0, %v2187_v0  ;;  %300 = vst.msk [vmem:[#allocation2 + $0x110] sm:$0x1] %vm27_vm0, %v2187_v0 }
  0x90   :  { %301 = vst.msk [vmem:[#allocation2 + $0x111] sm:$0x1] %vm27_vm0, %v2187_v0  ;;  %302 = vst.msk [vmem:[#allocation2 + $0x112] sm:$0x1] %vm27_vm0, %v2187_v0 }
  0x91   :  { %303 = vst.msk [vmem:[#allocation2 + $0x113] sm:$0x1] %vm27_vm0, %v2187_v0  ;;  %304 = vst.msk [vmem:[#allocation2 + $0x114] sm:$0x1] %vm27_vm0, %v2187_v0 }
  0x92   :  { %305 = vst.msk [vmem:[#allocation2 + $0x115] sm:$0x1] %vm27_vm0, %v2187_v0  ;;  %306 = vst.msk [vmem:[#allocation2 + $0x116] sm:$0x1] %vm27_vm0, %v2187_v0 }
  0x93   :  { %307 = vst.msk [vmem:[#allocation2 + $0x117] sm:$0x1] %vm27_vm0, %v2187_v0  ;;  %308 = vst.msk [vmem:[#allocation2 + $0x118] sm:$0x1] %vm27_vm0, %v2187_v0 }
  0x94   :  { %309 = vst.msk [vmem:[#allocation2 + $0x119] sm:$0x1] %vm27_vm0, %v2187_v0  ;;  %310 = vst.msk [vmem:[#allocation2 + $0x11a] sm:$0x1] %vm27_vm0, %v2187_v0 }
  0x95   :  { %311 = vst.msk [vmem:[#allocation2 + $0x11b] sm:$0x1] %vm27_vm0, %v2187_v0  ;;  %312 = vst.msk [vmem:[#allocation2 + $0x11c] sm:$0x1] %vm27_vm0, %v2187_v0 }
  0x96   :  { %313 = vst.msk [vmem:[#allocation2 + $0x11d] sm:$0x1] %vm27_vm0, %v2187_v0  ;;  %314 = vst.msk [vmem:[#allocation2 + $0x11e] sm:$0x1] %vm27_vm0, %v2187_v0 }
  0x97   :  { %316 = vst.msk [vmem:[#allocation2 + $0x120] sm:$0x1] %vm27_vm0, %v2187_v0  ;;  %317 = vst.msk [vmem:[#allocation2 + $0x121] sm:$0x1] %vm27_vm0, %v2187_v0 }
  0x98   :  { %318 = vst.msk [vmem:[#allocation2 + $0x122] sm:$0x1] %vm27_vm0, %v2187_v0  ;;  %319 = vst.msk [vmem:[#allocation2 + $0x123] sm:$0x1] %vm27_vm0, %v2187_v0 }
  0x99   :  { %320 = vst.msk [vmem:[#allocation2 + $0x124] sm:$0x1] %vm27_vm0, %v2187_v0  ;;  %321 = vst.msk [vmem:[#allocation2 + $0x125] sm:$0x1] %vm27_vm0, %v2187_v0 }
  0x9a   :  { %322 = vst.msk [vmem:[#allocation2 + $0x126] sm:$0x1] %vm27_vm0, %v2187_v0  ;;  %323 = vst.msk [vmem:[#allocation2 + $0x127] sm:$0x1] %vm27_vm0, %v2187_v0 }
  0x9b   :  { %324 = vst.msk [vmem:[#allocation2 + $0x128] sm:$0x1] %vm27_vm0, %v2187_v0  ;;  %325 = vst.msk [vmem:[#allocation2 + $0x129] sm:$0x1] %vm27_vm0, %v2187_v0 }
  0x9c   :  { %326 = vst.msk [vmem:[#allocation2 + $0x12a] sm:$0x1] %vm27_vm0, %v2187_v0  ;;  %327 = vst.msk [vmem:[#allocation2 + $0x12b] sm:$0x1] %vm27_vm0, %v2187_v0 }
  0x9d   :  { %328 = vst.msk [vmem:[#allocation2 + $0x12c] sm:$0x1] %vm27_vm0, %v2187_v0  ;;  %329 = vst.msk [vmem:[#allocation2 + $0x12d] sm:$0x1] %vm27_vm0, %v2187_v0 }
  0x9e   :  { %330 = vst.msk [vmem:[#allocation2 + $0x12e] sm:$0x1] %vm27_vm0, %v2187_v0  ;;  %331 = vst.msk [vmem:[#allocation2 + $0x12f] sm:$0x1] %vm27_vm0, %v2187_v0 }
  0x9f   :  { %332 = vst.msk [vmem:[#allocation2 + $0x130] sm:$0x1] %vm27_vm0, %v2187_v0  ;;  %334 = vst.msk [vmem:[#allocation2 + $0x132] sm:$0x1] %vm27_vm0, %v2187_v0 }
  0xa0   :  { %335 = vst.msk [vmem:[#allocation2 + $0x133] sm:$0x1] %vm27_vm0, %v2187_v0  ;;  %336 = vst.msk [vmem:[#allocation2 + $0x134] sm:$0x1] %vm27_vm0, %v2187_v0 }
  0xa1   :  { %337 = vst.msk [vmem:[#allocation2 + $0x135] sm:$0x1] %vm27_vm0, %v2187_v0  ;;  %338 = vst.msk [vmem:[#allocation2 + $0x136] sm:$0x1] %vm27_vm0, %v2187_v0 }
  0xa2   :  { %339 = vst.msk [vmem:[#allocation2 + $0x137] sm:$0x1] %vm27_vm0, %v2187_v0  ;;  %340 = vst.msk [vmem:[#allocation2 + $0x138] sm:$0x1] %vm27_vm0, %v2187_v0 }
  0xa3   :  { %341 = vst.msk [vmem:[#allocation2 + $0x139] sm:$0x1] %vm27_vm0, %v2187_v0  ;;  %342 = vst.msk [vmem:[#allocation2 + $0x13a] sm:$0x1] %vm27_vm0, %v2187_v0 }
  0xa4   :  { %343 = vst.msk [vmem:[#allocation2 + $0x13b] sm:$0x1] %vm27_vm0, %v2187_v0  ;;  %344 = vst.msk [vmem:[#allocation2 + $0x13c] sm:$0x1] %vm27_vm0, %v2187_v0 }
  0xa5   :  { %345 = vst.msk [vmem:[#allocation2 + $0x13d] sm:$0x1] %vm27_vm0, %v2187_v0  ;;  %346 = vst.msk [vmem:[#allocation2 + $0x13e] sm:$0x1] %vm27_vm0, %v2187_v0 }
  0xa6   :  { %347 = vst.msk [vmem:[#allocation2 + $0x13f] sm:$0x1] %vm27_vm0, %v2187_v0  ;;  %348 = vst.msk [vmem:[#allocation2 + $0x140] sm:$0x1] %vm27_vm0, %v2187_v0 }
  0xa7   :  { %349 = vst.msk [vmem:[#allocation2 + $0x141] sm:$0x1] %vm27_vm0, %v2187_v0  ;;  %350 = vst.msk [vmem:[#allocation2 + $0x142] sm:$0x1] %vm27_vm0, %v2187_v0  ;;  %v419_v0 = vld [vmem:[#allocation4 + $0x43] sm:$0x1] }
  0xa8   :  { %610 = vst.msk [vmem:[#allocation2 + $0x13] sm:$0x1] %vm27_vm0, %v352_v1  ;;  %611 = vst.msk [vmem:[#allocation2 + $0x14] sm:$0x1] %vm27_vm0, %v353_v2  ;;  %v420_v1 = vld [vmem:[#allocation4 + $0x44] sm:$0x1] }
  0xa9   :  { %612 = vst.msk [vmem:[#allocation2 + $0x15] sm:$0x1] %vm27_vm0, %v354_v3  ;;  %613 = vst.msk [vmem:[#allocation2 + $0x16] sm:$0x1] %vm27_vm0, %v355_v4  ;;  %v421_v2 = vld [vmem:[#allocation4 + $0x45] sm:$0x1] }
  0xaa   :  { %614 = vst.msk [vmem:[#allocation2 + $0x17] sm:$0x1] %vm27_vm0, %v356_v5  ;;  %615 = vst.msk [vmem:[#allocation2 + $0x18] sm:$0x1] %vm27_vm0, %v357_v6  ;;  %v422_v3 = vld [vmem:[#allocation4 + $0x46] sm:$0x1] }
  0xab   :  { %616 = vst.msk [vmem:[#allocation2 + $0x19] sm:$0x1] %vm27_vm0, %v358_v7  ;;  %617 = vst.msk [vmem:[#allocation2 + $0x1a] sm:$0x1] %vm27_vm0, %v359_v8  ;;  %v423_v4 = vld [vmem:[#allocation4 + $0x47] sm:$0x1] }
  0xac   :  { %618 = vst.msk [vmem:[#allocation2 + $0x1b] sm:$0x1] %vm27_vm0, %v360_v9  ;;  %619 = vst.msk [vmem:[#allocation2 + $0x1c] sm:$0x1] %vm27_vm0, %v361_v10  ;;  %v424_v5 = vld [vmem:[#allocation4 + $0x48] sm:$0x1] }
  0xad   :  { %620 = vst.msk [vmem:[#allocation2 + $0x1d] sm:$0x1] %vm27_vm0, %v362_v11  ;;  %621 = vst.msk [vmem:[#allocation2 + $0x1e] sm:$0x1] %vm27_vm0, %v363_v12  ;;  %v425_v6 = vld [vmem:[#allocation4 + $0x49] sm:$0x1] }
  0xae   :  { %622 = vst.msk [vmem:[#allocation2 + $0x1f] sm:$0x1] %vm27_vm0, %v364_v13  ;;  %623 = vst.msk [vmem:[#allocation2 + $0x20] sm:$0x1] %vm27_vm0, %v365_v14  ;;  %v426_v7 = vld [vmem:[#allocation4 + $0x4a] sm:$0x1] }
  0xaf   :  { %624 = vst.msk [vmem:[#allocation2 + $0x21] sm:$0x1] %vm27_vm0, %v366_v15  ;;  %626 = vst.msk [vmem:[#allocation2 + $0x25] sm:$0x1] %vm27_vm0, %v368_v16  ;;  %v427_v8 = vld [vmem:[#allocation4 + $0x4b] sm:$0x1] }
  0xb0   :  { %627 = vst.msk [vmem:[#allocation2 + $0x26] sm:$0x1] %vm27_vm0, %v369_v17  ;;  %628 = vst.msk [vmem:[#allocation2 + $0x27] sm:$0x1] %vm27_vm0, %v370_v18  ;;  %v428_v9 = vld [vmem:[#allocation4 + $0x4c] sm:$0x1] }
  0xb1   :  { %629 = vst.msk [vmem:[#allocation2 + $0x28] sm:$0x1] %vm27_vm0, %v371_v19  ;;  %630 = vst.msk [vmem:[#allocation2 + $0x29] sm:$0x1] %vm27_vm0, %v372_v20  ;;  %v429_v10 = vld [vmem:[#allocation4 + $0x4d] sm:$0x1] }
  0xb2   :  { %631 = vst.msk [vmem:[#allocation2 + $0x2a] sm:$0x1] %vm27_vm0, %v373_v21  ;;  %632 = vst.msk [vmem:[#allocation2 + $0x2b] sm:$0x1] %vm27_vm0, %v374_v22  ;;  %v430_v11 = vld [vmem:[#allocation4 + $0x4e] sm:$0x1] }
  0xb3   :  { %633 = vst.msk [vmem:[#allocation2 + $0x2c] sm:$0x1] %vm27_vm0, %v375_v23  ;;  %634 = vst.msk [vmem:[#allocation2 + $0x2d] sm:$0x1] %vm27_vm0, %v376_v24  ;;  %v432_v12 = vld [vmem:[#allocation4 + $0x50] sm:$0x1] }
  0xb4   :  { %635 = vst.msk [vmem:[#allocation2 + $0x2e] sm:$0x1] %vm27_vm0, %v377_v25  ;;  %636 = vst.msk [vmem:[#allocation2 + $0x2f] sm:$0x1] %vm27_vm0, %v378_v26  ;;  %v433_v13 = vld [vmem:[#allocation4 + $0x51] sm:$0x1] }
  0xb5   :  { %637 = vst.msk [vmem:[#allocation2 + $0x30] sm:$0x1] %vm27_vm0, %v379_v27  ;;  %638 = vst.msk [vmem:[#allocation2 + $0x31] sm:$0x1] %vm27_vm0, %v380_v28  ;;  %v434_v14 = vld [vmem:[#allocation4 + $0x52] sm:$0x1] }
  0xb6   :  { %639 = vst.msk [vmem:[#allocation2 + $0x32] sm:$0x1] %vm27_vm0, %v381_v29  ;;  %640 = vst.msk [vmem:[#allocation2 + $0x33] sm:$0x1] %vm27_vm0, %v382_v30  ;;  %v435_v15 = vld [vmem:[#allocation4 + $0x53] sm:$0x1] }
  0xb7   :  { %642 = vst.msk [vmem:[#allocation2 + $0x37] sm:$0x1] %vm27_vm0, %v384_v31  ;;  %643 = vst.msk [vmem:[#allocation2 + $0x38] sm:$0x1] %vm27_vm0, %v385_v32  ;;  %v436_v16 = vld [vmem:[#allocation4 + $0x54] sm:$0x1] }
  0xb8   :  { %644 = vst.msk [vmem:[#allocation2 + $0x39] sm:$0x1] %vm27_vm0, %v386_v33  ;;  %645 = vst.msk [vmem:[#allocation2 + $0x3a] sm:$0x1] %vm27_vm0, %v387_v34  ;;  %v437_v17 = vld [vmem:[#allocation4 + $0x55] sm:$0x1] }
  0xb9   :  { %646 = vst.msk [vmem:[#allocation2 + $0x3b] sm:$0x1] %vm27_vm0, %v388_v35  ;;  %647 = vst.msk [vmem:[#allocation2 + $0x3c] sm:$0x1] %vm27_vm0, %v389_v36  ;;  %v438_v18 = vld [vmem:[#allocation4 + $0x56] sm:$0x1] }
  0xba   :  { %648 = vst.msk [vmem:[#allocation2 + $0x3d] sm:$0x1] %vm27_vm0, %v390_v37  ;;  %649 = vst.msk [vmem:[#allocation2 + $0x3e] sm:$0x1] %vm27_vm0, %v391_v38  ;;  %v439_v19 = vld [vmem:[#allocation4 + $0x57] sm:$0x1] }
  0xbb   :  { %650 = vst.msk [vmem:[#allocation2 + $0x3f] sm:$0x1] %vm27_vm0, %v392_v39  ;;  %651 = vst.msk [vmem:[#allocation2 + $0x40] sm:$0x1] %vm27_vm0, %v393_v40  ;;  %v440_v20 = vld [vmem:[#allocation4 + $0x58] sm:$0x1] }
  0xbc   :  { %652 = vst.msk [vmem:[#allocation2 + $0x41] sm:$0x1] %vm27_vm0, %v394_v41  ;;  %653 = vst.msk [vmem:[#allocation2 + $0x42] sm:$0x1] %vm27_vm0, %v395_v42  ;;  %v441_v21 = vld [vmem:[#allocation4 + $0x59] sm:$0x1] }
  0xbd   :  { %654 = vst.msk [vmem:[#allocation2 + $0x43] sm:$0x1] %vm27_vm0, %v396_v43  ;;  %655 = vst.msk [vmem:[#allocation2 + $0x44] sm:$0x1] %vm27_vm0, %v397_v44  ;;  %v442_v22 = vld [vmem:[#allocation4 + $0x5a] sm:$0x1] }
  0xbe   :  { %656 = vst.msk [vmem:[#allocation2 + $0x45] sm:$0x1] %vm27_vm0, %v398_v45  ;;  %658 = vst.msk [vmem:[#allocation2 + $0x49] sm:$0x1] %vm27_vm0, %v400_v46  ;;  %v443_v23 = vld [vmem:[#allocation4 + $0x5b] sm:$0x1] }
  0xbf   :  { %659 = vst.msk [vmem:[#allocation2 + $0x4a] sm:$0x1] %vm27_vm0, %v401_v47  ;;  %660 = vst.msk [vmem:[#allocation2 + $0x4b] sm:$0x1] %vm27_vm0, %v402_v48  ;;  %v444_v24 = vld [vmem:[#allocation4 + $0x5c] sm:$0x1] }
  0xc0   :  { %661 = vst.msk [vmem:[#allocation2 + $0x4c] sm:$0x1] %vm27_vm0, %v403_v49  ;;  %662 = vst.msk [vmem:[#allocation2 + $0x4d] sm:$0x1] %vm27_vm0, %v404_v50  ;;  %v445_v25 = vld [vmem:[#allocation4 + $0x5d] sm:$0x1] }
  0xc1   :  { %663 = vst.msk [vmem:[#allocation2 + $0x4e] sm:$0x1] %vm27_vm0, %v405_v51  ;;  %664 = vst.msk [vmem:[#allocation2 + $0x4f] sm:$0x1] %vm27_vm0, %v406_v52  ;;  %v446_v26 = vld [vmem:[#allocation4 + $0x5e] sm:$0x1] }
  0xc2   :  { %665 = vst.msk [vmem:[#allocation2 + $0x50] sm:$0x1] %vm27_vm0, %v407_v53  ;;  %666 = vst.msk [vmem:[#allocation2 + $0x51] sm:$0x1] %vm27_vm0, %v408_v54  ;;  %v448_v27 = vld [vmem:[#allocation4 + $0x60] sm:$0x1] }
  0xc3   :  { %667 = vst.msk [vmem:[#allocation2 + $0x52] sm:$0x1] %vm27_vm0, %v409_v55  ;;  %668 = vst.msk [vmem:[#allocation2 + $0x53] sm:$0x1] %vm27_vm0, %v410_v56  ;;  %v449_v28 = vld [vmem:[#allocation4 + $0x61] sm:$0x1] }
  0xc4   :  { %669 = vst.msk [vmem:[#allocation2 + $0x54] sm:$0x1] %vm27_vm0, %v411_v57  ;;  %670 = vst.msk [vmem:[#allocation2 + $0x55] sm:$0x1] %vm27_vm0, %v412_v58  ;;  %v450_v29 = vld [vmem:[#allocation4 + $0x62] sm:$0x1] }
  0xc5   :  { %671 = vst.msk [vmem:[#allocation2 + $0x56] sm:$0x1] %vm27_vm0, %v413_v59  ;;  %672 = vst.msk [vmem:[#allocation2 + $0x57] sm:$0x1] %vm27_vm0, %v414_v60  ;;  %v451_v30 = vld [vmem:[#allocation4 + $0x63] sm:$0x1] }
  0xc6   :  { %674 = vst.msk [vmem:[#allocation2 + $0x5b] sm:$0x1] %vm27_vm0, %v416_v61  ;;  %675 = vst.msk [vmem:[#allocation2 + $0x5c] sm:$0x1] %vm27_vm0, %v417_v62  ;;  %v452_v31 = vld [vmem:[#allocation4 + $0x64] sm:$0x1] }
  0xc7   :  { %676 = vst.msk [vmem:[#allocation2 + $0x5d] sm:$0x1] %vm27_vm0, %v418_v63  ;;  %677 = vst.msk [vmem:[#allocation2 + $0x5e] sm:$0x1] %vm27_vm0, %v419_v0  ;;  %v453_v32 = vld [vmem:[#allocation4 + $0x65] sm:$0x1] }
  0xc8   :  { %678 = vst.msk [vmem:[#allocation2 + $0x5f] sm:$0x1] %vm27_vm0, %v420_v1  ;;  %679 = vst.msk [vmem:[#allocation2 + $0x60] sm:$0x1] %vm27_vm0, %v421_v2  ;;  %v454_v33 = vld [vmem:[#allocation4 + $0x66] sm:$0x1] }
  0xc9   :  { %680 = vst.msk [vmem:[#allocation2 + $0x61] sm:$0x1] %vm27_vm0, %v422_v3  ;;  %681 = vst.msk [vmem:[#allocation2 + $0x62] sm:$0x1] %vm27_vm0, %v423_v4  ;;  %v455_v34 = vld [vmem:[#allocation4 + $0x67] sm:$0x1] }
  0xca   :  { %682 = vst.msk [vmem:[#allocation2 + $0x63] sm:$0x1] %vm27_vm0, %v424_v5  ;;  %683 = vst.msk [vmem:[#allocation2 + $0x64] sm:$0x1] %vm27_vm0, %v425_v6  ;;  %v456_v35 = vld [vmem:[#allocation4 + $0x68] sm:$0x1] }
  0xcb   :  { %684 = vst.msk [vmem:[#allocation2 + $0x65] sm:$0x1] %vm27_vm0, %v426_v7  ;;  %685 = vst.msk [vmem:[#allocation2 + $0x66] sm:$0x1] %vm27_vm0, %v427_v8  ;;  %v457_v36 = vld [vmem:[#allocation4 + $0x69] sm:$0x1] }
  0xcc   :  { %686 = vst.msk [vmem:[#allocation2 + $0x67] sm:$0x1] %vm27_vm0, %v428_v9  ;;  %687 = vst.msk [vmem:[#allocation2 + $0x68] sm:$0x1] %vm27_vm0, %v429_v10  ;;  %v458_v37 = vld [vmem:[#allocation4 + $0x6a] sm:$0x1] }
  0xcd   :  { %688 = vst.msk [vmem:[#allocation2 + $0x69] sm:$0x1] %vm27_vm0, %v430_v11  ;;  %690 = vst.msk [vmem:[#allocation2 + $0x6d] sm:$0x1] %vm27_vm0, %v432_v12  ;;  %v459_v38 = vld [vmem:[#allocation4 + $0x6b] sm:$0x1] }
  0xce   :  { %691 = vst.msk [vmem:[#allocation2 + $0x6e] sm:$0x1] %vm27_vm0, %v433_v13  ;;  %692 = vst.msk [vmem:[#allocation2 + $0x6f] sm:$0x1] %vm27_vm0, %v434_v14  ;;  %v460_v39 = vld [vmem:[#allocation4 + $0x6c] sm:$0x1] }
  0xcf   :  { %693 = vst.msk [vmem:[#allocation2 + $0x70] sm:$0x1] %vm27_vm0, %v435_v15  ;;  %694 = vst.msk [vmem:[#allocation2 + $0x71] sm:$0x1] %vm27_vm0, %v436_v16  ;;  %v461_v40 = vld [vmem:[#allocation4 + $0x6d] sm:$0x1] }
  0xd0   :  { %695 = vst.msk [vmem:[#allocation2 + $0x72] sm:$0x1] %vm27_vm0, %v437_v17  ;;  %696 = vst.msk [vmem:[#allocation2 + $0x73] sm:$0x1] %vm27_vm0, %v438_v18  ;;  %v462_v41 = vld [vmem:[#allocation4 + $0x6e] sm:$0x1] }
  0xd1   :  { %697 = vst.msk [vmem:[#allocation2 + $0x74] sm:$0x1] %vm27_vm0, %v439_v19  ;;  %698 = vst.msk [vmem:[#allocation2 + $0x75] sm:$0x1] %vm27_vm0, %v440_v20  ;;  %v464_v42 = vld [vmem:[#allocation4 + $0x70] sm:$0x1] }
  0xd2   :  { %699 = vst.msk [vmem:[#allocation2 + $0x76] sm:$0x1] %vm27_vm0, %v441_v21  ;;  %700 = vst.msk [vmem:[#allocation2 + $0x77] sm:$0x1] %vm27_vm0, %v442_v22  ;;  %v465_v43 = vld [vmem:[#allocation4 + $0x71] sm:$0x1] }
  0xd3   :  { %701 = vst.msk [vmem:[#allocation2 + $0x78] sm:$0x1] %vm27_vm0, %v443_v23  ;;  %702 = vst.msk [vmem:[#allocation2 + $0x79] sm:$0x1] %vm27_vm0, %v444_v24  ;;  %v466_v44 = vld [vmem:[#allocation4 + $0x72] sm:$0x1] }
  0xd4   :  { %703 = vst.msk [vmem:[#allocation2 + $0x7a] sm:$0x1] %vm27_vm0, %v445_v25  ;;  %704 = vst.msk [vmem:[#allocation2 + $0x7b] sm:$0x1] %vm27_vm0, %v446_v26  ;;  %v467_v45 = vld [vmem:[#allocation4 + $0x73] sm:$0x1] }
  0xd5   :  { %706 = vst.msk [vmem:[#allocation2 + $0x7f] sm:$0x1] %vm27_vm0, %v448_v27  ;;  %707 = vst.msk [vmem:[#allocation2 + $0x80] sm:$0x1] %vm27_vm0, %v449_v28  ;;  %v468_v46 = vld [vmem:[#allocation4 + $0x74] sm:$0x1] }
  0xd6   :  { %708 = vst.msk [vmem:[#allocation2 + $0x81] sm:$0x1] %vm27_vm0, %v450_v29  ;;  %709 = vst.msk [vmem:[#allocation2 + $0x82] sm:$0x1] %vm27_vm0, %v451_v30  ;;  %v469_v47 = vld [vmem:[#allocation4 + $0x75] sm:$0x1] }
  0xd7   :  { %710 = vst.msk [vmem:[#allocation2 + $0x83] sm:$0x1] %vm27_vm0, %v452_v31  ;;  %711 = vst.msk [vmem:[#allocation2 + $0x84] sm:$0x1] %vm27_vm0, %v453_v32  ;;  %v470_v48 = vld [vmem:[#allocation4 + $0x76] sm:$0x1] }
  0xd8   :  { %712 = vst.msk [vmem:[#allocation2 + $0x85] sm:$0x1] %vm27_vm0, %v454_v33  ;;  %713 = vst.msk [vmem:[#allocation2 + $0x86] sm:$0x1] %vm27_vm0, %v455_v34  ;;  %v471_v49 = vld [vmem:[#allocation4 + $0x77] sm:$0x1] }
  0xd9   :  { %714 = vst.msk [vmem:[#allocation2 + $0x87] sm:$0x1] %vm27_vm0, %v456_v35  ;;  %715 = vst.msk [vmem:[#allocation2 + $0x88] sm:$0x1] %vm27_vm0, %v457_v36  ;;  %v472_v50 = vld [vmem:[#allocation4 + $0x78] sm:$0x1] }
  0xda   :  { %716 = vst.msk [vmem:[#allocation2 + $0x89] sm:$0x1] %vm27_vm0, %v458_v37  ;;  %717 = vst.msk [vmem:[#allocation2 + $0x8a] sm:$0x1] %vm27_vm0, %v459_v38  ;;  %v473_v51 = vld [vmem:[#allocation4 + $0x79] sm:$0x1] }
  0xdb   :  { %718 = vst.msk [vmem:[#allocation2 + $0x8b] sm:$0x1] %vm27_vm0, %v460_v39  ;;  %719 = vst.msk [vmem:[#allocation2 + $0x8c] sm:$0x1] %vm27_vm0, %v461_v40  ;;  %v474_v52 = vld [vmem:[#allocation4 + $0x7a] sm:$0x1] }
  0xdc   :  { %720 = vst.msk [vmem:[#allocation2 + $0x8d] sm:$0x1] %vm27_vm0, %v462_v41  ;;  %722 = vst.msk [vmem:[#allocation2 + $0x91] sm:$0x1] %vm27_vm0, %v464_v42  ;;  %v475_v53 = vld [vmem:[#allocation4 + $0x7b] sm:$0x1] }
  0xdd   :  { %723 = vst.msk [vmem:[#allocation2 + $0x92] sm:$0x1] %vm27_vm0, %v465_v43  ;;  %724 = vst.msk [vmem:[#allocation2 + $0x93] sm:$0x1] %vm27_vm0, %v466_v44  ;;  %v476_v54 = vld [vmem:[#allocation4 + $0x7c] sm:$0x1] }
  0xde   :  { %725 = vst.msk [vmem:[#allocation2 + $0x94] sm:$0x1] %vm27_vm0, %v467_v45  ;;  %726 = vst.msk [vmem:[#allocation2 + $0x95] sm:$0x1] %vm27_vm0, %v468_v46  ;;  %v477_v55 = vld [vmem:[#allocation4 + $0x7d] sm:$0x1] }
  0xdf   :  { %727 = vst.msk [vmem:[#allocation2 + $0x96] sm:$0x1] %vm27_vm0, %v469_v47  ;;  %728 = vst.msk [vmem:[#allocation2 + $0x97] sm:$0x1] %vm27_vm0, %v470_v48  ;;  %v478_v56 = vld [vmem:[#allocation4 + $0x7e] sm:$0x1] }
  0xe0   :  { %729 = vst.msk [vmem:[#allocation2 + $0x98] sm:$0x1] %vm27_vm0, %v471_v49  ;;  %730 = vst.msk [vmem:[#allocation2 + $0x99] sm:$0x1] %vm27_vm0, %v472_v50  ;;  %v480_v57 = vld [vmem:[#allocation4 + $0x80] sm:$0x1] }
  0xe1   :  { %731 = vst.msk [vmem:[#allocation2 + $0x9a] sm:$0x1] %vm27_vm0, %v473_v51  ;;  %732 = vst.msk [vmem:[#allocation2 + $0x9b] sm:$0x1] %vm27_vm0, %v474_v52  ;;  %v481_v58 = vld [vmem:[#allocation4 + $0x81] sm:$0x1] }
  0xe2   :  { %733 = vst.msk [vmem:[#allocation2 + $0x9c] sm:$0x1] %vm27_vm0, %v475_v53  ;;  %734 = vst.msk [vmem:[#allocation2 + $0x9d] sm:$0x1] %vm27_vm0, %v476_v54  ;;  %v482_v59 = vld [vmem:[#allocation4 + $0x82] sm:$0x1] }
  0xe3   :  { %735 = vst.msk [vmem:[#allocation2 + $0x9e] sm:$0x1] %vm27_vm0, %v477_v55  ;;  %736 = vst.msk [vmem:[#allocation2 + $0x9f] sm:$0x1] %vm27_vm0, %v478_v56  ;;  %v483_v60 = vld [vmem:[#allocation4 + $0x83] sm:$0x1] }
  0xe4   :  { %738 = vst.msk [vmem:[#allocation2 + $0xa3] sm:$0x1] %vm27_vm0, %v480_v57  ;;  %739 = vst.msk [vmem:[#allocation2 + $0xa4] sm:$0x1] %vm27_vm0, %v481_v58  ;;  %v484_v61 = vld [vmem:[#allocation4 + $0x84] sm:$0x1] }
  0xe5   :  { %740 = vst.msk [vmem:[#allocation2 + $0xa5] sm:$0x1] %vm27_vm0, %v482_v59  ;;  %v485_v62 = vld [vmem:[#allocation4 + $0x85] sm:$0x1]  ;;  %741 = vst.msk [vmem:[#allocation2 + $0xa6] sm:$0x1] %vm27_vm0, %v483_v60 }
  0xe6   :  { %742 = vst.msk [vmem:[#allocation2 + $0xa7] sm:$0x1] %vm27_vm0, %v484_v61  ;;  %743 = vst.msk [vmem:[#allocation2 + $0xa8] sm:$0x1] %vm27_vm0, %v485_v62  ;;  %v486_v63 = vld [vmem:[#allocation4 + $0x86] sm:$0x1] }
  0xe7   :  { %v487_v0 = vld [vmem:[#allocation4 + $0x87] sm:$0x1]  ;;  %v488_v1 = vld [vmem:[#allocation4 + $0x88] sm:$0x1]  ;;  %744 = vst.msk [vmem:[#allocation2 + $0xa9] sm:$0x1] %vm27_vm0, %v486_v63 }
  0xe8   :  { %745 = vst.msk [vmem:[#allocation2 + $0xaa] sm:$0x1] %vm27_vm0, %v487_v0  ;;  %746 = vst.msk [vmem:[#allocation2 + $0xab] sm:$0x1] %vm27_vm0, %v488_v1  ;;  %v489_v2 = vld [vmem:[#allocation4 + $0x89] sm:$0x1] }
  0xe9   :  { %v490_v3 = vld [vmem:[#allocation4 + $0x8a] sm:$0x1]  ;;  %v491_v4 = vld [vmem:[#allocation4 + $0x8b] sm:$0x1]  ;;  %747 = vst.msk [vmem:[#allocation2 + $0xac] sm:$0x1] %vm27_vm0, %v489_v2 }
  0xea   :  { %748 = vst.msk [vmem:[#allocation2 + $0xad] sm:$0x1] %vm27_vm0, %v490_v3  ;;  %749 = vst.msk [vmem:[#allocation2 + $0xae] sm:$0x1] %vm27_vm0, %v491_v4  ;;  %v492_v5 = vld [vmem:[#allocation4 + $0x8c] sm:$0x1] }
  0xeb   :  { %v493_v6 = vld [vmem:[#allocation4 + $0x8d] sm:$0x1]  ;;  %v494_v7 = vld [vmem:[#allocation4 + $0x8e] sm:$0x1]  ;;  %750 = vst.msk [vmem:[#allocation2 + $0xaf] sm:$0x1] %vm27_vm0, %v492_v5 }
  0xec   :  { %751 = vst.msk [vmem:[#allocation2 + $0xb0] sm:$0x1] %vm27_vm0, %v493_v6  ;;  %752 = vst.msk [vmem:[#allocation2 + $0xb1] sm:$0x1] %vm27_vm0, %v494_v7  ;;  %v496_v8 = vld [vmem:[#allocation4 + $0x90] sm:$0x1] }
  0xed   :  { %v497_v9 = vld [vmem:[#allocation4 + $0x91] sm:$0x1]  ;;  %v498_v10 = vld [vmem:[#allocation4 + $0x92] sm:$0x1]  ;;  %754 = vst.msk [vmem:[#allocation2 + $0xb5] sm:$0x1] %vm27_vm0, %v496_v8 }
  0xee   :  { %755 = vst.msk [vmem:[#allocation2 + $0xb6] sm:$0x1] %vm27_vm0, %v497_v9  ;;  %756 = vst.msk [vmem:[#allocation2 + $0xb7] sm:$0x1] %vm27_vm0, %v498_v10  ;;  %v499_v11 = vld [vmem:[#allocation4 + $0x93] sm:$0x1] }
  0xef   :  { %v500_v12 = vld [vmem:[#allocation4 + $0x94] sm:$0x1]  ;;  %v501_v13 = vld [vmem:[#allocation4 + $0x95] sm:$0x1]  ;;  %757 = vst.msk [vmem:[#allocation2 + $0xb8] sm:$0x1] %vm27_vm0, %v499_v11 }
  0xf0   :  { %758 = vst.msk [vmem:[#allocation2 + $0xb9] sm:$0x1] %vm27_vm0, %v500_v12  ;;  %759 = vst.msk [vmem:[#allocation2 + $0xba] sm:$0x1] %vm27_vm0, %v501_v13  ;;  %v502_v14 = vld [vmem:[#allocation4 + $0x96] sm:$0x1] }
  0xf1   :  { %v503_v15 = vld [vmem:[#allocation4 + $0x97] sm:$0x1]  ;;  %v504_v16 = vld [vmem:[#allocation4 + $0x98] sm:$0x1]  ;;  %760 = vst.msk [vmem:[#allocation2 + $0xbb] sm:$0x1] %vm27_vm0, %v502_v14 }
  0xf2   :  { %761 = vst.msk [vmem:[#allocation2 + $0xbc] sm:$0x1] %vm27_vm0, %v503_v15  ;;  %762 = vst.msk [vmem:[#allocation2 + $0xbd] sm:$0x1] %vm27_vm0, %v504_v16  ;;  %v505_v17 = vld [vmem:[#allocation4 + $0x99] sm:$0x1] }
  0xf3   :  { %v506_v18 = vld [vmem:[#allocation4 + $0x9a] sm:$0x1]  ;;  %v507_v19 = vld [vmem:[#allocation4 + $0x9b] sm:$0x1]  ;;  %763 = vst.msk [vmem:[#allocation2 + $0xbe] sm:$0x1] %vm27_vm0, %v505_v17 }
  0xf4   :  { %764 = vst.msk [vmem:[#allocation2 + $0xbf] sm:$0x1] %vm27_vm0, %v506_v18  ;;  %765 = vst.msk [vmem:[#allocation2 + $0xc0] sm:$0x1] %vm27_vm0, %v507_v19  ;;  %v508_v20 = vld [vmem:[#allocation4 + $0x9c] sm:$0x1] }
  0xf5   :  { %v509_v21 = vld [vmem:[#allocation4 + $0x9d] sm:$0x1]  ;;  %v510_v22 = vld [vmem:[#allocation4 + $0x9e] sm:$0x1]  ;;  %766 = vst.msk [vmem:[#allocation2 + $0xc1] sm:$0x1] %vm27_vm0, %v508_v20 }
  0xf6   :  { %767 = vst.msk [vmem:[#allocation2 + $0xc2] sm:$0x1] %vm27_vm0, %v509_v21  ;;  %768 = vst.msk [vmem:[#allocation2 + $0xc3] sm:$0x1] %vm27_vm0, %v510_v22  ;;  %v512_v23 = vld [vmem:[#allocation4 + $0xa0] sm:$0x1] }
  0xf7   :  { %v513_v24 = vld [vmem:[#allocation4 + $0xa1] sm:$0x1]  ;;  %v514_v25 = vld [vmem:[#allocation4 + $0xa2] sm:$0x1]  ;;  %770 = vst.msk [vmem:[#allocation2 + $0xc7] sm:$0x1] %vm27_vm0, %v512_v23 }
  0xf8   :  { %771 = vst.msk [vmem:[#allocation2 + $0xc8] sm:$0x1] %vm27_vm0, %v513_v24  ;;  %772 = vst.msk [vmem:[#allocation2 + $0xc9] sm:$0x1] %vm27_vm0, %v514_v25  ;;  %v515_v26 = vld [vmem:[#allocation4 + $0xa3] sm:$0x1] }
  0xf9   :  { %v516_v27 = vld [vmem:[#allocation4 + $0xa4] sm:$0x1]  ;;  %v517_v28 = vld [vmem:[#allocation4 + $0xa5] sm:$0x1]  ;;  %773 = vst.msk [vmem:[#allocation2 + $0xca] sm:$0x1] %vm27_vm0, %v515_v26 }
  0xfa   :  { %774 = vst.msk [vmem:[#allocation2 + $0xcb] sm:$0x1] %vm27_vm0, %v516_v27  ;;  %775 = vst.msk [vmem:[#allocation2 + $0xcc] sm:$0x1] %vm27_vm0, %v517_v28  ;;  %v518_v29 = vld [vmem:[#allocation4 + $0xa6] sm:$0x1] }
  0xfb   :  { %v519_v30 = vld [vmem:[#allocation4 + $0xa7] sm:$0x1]  ;;  %v520_v31 = vld [vmem:[#allocation4 + $0xa8] sm:$0x1]  ;;  %776 = vst.msk [vmem:[#allocation2 + $0xcd] sm:$0x1] %vm27_vm0, %v518_v29 }
  0xfc   :  { %777 = vst.msk [vmem:[#allocation2 + $0xce] sm:$0x1] %vm27_vm0, %v519_v30  ;;  %778 = vst.msk [vmem:[#allocation2 + $0xcf] sm:$0x1] %vm27_vm0, %v520_v31  ;;  %v521_v32 = vld [vmem:[#allocation4 + $0xa9] sm:$0x1] }
  0xfd   :  { %v522_v33 = vld [vmem:[#allocation4 + $0xaa] sm:$0x1]  ;;  %v523_v34 = vld [vmem:[#allocation4 + $0xab] sm:$0x1]  ;;  %779 = vst.msk [vmem:[#allocation2 + $0xd0] sm:$0x1] %vm27_vm0, %v521_v32 }
  0xfe   :  { %780 = vst.msk [vmem:[#allocation2 + $0xd1] sm:$0x1] %vm27_vm0, %v522_v33  ;;  %781 = vst.msk [vmem:[#allocation2 + $0xd2] sm:$0x1] %vm27_vm0, %v523_v34  ;;  %v524_v35 = vld [vmem:[#allocation4 + $0xac] sm:$0x1] }
  0xff   :  { %v525_v36 = vld [vmem:[#allocation4 + $0xad] sm:$0x1]  ;;  %v526_v37 = vld [vmem:[#allocation4 + $0xae] sm:$0x1]  ;;  %782 = vst.msk [vmem:[#allocation2 + $0xd3] sm:$0x1] %vm27_vm0, %v524_v35 }
 0x100   :  { %783 = vst.msk [vmem:[#allocation2 + $0xd4] sm:$0x1] %vm27_vm0, %v525_v36  ;;  %784 = vst.msk [vmem:[#allocation2 + $0xd5] sm:$0x1] %vm27_vm0, %v526_v37  ;;  %v528_v38 = vld [vmem:[#allocation4 + $0xb0] sm:$0x1] }
 0x101   :  { %v529_v39 = vld [vmem:[#allocation4 + $0xb1] sm:$0x1]  ;;  %v530_v40 = vld [vmem:[#allocation4 + $0xb2] sm:$0x1]  ;;  %786 = vst.msk [vmem:[#allocation2 + $0xd9] sm:$0x1] %vm27_vm0, %v528_v38 }
 0x102   :  { %787 = vst.msk [vmem:[#allocation2 + $0xda] sm:$0x1] %vm27_vm0, %v529_v39  ;;  %788 = vst.msk [vmem:[#allocation2 + $0xdb] sm:$0x1] %vm27_vm0, %v530_v40  ;;  %v531_v41 = vld [vmem:[#allocation4 + $0xb3] sm:$0x1] }
 0x103   :  { %v532_v42 = vld [vmem:[#allocation4 + $0xb4] sm:$0x1]  ;;  %v533_v43 = vld [vmem:[#allocation4 + $0xb5] sm:$0x1]  ;;  %789 = vst.msk [vmem:[#allocation2 + $0xdc] sm:$0x1] %vm27_vm0, %v531_v41 }
 0x104   :  { %790 = vst.msk [vmem:[#allocation2 + $0xdd] sm:$0x1] %vm27_vm0, %v532_v42  ;;  %791 = vst.msk [vmem:[#allocation2 + $0xde] sm:$0x1] %vm27_vm0, %v533_v43  ;;  %v534_v44 = vld [vmem:[#allocation4 + $0xb6] sm:$0x1] }
 0x105   :  { %v535_v45 = vld [vmem:[#allocation4 + $0xb7] sm:$0x1]  ;;  %v536_v46 = vld [vmem:[#allocation4 + $0xb8] sm:$0x1]  ;;  %792 = vst.msk [vmem:[#allocation2 + $0xdf] sm:$0x1] %vm27_vm0, %v534_v44 }
 0x106   :  { %793 = vst.msk [vmem:[#allocation2 + $0xe0] sm:$0x1] %vm27_vm0, %v535_v45  ;;  %794 = vst.msk [vmem:[#allocation2 + $0xe1] sm:$0x1] %vm27_vm0, %v536_v46  ;;  %v537_v47 = vld [vmem:[#allocation4 + $0xb9] sm:$0x1] }
 0x107   :  { %v538_v48 = vld [vmem:[#allocation4 + $0xba] sm:$0x1]  ;;  %v539_v49 = vld [vmem:[#allocation4 + $0xbb] sm:$0x1]  ;;  %795 = vst.msk [vmem:[#allocation2 + $0xe2] sm:$0x1] %vm27_vm0, %v537_v47 }
 0x108   :  { %796 = vst.msk [vmem:[#allocation2 + $0xe3] sm:$0x1] %vm27_vm0, %v538_v48  ;;  %797 = vst.msk [vmem:[#allocation2 + $0xe4] sm:$0x1] %vm27_vm0, %v539_v49  ;;  %v540_v50 = vld [vmem:[#allocation4 + $0xbc] sm:$0x1] }
 0x109   :  { %v541_v51 = vld [vmem:[#allocation4 + $0xbd] sm:$0x1]  ;;  %v542_v52 = vld [vmem:[#allocation4 + $0xbe] sm:$0x1]  ;;  %798 = vst.msk [vmem:[#allocation2 + $0xe5] sm:$0x1] %vm27_vm0, %v540_v50 }
 0x10a   :  { %799 = vst.msk [vmem:[#allocation2 + $0xe6] sm:$0x1] %vm27_vm0, %v541_v51  ;;  %800 = vst.msk [vmem:[#allocation2 + $0xe7] sm:$0x1] %vm27_vm0, %v542_v52  ;;  %v544_v53 = vld [vmem:[#allocation4 + $0xc0] sm:$0x1] }
 0x10b   :  { %v545_v54 = vld [vmem:[#allocation4 + $0xc1] sm:$0x1]  ;;  %v546_v55 = vld [vmem:[#allocation4 + $0xc2] sm:$0x1]  ;;  %802 = vst.msk [vmem:[#allocation2 + $0xeb] sm:$0x1] %vm27_vm0, %v544_v53 }
 0x10c   :  { %803 = vst.msk [vmem:[#allocation2 + $0xec] sm:$0x1] %vm27_vm0, %v545_v54  ;;  %804 = vst.msk [vmem:[#allocation2 + $0xed] sm:$0x1] %vm27_vm0, %v546_v55  ;;  %v547_v56 = vld [vmem:[#allocation4 + $0xc3] sm:$0x1] }
 0x10d   :  { %v548_v57 = vld [vmem:[#allocation4 + $0xc4] sm:$0x1]  ;;  %v549_v58 = vld [vmem:[#allocation4 + $0xc5] sm:$0x1]  ;;  %805 = vst.msk [vmem:[#allocation2 + $0xee] sm:$0x1] %vm27_vm0, %v547_v56 }
 0x10e   :  { %806 = vst.msk [vmem:[#allocation2 + $0xef] sm:$0x1] %vm27_vm0, %v548_v57  ;;  %807 = vst.msk [vmem:[#allocation2 + $0xf0] sm:$0x1] %vm27_vm0, %v549_v58  ;;  %v550_v59 = vld [vmem:[#allocation4 + $0xc6] sm:$0x1] }
 0x10f   :  { %v551_v60 = vld [vmem:[#allocation4 + $0xc7] sm:$0x1]  ;;  %v552_v61 = vld [vmem:[#allocation4 + $0xc8] sm:$0x1]  ;;  %808 = vst.msk [vmem:[#allocation2 + $0xf1] sm:$0x1] %vm27_vm0, %v550_v59 }
 0x110   :  { %809 = vst.msk [vmem:[#allocation2 + $0xf2] sm:$0x1] %vm27_vm0, %v551_v60  ;;  %810 = vst.msk [vmem:[#allocation2 + $0xf3] sm:$0x1] %vm27_vm0, %v552_v61  ;;  %v553_v62 = vld [vmem:[#allocation4 + $0xc9] sm:$0x1] }
 0x111   :  { %v554_v63 = vld [vmem:[#allocation4 + $0xca] sm:$0x1]  ;;  %v555_v0 = vld [vmem:[#allocation4 + $0xcb] sm:$0x1]  ;;  %811 = vst.msk [vmem:[#allocation2 + $0xf4] sm:$0x1] %vm27_vm0, %v553_v62 }
 0x112   :  { %812 = vst.msk [vmem:[#allocation2 + $0xf5] sm:$0x1] %vm27_vm0, %v554_v63  ;;  %813 = vst.msk [vmem:[#allocation2 + $0xf6] sm:$0x1] %vm27_vm0, %v555_v0  ;;  %v556_v1 = vld [vmem:[#allocation4 + $0xcc] sm:$0x1] }
 0x113   :  { %v557_v2 = vld [vmem:[#allocation4 + $0xcd] sm:$0x1]  ;;  %v558_v3 = vld [vmem:[#allocation4 + $0xce] sm:$0x1]  ;;  %814 = vst.msk [vmem:[#allocation2 + $0xf7] sm:$0x1] %vm27_vm0, %v556_v1 }
 0x114   :  { %815 = vst.msk [vmem:[#allocation2 + $0xf8] sm:$0x1] %vm27_vm0, %v557_v2  ;;  %816 = vst.msk [vmem:[#allocation2 + $0xf9] sm:$0x1] %vm27_vm0, %v558_v3  ;;  %v560_v4 = vld [vmem:[#allocation4 + $0xd0] sm:$0x1] }
 0x115   :  { %v561_v5 = vld [vmem:[#allocation4 + $0xd1] sm:$0x1]  ;;  %v562_v6 = vld [vmem:[#allocation4 + $0xd2] sm:$0x1]  ;;  %818 = vst.msk [vmem:[#allocation2 + $0xfd] sm:$0x1] %vm27_vm0, %v560_v4 }
 0x116   :  { %819 = vst.msk [vmem:[#allocation2 + $0xfe] sm:$0x1] %vm27_vm0, %v561_v5  ;;  %820 = vst.msk [vmem:[#allocation2 + $0xff] sm:$0x1] %vm27_vm0, %v562_v6  ;;  %v563_v7 = vld [vmem:[#allocation4 + $0xd3] sm:$0x1] }
 0x117   :  { %v564_v8 = vld [vmem:[#allocation4 + $0xd4] sm:$0x1]  ;;  %v565_v9 = vld [vmem:[#allocation4 + $0xd5] sm:$0x1]  ;;  %821 = vst.msk [vmem:[#allocation2 + $0x100] sm:$0x1] %vm27_vm0, %v563_v7 }
 0x118   :  { %822 = vst.msk [vmem:[#allocation2 + $0x101] sm:$0x1] %vm27_vm0, %v564_v8  ;;  %823 = vst.msk [vmem:[#allocation2 + $0x102] sm:$0x1] %vm27_vm0, %v565_v9  ;;  %v566_v10 = vld [vmem:[#allocation4 + $0xd6] sm:$0x1] }
 0x119   :  { %v567_v11 = vld [vmem:[#allocation4 + $0xd7] sm:$0x1]  ;;  %v568_v12 = vld [vmem:[#allocation4 + $0xd8] sm:$0x1]  ;;  %824 = vst.msk [vmem:[#allocation2 + $0x103] sm:$0x1] %vm27_vm0, %v566_v10 }
 0x11a   :  { %825 = vst.msk [vmem:[#allocation2 + $0x104] sm:$0x1] %vm27_vm0, %v567_v11  ;;  %826 = vst.msk [vmem:[#allocation2 + $0x105] sm:$0x1] %vm27_vm0, %v568_v12  ;;  %v569_v13 = vld [vmem:[#allocation4 + $0xd9] sm:$0x1] }
 0x11b   :  { %v570_v14 = vld [vmem:[#allocation4 + $0xda] sm:$0x1]  ;;  %v571_v15 = vld [vmem:[#allocation4 + $0xdb] sm:$0x1]  ;;  %827 = vst.msk [vmem:[#allocation2 + $0x106] sm:$0x1] %vm27_vm0, %v569_v13 }
 0x11c   :  { %828 = vst.msk [vmem:[#allocation2 + $0x107] sm:$0x1] %vm27_vm0, %v570_v14  ;;  %829 = vst.msk [vmem:[#allocation2 + $0x108] sm:$0x1] %vm27_vm0, %v571_v15  ;;  %v572_v16 = vld [vmem:[#allocation4 + $0xdc] sm:$0x1] }
 0x11d   :  { %v573_v17 = vld [vmem:[#allocation4 + $0xdd] sm:$0x1]  ;;  %v574_v18 = vld [vmem:[#allocation4 + $0xde] sm:$0x1]  ;;  %830 = vst.msk [vmem:[#allocation2 + $0x109] sm:$0x1] %vm27_vm0, %v572_v16 }
 0x11e   :  { %831 = vst.msk [vmem:[#allocation2 + $0x10a] sm:$0x1] %vm27_vm0, %v573_v17  ;;  %832 = vst.msk [vmem:[#allocation2 + $0x10b] sm:$0x1] %vm27_vm0, %v574_v18  ;;  %v576_v19 = vld [vmem:[#allocation4 + $0xe0] sm:$0x1] }
 0x11f   :  { %v577_v20 = vld [vmem:[#allocation4 + $0xe1] sm:$0x1]  ;;  %v578_v21 = vld [vmem:[#allocation4 + $0xe2] sm:$0x1]  ;;  %834 = vst.msk [vmem:[#allocation2 + $0x10f] sm:$0x1] %vm27_vm0, %v576_v19 }
 0x120   :  { %835 = vst.msk [vmem:[#allocation2 + $0x110] sm:$0x1] %vm27_vm0, %v577_v20  ;;  %836 = vst.msk [vmem:[#allocation2 + $0x111] sm:$0x1] %vm27_vm0, %v578_v21  ;;  %v579_v22 = vld [vmem:[#allocation4 + $0xe3] sm:$0x1] }
 0x121   :  { %v580_v23 = vld [vmem:[#allocation4 + $0xe4] sm:$0x1]  ;;  %v581_v24 = vld [vmem:[#allocation4 + $0xe5] sm:$0x1]  ;;  %837 = vst.msk [vmem:[#allocation2 + $0x112] sm:$0x1] %vm27_vm0, %v579_v22 }
 0x122   :  { %838 = vst.msk [vmem:[#allocation2 + $0x113] sm:$0x1] %vm27_vm0, %v580_v23  ;;  %839 = vst.msk [vmem:[#allocation2 + $0x114] sm:$0x1] %vm27_vm0, %v581_v24  ;;  %v582_v25 = vld [vmem:[#allocation4 + $0xe6] sm:$0x1] }
 0x123   :  { %v583_v26 = vld [vmem:[#allocation4 + $0xe7] sm:$0x1]  ;;  %v584_v27 = vld [vmem:[#allocation4 + $0xe8] sm:$0x1]  ;;  %840 = vst.msk [vmem:[#allocation2 + $0x115] sm:$0x1] %vm27_vm0, %v582_v25 }
 0x124   :  { %841 = vst.msk [vmem:[#allocation2 + $0x116] sm:$0x1] %vm27_vm0, %v583_v26  ;;  %842 = vst.msk [vmem:[#allocation2 + $0x117] sm:$0x1] %vm27_vm0, %v584_v27  ;;  %v585_v28 = vld [vmem:[#allocation4 + $0xe9] sm:$0x1] }
 0x125   :  { %v586_v29 = vld [vmem:[#allocation4 + $0xea] sm:$0x1]  ;;  %v587_v30 = vld [vmem:[#allocation4 + $0xeb] sm:$0x1]  ;;  %843 = vst.msk [vmem:[#allocation2 + $0x118] sm:$0x1] %vm27_vm0, %v585_v28 }
 0x126   :  { %844 = vst.msk [vmem:[#allocation2 + $0x119] sm:$0x1] %vm27_vm0, %v586_v29  ;;  %845 = vst.msk [vmem:[#allocation2 + $0x11a] sm:$0x1] %vm27_vm0, %v587_v30  ;;  %v588_v31 = vld [vmem:[#allocation4 + $0xec] sm:$0x1] }
 0x127   :  { %v589_v32 = vld [vmem:[#allocation4 + $0xed] sm:$0x1]  ;;  %v590_v33 = vld [vmem:[#allocation4 + $0xee] sm:$0x1]  ;;  %846 = vst.msk [vmem:[#allocation2 + $0x11b] sm:$0x1] %vm27_vm0, %v588_v31 }
 0x128   :  { %847 = vst.msk [vmem:[#allocation2 + $0x11c] sm:$0x1] %vm27_vm0, %v589_v32  ;;  %848 = vst.msk [vmem:[#allocation2 + $0x11d] sm:$0x1] %vm27_vm0, %v590_v33  ;;  %v592_v34 = vld [vmem:[#allocation4 + $0xf0] sm:$0x1] }
 0x129   :  { %v593_v35 = vld [vmem:[#allocation4 + $0xf1] sm:$0x1]  ;;  %v594_v36 = vld [vmem:[#allocation4 + $0xf2] sm:$0x1]  ;;  %850 = vst.msk [vmem:[#allocation2 + $0x121] sm:$0x1] %vm27_vm0, %v592_v34 }
 0x12a   :  { %851 = vst.msk [vmem:[#allocation2 + $0x122] sm:$0x1] %vm27_vm0, %v593_v35  ;;  %852 = vst.msk [vmem:[#allocation2 + $0x123] sm:$0x1] %vm27_vm0, %v594_v36  ;;  %v595_v37 = vld [vmem:[#allocation4 + $0xf3] sm:$0x1] }
 0x12b   :  { %v596_v38 = vld [vmem:[#allocation4 + $0xf4] sm:$0x1]  ;;  %v597_v39 = vld [vmem:[#allocation4 + $0xf5] sm:$0x1]  ;;  %853 = vst.msk [vmem:[#allocation2 + $0x124] sm:$0x1] %vm27_vm0, %v595_v37 }
 0x12c   :  { %854 = vst.msk [vmem:[#allocation2 + $0x125] sm:$0x1] %vm27_vm0, %v596_v38  ;;  %855 = vst.msk [vmem:[#allocation2 + $0x126] sm:$0x1] %vm27_vm0, %v597_v39  ;;  %v598_v40 = vld [vmem:[#allocation4 + $0xf6] sm:$0x1] }
 0x12d   :  { %v599_v41 = vld [vmem:[#allocation4 + $0xf7] sm:$0x1]  ;;  %v600_v42 = vld [vmem:[#allocation4 + $0xf8] sm:$0x1]  ;;  %856 = vst.msk [vmem:[#allocation2 + $0x127] sm:$0x1] %vm27_vm0, %v598_v40 }
 0x12e   :  { %857 = vst.msk [vmem:[#allocation2 + $0x128] sm:$0x1] %vm27_vm0, %v599_v41  ;;  %858 = vst.msk [vmem:[#allocation2 + $0x129] sm:$0x1] %vm27_vm0, %v600_v42  ;;  %v601_v43 = vld [vmem:[#allocation4 + $0xf9] sm:$0x1] }
 0x12f   :  { %v602_v44 = vld [vmem:[#allocation4 + $0xfa] sm:$0x1]  ;;  %v603_v45 = vld [vmem:[#allocation4 + $0xfb] sm:$0x1]  ;;  %859 = vst.msk [vmem:[#allocation2 + $0x12a] sm:$0x1] %vm27_vm0, %v601_v43 }
 0x130   :  { %860 = vst.msk [vmem:[#allocation2 + $0x12b] sm:$0x1] %vm27_vm0, %v602_v44  ;;  %861 = vst.msk [vmem:[#allocation2 + $0x12c] sm:$0x1] %vm27_vm0, %v603_v45  ;;  %v604_v46 = vld [vmem:[#allocation4 + $0xfc] sm:$0x1] }
 0x131   :  { %v367_v47 = vld [vmem:[#allocation4 + $0xf] sm:$0x1]  ;;  %v383_v48 = vld [vmem:[#allocation4 + $0x1f] sm:$0x1]  ;;  %862 = vst.msk [vmem:[#allocation2 + $0x12d] sm:$0x1] %vm27_vm0, %v604_v46 }
 0x132   :  { %625 = vst.msk [vmem:[#allocation2 + $0x22] sm:$0x1] %vm27_vm0, %v367_v47  ;;  %641 = vst.msk [vmem:[#allocation2 + $0x34] sm:$0x1] %vm27_vm0, %v383_v48  ;;  %v399_v49 = vld [vmem:[#allocation4 + $0x2f] sm:$0x1] }
 0x133   :  { %v415_v50 = vld [vmem:[#allocation4 + $0x3f] sm:$0x1]  ;;  %v431_v51 = vld [vmem:[#allocation4 + $0x4f] sm:$0x1]  ;;  %657 = vst.msk [vmem:[#allocation2 + $0x46] sm:$0x1] %vm27_vm0, %v399_v49 }
 0x134   :  { %673 = vst.msk [vmem:[#allocation2 + $0x58] sm:$0x1] %vm27_vm0, %v415_v50  ;;  %689 = vst.msk [vmem:[#allocation2 + $0x6a] sm:$0x1] %vm27_vm0, %v431_v51  ;;  %v447_v52 = vld [vmem:[#allocation4 + $0x5f] sm:$0x1] }
 0x135   :  { %v463_v53 = vld [vmem:[#allocation4 + $0x6f] sm:$0x1]  ;;  %v479_v54 = vld [vmem:[#allocation4 + $0x7f] sm:$0x1]  ;;  %705 = vst.msk [vmem:[#allocation2 + $0x7c] sm:$0x1] %vm27_vm0, %v447_v52 }
 0x136   :  { %721 = vst.msk [vmem:[#allocation2 + $0x8e] sm:$0x1] %vm27_vm0, %v463_v53  ;;  %737 = vst.msk [vmem:[#allocation2 + $0xa0] sm:$0x1] %vm27_vm0, %v479_v54  ;;  %v495_v55 = vld [vmem:[#allocation4 + $0x8f] sm:$0x1] }
 0x137   :  { %v511_v56 = vld [vmem:[#allocation4 + $0x9f] sm:$0x1]  ;;  %v527_v57 = vld [vmem:[#allocation4 + $0xaf] sm:$0x1]  ;;  %753 = vst.msk [vmem:[#allocation2 + $0xb2] sm:$0x1] %vm27_vm0, %v495_v55 }
 0x138   :  { %769 = vst.msk [vmem:[#allocation2 + $0xc4] sm:$0x1] %vm27_vm0, %v511_v56  ;;  %785 = vst.msk [vmem:[#allocation2 + $0xd6] sm:$0x1] %vm27_vm0, %v527_v57  ;;  %v543_v58 = vld [vmem:[#allocation4 + $0xbf] sm:$0x1] }
 0x139   :  { %v559_v59 = vld [vmem:[#allocation4 + $0xcf] sm:$0x1]  ;;  %v575_v60 = vld [vmem:[#allocation4 + $0xdf] sm:$0x1]  ;;  %801 = vst.msk [vmem:[#allocation2 + $0xe8] sm:$0x1] %vm27_vm0, %v543_v58 }
 0x13a   :  { %817 = vst.msk [vmem:[#allocation2 + $0xfa] sm:$0x1] %vm27_vm0, %v559_v59  ;;  %833 = vst.msk [vmem:[#allocation2 + $0x10c] sm:$0x1] %vm27_vm0, %v575_v60  ;;  %v591_v61 = vld [vmem:[#allocation4 + $0xef] sm:$0x1] }
 0x13b   :  { %v605_v62 = vld [vmem:[#allocation4 + $0xfd] sm:$0x1]  ;;  %v606_v63 = vld [vmem:[#allocation4 + $0xfe] sm:$0x1]  ;;  %849 = vst.msk [vmem:[#allocation2 + $0x11e] sm:$0x1] %vm27_vm0, %v591_v61 }
 0x13c   :  { %863 = vst.msk [vmem:[#allocation2 + $0x12e] sm:$0x1] %vm27_vm0, %v605_v62  ;;  %864 = vst.msk [vmem:[#allocation2 + $0x12f] sm:$0x1] %vm27_vm0, %v606_v63  ;;  %v607_v0 = vld [vmem:[#allocation4 + $0xff] sm:$0x1] }
 0x13d   :  { %v866_v1 = vld [vmem:[#allocation2] sm:$0x1]  ;;  %v1011_v2 = vld [vmem:[#allocation2 + $0x1] sm:$0x1]  ;;  %865 = vst.msk [vmem:[#allocation2 + $0x130] sm:$0x1] %vm27_vm0, %v607_v0 }
 0x13e   :  { %v1155_v3 = vmax.f32 %v866_v1, %v1011_v2  ;;  %v1300_v4 = vld [vmem:[#allocation2 + $0x2] sm:$0x1]  ;;  %v1012_v6 = vld [vmem:[#allocation2 + $0x3] sm:$0x1]  ;;  %v1301_v8 = vld [vmem:[#allocation2 + $0x4] sm:$0x1] }
 0x13f   :  { %v867_v5 = vld [vmem:[#allocation2 + $0x2] sm:$0x1]  ;;  %v868_v9 = vld [vmem:[#allocation2 + $0x4] sm:$0x1]  ;;  %v1013_v10 = vld [vmem:[#allocation2 + $0x5] sm:$0x1] }
 0x140   :  { %v1156_v7 = vmax.f32 %v867_v5, %v1012_v6  ;;  %v1444_v11 = vmax.f32 %v1155_v3, %v1300_v4  ;;  %v1157_v12 = vmax.f32 %v868_v9, %v1013_v10  ;;  %v1302_v13 = vld [vmem:[#allocation2 + $0x6] sm:$0x1]  ;;  %v1014_v15 = vld [vmem:[#allocation2 + $0x7] sm:$0x1]  ;;  %v1303_v18 = vld [vmem:[#allocation2 + $0x8] sm:$0x1] }
 0x141   :  { %v869_v14 = vld [vmem:[#allocation2 + $0x6] sm:$0x1]  ;;  %v870_v19 = vld [vmem:[#allocation2 + $0x8] sm:$0x1]  ;;  %v1015_v20 = vld [vmem:[#allocation2 + $0x9] sm:$0x1] }
 0x142   :  { %v1445_v16 = vmax.f32 %v1156_v7, %v1301_v8  ;;  %v1158_v17 = vmax.f32 %v869_v14, %v1014_v15  ;;  %1588 = vst.msk [vmem:[#allocation3] sm:$0x1] %vm27_vm0, %v1444_v11  ;;  %v1446_v21 = vmax.f32 %v1157_v12, %v1302_v13  ;;  %v1159_v22 = vmax.f32 %v870_v19, %v1015_v20  ;;  %v1304_v23 = vld [vmem:[#allocation2 + $0xa] sm:$0x1]  ;;  %v1016_v25 = vld [vmem:[#allocation2 + $0xb] sm:$0x1] }
 0x143   :  { %v871_v24 = vld [vmem:[#allocation2 + $0xa] sm:$0x1]  ;;  %v1305_v28 = vld [vmem:[#allocation2 + $0xc] sm:$0x1]  ;;  %v1017_v30 = vld [vmem:[#allocation2 + $0xd] sm:$0x1] }
 0x144   :  { %1589 = vst.msk [vmem:[#allocation3 + $0x1] sm:$0x1] %vm27_vm0, %v1445_v16  ;;  %v1447_v26 = vmax.f32 %v1158_v17, %v1303_v18  ;;  %v1160_v27 = vmax.f32 %v871_v24, %v1016_v25  ;;  %v872_v29 = vld [vmem:[#allocation2 + $0xc] sm:$0x1]  ;;  %1590 = vst.msk [vmem:[#allocation3 + $0x2] sm:$0x1] %vm27_vm0, %v1446_v21  ;;  %v1448_v31 = vmax.f32 %v1159_v22, %v1304_v23 }
 0x145   :  { %v1161_v32 = vmax.f32 %v872_v29, %v1017_v30  ;;  %v1306_v33 = vld [vmem:[#allocation2 + $0xe] sm:$0x1]  ;;  %v1018_v35 = vld [vmem:[#allocation2 + $0xf] sm:$0x1]  ;;  %v1307_v38 = vld [vmem:[#allocation2 + $0x10] sm:$0x1] }
 0x146   :  { %v873_v34 = vld [vmem:[#allocation2 + $0xe] sm:$0x1]  ;;  %1591 = vst.msk [vmem:[#allocation3 + $0x3] sm:$0x1] %vm27_vm0, %v1447_v26  ;;  %v1449_v36 = vmax.f32 %v1160_v27, %v1305_v28  ;;  %v874_v39 = vld [vmem:[#allocation2 + $0x12] sm:$0x1] }
 0x147   :  { %v1162_v37 = vmax.f32 %v873_v34, %v1018_v35  ;;  %v1019_v40 = vld [vmem:[#allocation2 + $0x13] sm:$0x1]  ;;  %1592 = vst.msk [vmem:[#allocation3 + $0x4] sm:$0x1] %vm27_vm0, %v1448_v31  ;;  %v1450_v41 = vmax.f32 %v1161_v32, %v1306_v33  ;;  %v1308_v43 = vld [vmem:[#allocation2 + $0x14] sm:$0x1] }
 0x148   :  { %v1163_v42 = vmax.f32 %v874_v39, %v1019_v40  ;;  %v875_v44 = vld [vmem:[#allocation2 + $0x14] sm:$0x1]  ;;  %v1020_v45 = vld [vmem:[#allocation2 + $0x15] sm:$0x1]  ;;  %1593 = vst.msk [vmem:[#allocation3 + $0x5] sm:$0x1] %vm27_vm0, %v1449_v36 }
 0x149   :  { %v1451_v46 = vmax.f32 %v1162_v37, %v1307_v38  ;;  %v1164_v47 = vmax.f32 %v875_v44, %v1020_v45  ;;  %v1309_v48 = vld [vmem:[#allocation2 + $0x16] sm:$0x1]  ;;  %v1021_v50 = vld [vmem:[#allocation2 + $0x17] sm:$0x1]  ;;  %1594 = vst.msk [vmem:[#allocation3 + $0x6] sm:$0x1] %vm27_vm0, %v1450_v41 }
 0x14a   :  { %v876_v49 = vld [vmem:[#allocation2 + $0x16] sm:$0x1]  ;;  %v1452_v51 = vmax.f32 %v1163_v42, %v1308_v43  ;;  %v1310_v53 = vld [vmem:[#allocation2 + $0x18] sm:$0x1]  ;;  %v1022_v55 = vld [vmem:[#allocation2 + $0x19] sm:$0x1] }
 0x14b   :  { %v1165_v52 = vmax.f32 %v876_v49, %v1021_v50  ;;  %v877_v54 = vld [vmem:[#allocation2 + $0x18] sm:$0x1]  ;;  %1595 = vst.msk [vmem:[#allocation3 + $0x7] sm:$0x1] %vm27_vm0, %v1451_v46  ;;  %v1453_v56 = vmax.f32 %v1164_v47, %v1309_v48  ;;  %v1311_v58 = vld [vmem:[#allocation2 + $0x1a] sm:$0x1] }
 0x14c   :  { %v1166_v57 = vmax.f32 %v877_v54, %v1022_v55  ;;  %v878_v59 = vld [vmem:[#allocation2 + $0x1a] sm:$0x1]  ;;  %v1023_v60 = vld [vmem:[#allocation2 + $0x1b] sm:$0x1]  ;;  %1596 = vst.msk [vmem:[#allocation3 + $0x8] sm:$0x1] %vm27_vm0, %v1452_v51 }
 0x14d   :  { %v1454_v61 = vmax.f32 %v1165_v52, %v1310_v53  ;;  %v1167_v62 = vmax.f32 %v878_v59, %v1023_v60  ;;  %v1312_v63 = vld [vmem:[#allocation2 + $0x1c] sm:$0x1]  ;;  %v1024_v1 = vld [vmem:[#allocation2 + $0x1d] sm:$0x1]  ;;  %1597 = vst.msk [vmem:[#allocation3 + $0x9] sm:$0x1] %vm27_vm0, %v1453_v56 }
 0x14e   :  { %v879_v0 = vld [vmem:[#allocation2 + $0x1c] sm:$0x1]  ;;  %v1455_v2 = vmax.f32 %v1166_v57, %v1311_v58  ;;  %v1313_v4 = vld [vmem:[#allocation2 + $0x1e] sm:$0x1]  ;;  %v1025_v6 = vld [vmem:[#allocation2 + $0x1f] sm:$0x1] }
 0x14f   :  { %v1168_v3 = vmax.f32 %v879_v0, %v1024_v1  ;;  %v880_v5 = vld [vmem:[#allocation2 + $0x1e] sm:$0x1]  ;;  %1598 = vst.msk [vmem:[#allocation3 + $0xa] sm:$0x1] %vm27_vm0, %v1454_v61  ;;  %v1456_v7 = vmax.f32 %v1167_v62, %v1312_v63  ;;  %v1314_v9 = vld [vmem:[#allocation2 + $0x20] sm:$0x1] }
 0x150   :  { %v1169_v8 = vmax.f32 %v880_v5, %v1025_v6  ;;  %v881_v10 = vld [vmem:[#allocation2 + $0x20] sm:$0x1]  ;;  %v1026_v11 = vld [vmem:[#allocation2 + $0x21] sm:$0x1]  ;;  %1599 = vst.msk [vmem:[#allocation3 + $0xb] sm:$0x1] %vm27_vm0, %v1455_v2 }
 0x151   :  { %v1457_v12 = vmax.f32 %v1168_v3, %v1313_v4  ;;  %v1170_v13 = vmax.f32 %v881_v10, %v1026_v11  ;;  %v1315_v14 = vld [vmem:[#allocation2 + $0x22] sm:$0x1]  ;;  %v882_v15 = vld [vmem:[#allocation2 + $0x24] sm:$0x1]  ;;  %v1027_v16 = vld [vmem:[#allocation2 + $0x25] sm:$0x1] }
 0x152   :  { %1600 = vst.msk [vmem:[#allocation3 + $0xc] sm:$0x1] %vm27_vm0, %v1456_v7  ;;  %v1458_v17 = vmax.f32 %v1169_v8, %v1314_v9  ;;  %v1171_v18 = vmax.f32 %v882_v15, %v1027_v16  ;;  %v1316_v19 = vld [vmem:[#allocation2 + $0x26] sm:$0x1]  ;;  %v1028_v21 = vld [vmem:[#allocation2 + $0x27] sm:$0x1] }
 0x153   :  { %v883_v20 = vld [vmem:[#allocation2 + $0x26] sm:$0x1]  ;;  %1601 = vst.msk [vmem:[#allocation3 + $0xd] sm:$0x1] %vm27_vm0, %v1457_v12  ;;  %v1459_v22 = vmax.f32 %v1170_v13, %v1315_v14  ;;  %v1317_v24 = vld [vmem:[#allocation2 + $0x28] sm:$0x1] }
 0x154   :  { %v1172_v23 = vmax.f32 %v883_v20, %v1028_v21  ;;  %v884_v25 = vld [vmem:[#allocation2 + $0x28] sm:$0x1]  ;;  %v1029_v26 = vld [vmem:[#allocation2 + $0x29] sm:$0x1]  ;;  %1602 = vst.msk [vmem:[#allocation3 + $0xe] sm:$0x1] %vm27_vm0, %v1458_v17  ;;  %v1460_v27 = vmax.f32 %v1171_v18, %v1316_v19 }
 0x155   :  { %v1173_v28 = vmax.f32 %v884_v25, %v1029_v26  ;;  %v1318_v29 = vld [vmem:[#allocation2 + $0x2a] sm:$0x1]  ;;  %v1030_v31 = vld [vmem:[#allocation2 + $0x2b] sm:$0x1]  ;;  %1603 = vst.msk [vmem:[#allocation3 + $0xf] sm:$0x1] %vm27_vm0, %v1459_v22 }
 0x156   :  { %v885_v30 = vld [vmem:[#allocation2 + $0x2a] sm:$0x1]  ;;  %v1461_v32 = vmax.f32 %v1172_v23, %v1317_v24  ;;  %v1319_v34 = vld [vmem:[#allocation2 + $0x2c] sm:$0x1]  ;;  %v1031_v36 = vld [vmem:[#allocation2 + $0x2d] sm:$0x1] }
 0x157   :  { %v1174_v33 = vmax.f32 %v885_v30, %v1030_v31  ;;  %v886_v35 = vld [vmem:[#allocation2 + $0x2c] sm:$0x1]  ;;  %1604 = vst.msk [vmem:[#allocation3 + $0x10] sm:$0x1] %vm27_vm0, %v1460_v27  ;;  %v1462_v37 = vmax.f32 %v1173_v28, %v1318_v29  ;;  %v1320_v39 = vld [vmem:[#allocation2 + $0x2e] sm:$0x1] }
 0x158   :  { %v1175_v38 = vmax.f32 %v886_v35, %v1031_v36  ;;  %v887_v40 = vld [vmem:[#allocation2 + $0x2e] sm:$0x1]  ;;  %v1032_v41 = vld [vmem:[#allocation2 + $0x2f] sm:$0x1]  ;;  %1605 = vst.msk [vmem:[#allocation3 + $0x11] sm:$0x1] %vm27_vm0, %v1461_v32 }
 0x159   :  { %v1463_v42 = vmax.f32 %v1174_v33, %v1319_v34  ;;  %v1176_v43 = vmax.f32 %v887_v40, %v1032_v41  ;;  %v1321_v44 = vld [vmem:[#allocation2 + $0x30] sm:$0x1]  ;;  %v1033_v46 = vld [vmem:[#allocation2 + $0x31] sm:$0x1]  ;;  %1606 = vst.msk [vmem:[#allocation3 + $0x12] sm:$0x1] %vm27_vm0, %v1462_v37 }
 0x15a   :  { %v888_v45 = vld [vmem:[#allocation2 + $0x30] sm:$0x1]  ;;  %v1464_v47 = vmax.f32 %v1175_v38, %v1320_v39  ;;  %v1322_v49 = vld [vmem:[#allocation2 + $0x32] sm:$0x1]  ;;  %v1034_v51 = vld [vmem:[#allocation2 + $0x33] sm:$0x1] }
 0x15b   :  { %v1177_v48 = vmax.f32 %v888_v45, %v1033_v46  ;;  %v889_v50 = vld [vmem:[#allocation2 + $0x32] sm:$0x1]  ;;  %1607 = vst.msk [vmem:[#allocation3 + $0x13] sm:$0x1] %vm27_vm0, %v1463_v42  ;;  %v1465_v52 = vmax.f32 %v1176_v43, %v1321_v44  ;;  %v1323_v54 = vld [vmem:[#allocation2 + $0x34] sm:$0x1] }
 0x15c   :  { %v1178_v53 = vmax.f32 %v889_v50, %v1034_v51  ;;  %v890_v55 = vld [vmem:[#allocation2 + $0x36] sm:$0x1]  ;;  %v1035_v56 = vld [vmem:[#allocation2 + $0x37] sm:$0x1]  ;;  %1608 = vst.msk [vmem:[#allocation3 + $0x14] sm:$0x1] %vm27_vm0, %v1464_v47 }
 0x15d   :  { %v1466_v57 = vmax.f32 %v1177_v48, %v1322_v49  ;;  %v1179_v58 = vmax.f32 %v890_v55, %v1035_v56  ;;  %v1324_v59 = vld [vmem:[#allocation2 + $0x38] sm:$0x1]  ;;  %v1036_v61 = vld [vmem:[#allocation2 + $0x39] sm:$0x1]  ;;  %1609 = vst.msk [vmem:[#allocation3 + $0x15] sm:$0x1] %vm27_vm0, %v1465_v52 }
 0x15e   :  { %v891_v60 = vld [vmem:[#allocation2 + $0x38] sm:$0x1]  ;;  %v1467_v62 = vmax.f32 %v1178_v53, %v1323_v54  ;;  %v1325_v0 = vld [vmem:[#allocation2 + $0x3a] sm:$0x1]  ;;  %v1037_v2 = vld [vmem:[#allocation2 + $0x3b] sm:$0x1] }
 0x15f   :  { %v1180_v63 = vmax.f32 %v891_v60, %v1036_v61  ;;  %v892_v1 = vld [vmem:[#allocation2 + $0x3a] sm:$0x1]  ;;  %1610 = vst.msk [vmem:[#allocation3 + $0x16] sm:$0x1] %vm27_vm0, %v1466_v57  ;;  %v1468_v3 = vmax.f32 %v1179_v58, %v1324_v59  ;;  %v1326_v5 = vld [vmem:[#allocation2 + $0x3c] sm:$0x1] }
 0x160   :  { %v1181_v4 = vmax.f32 %v892_v1, %v1037_v2  ;;  %v893_v6 = vld [vmem:[#allocation2 + $0x3c] sm:$0x1]  ;;  %v1038_v7 = vld [vmem:[#allocation2 + $0x3d] sm:$0x1]  ;;  %1611 = vst.msk [vmem:[#allocation3 + $0x17] sm:$0x1] %vm27_vm0, %v1467_v62 }
 0x161   :  { %v1469_v8 = vmax.f32 %v1180_v63, %v1325_v0  ;;  %v1182_v9 = vmax.f32 %v893_v6, %v1038_v7  ;;  %v1327_v10 = vld [vmem:[#allocation2 + $0x3e] sm:$0x1]  ;;  %v1039_v12 = vld [vmem:[#allocation2 + $0x3f] sm:$0x1]  ;;  %1612 = vst.msk [vmem:[#allocation3 + $0x18] sm:$0x1] %vm27_vm0, %v1468_v3 }
 0x162   :  { %v894_v11 = vld [vmem:[#allocation2 + $0x3e] sm:$0x1]  ;;  %v1470_v13 = vmax.f32 %v1181_v4, %v1326_v5  ;;  %v1328_v15 = vld [vmem:[#allocation2 + $0x40] sm:$0x1]  ;;  %v1040_v17 = vld [vmem:[#allocation2 + $0x41] sm:$0x1] }
 0x163   :  { %v1183_v14 = vmax.f32 %v894_v11, %v1039_v12  ;;  %v895_v16 = vld [vmem:[#allocation2 + $0x40] sm:$0x1]  ;;  %1613 = vst.msk [vmem:[#allocation3 + $0x19] sm:$0x1] %vm27_vm0, %v1469_v8  ;;  %v1471_v18 = vmax.f32 %v1182_v9, %v1327_v10  ;;  %v1329_v20 = vld [vmem:[#allocation2 + $0x42] sm:$0x1] }
 0x164   :  { %v1184_v19 = vmax.f32 %v895_v16, %v1040_v17  ;;  %v896_v21 = vld [vmem:[#allocation2 + $0x42] sm:$0x1]  ;;  %v1041_v22 = vld [vmem:[#allocation2 + $0x43] sm:$0x1]  ;;  %1614 = vst.msk [vmem:[#allocation3 + $0x1a] sm:$0x1] %vm27_vm0, %v1470_v13 }
 0x165   :  { %v1472_v23 = vmax.f32 %v1183_v14, %v1328_v15  ;;  %v1185_v24 = vmax.f32 %v896_v21, %v1041_v22  ;;  %v1330_v25 = vld [vmem:[#allocation2 + $0x44] sm:$0x1]  ;;  %v1042_v27 = vld [vmem:[#allocation2 + $0x45] sm:$0x1]  ;;  %1615 = vst.msk [vmem:[#allocation3 + $0x1b] sm:$0x1] %vm27_vm0, %v1471_v18 }
 0x166   :  { %v897_v26 = vld [vmem:[#allocation2 + $0x44] sm:$0x1]  ;;  %v1473_v28 = vmax.f32 %v1184_v19, %v1329_v20  ;;  %v1331_v30 = vld [vmem:[#allocation2 + $0x46] sm:$0x1]  ;;  %v898_v31 = vld [vmem:[#allocation2 + $0x48] sm:$0x1] }
 0x167   :  { %v1186_v29 = vmax.f32 %v897_v26, %v1042_v27  ;;  %v1043_v32 = vld [vmem:[#allocation2 + $0x49] sm:$0x1]  ;;  %1616 = vst.msk [vmem:[#allocation3 + $0x1c] sm:$0x1] %vm27_vm0, %v1472_v23  ;;  %v1474_v33 = vmax.f32 %v1185_v24, %v1330_v25  ;;  %v1332_v35 = vld [vmem:[#allocation2 + $0x4a] sm:$0x1] }
 0x168   :  { %v1187_v34 = vmax.f32 %v898_v31, %v1043_v32  ;;  %v899_v36 = vld [vmem:[#allocation2 + $0x4a] sm:$0x1]  ;;  %v1044_v37 = vld [vmem:[#allocation2 + $0x4b] sm:$0x1]  ;;  %1617 = vst.msk [vmem:[#allocation3 + $0x1d] sm:$0x1] %vm27_vm0, %v1473_v28 }
 0x169   :  { %v1475_v38 = vmax.f32 %v1186_v29, %v1331_v30  ;;  %v1188_v39 = vmax.f32 %v899_v36, %v1044_v37  ;;  %v1333_v40 = vld [vmem:[#allocation2 + $0x4c] sm:$0x1]  ;;  %v1045_v42 = vld [vmem:[#allocation2 + $0x4d] sm:$0x1]  ;;  %1618 = vst.msk [vmem:[#allocation3 + $0x1e] sm:$0x1] %vm27_vm0, %v1474_v33 }
 0x16a   :  { %v900_v41 = vld [vmem:[#allocation2 + $0x4c] sm:$0x1]  ;;  %v1476_v43 = vmax.f32 %v1187_v34, %v1332_v35  ;;  %v1334_v45 = vld [vmem:[#allocation2 + $0x4e] sm:$0x1]  ;;  %v1046_v47 = vld [vmem:[#allocation2 + $0x4f] sm:$0x1] }
 0x16b   :  { %v1189_v44 = vmax.f32 %v900_v41, %v1045_v42  ;;  %v901_v46 = vld [vmem:[#allocation2 + $0x4e] sm:$0x1]  ;;  %1619 = vst.msk [vmem:[#allocation3 + $0x1f] sm:$0x1] %vm27_vm0, %v1475_v38  ;;  %v1477_v48 = vmax.f32 %v1188_v39, %v1333_v40  ;;  %v1335_v50 = vld [vmem:[#allocation2 + $0x50] sm:$0x1] }
 0x16c   :  { %v1190_v49 = vmax.f32 %v901_v46, %v1046_v47  ;;  %v902_v51 = vld [vmem:[#allocation2 + $0x50] sm:$0x1]  ;;  %v1047_v52 = vld [vmem:[#allocation2 + $0x51] sm:$0x1]  ;;  %1620 = vst.msk [vmem:[#allocation3 + $0x20] sm:$0x1] %vm27_vm0, %v1476_v43 }
 0x16d   :  { %v1478_v53 = vmax.f32 %v1189_v44, %v1334_v45  ;;  %v1191_v54 = vmax.f32 %v902_v51, %v1047_v52  ;;  %v1336_v55 = vld [vmem:[#allocation2 + $0x52] sm:$0x1]  ;;  %v1048_v57 = vld [vmem:[#allocation2 + $0x53] sm:$0x1]  ;;  %1621 = vst.msk [vmem:[#allocation3 + $0x21] sm:$0x1] %vm27_vm0, %v1477_v48 }
 0x16e   :  { %v903_v56 = vld [vmem:[#allocation2 + $0x52] sm:$0x1]  ;;  %v1479_v58 = vmax.f32 %v1190_v49, %v1335_v50  ;;  %v1337_v60 = vld [vmem:[#allocation2 + $0x54] sm:$0x1]  ;;  %v1049_v62 = vld [vmem:[#allocation2 + $0x55] sm:$0x1] }
 0x16f   :  { %v1192_v59 = vmax.f32 %v903_v56, %v1048_v57  ;;  %v904_v61 = vld [vmem:[#allocation2 + $0x54] sm:$0x1]  ;;  %1622 = vst.msk [vmem:[#allocation3 + $0x22] sm:$0x1] %vm27_vm0, %v1478_v53  ;;  %v1480_v63 = vmax.f32 %v1191_v54, %v1336_v55  ;;  %v1338_v1 = vld [vmem:[#allocation2 + $0x56] sm:$0x1] }
 0x170   :  { %v1193_v0 = vmax.f32 %v904_v61, %v1049_v62  ;;  %v905_v2 = vld [vmem:[#allocation2 + $0x56] sm:$0x1]  ;;  %v1050_v3 = vld [vmem:[#allocation2 + $0x57] sm:$0x1]  ;;  %1623 = vst.msk [vmem:[#allocation3 + $0x23] sm:$0x1] %vm27_vm0, %v1479_v58 }
 0x171   :  { %v1481_v4 = vmax.f32 %v1192_v59, %v1337_v60  ;;  %v1194_v5 = vmax.f32 %v905_v2, %v1050_v3  ;;  %v1339_v6 = vld [vmem:[#allocation2 + $0x58] sm:$0x1]  ;;  %v906_v7 = vld [vmem:[#allocation2 + $0x5a] sm:$0x1]  ;;  %v1051_v8 = vld [vmem:[#allocation2 + $0x5b] sm:$0x1] }
 0x172   :  { %1624 = vst.msk [vmem:[#allocation3 + $0x24] sm:$0x1] %vm27_vm0, %v1480_v63  ;;  %v1482_v9 = vmax.f32 %v1193_v0, %v1338_v1  ;;  %v1195_v10 = vmax.f32 %v906_v7, %v1051_v8  ;;  %v1340_v11 = vld [vmem:[#allocation2 + $0x5c] sm:$0x1]  ;;  %v1052_v13 = vld [vmem:[#allocation2 + $0x5d] sm:$0x1] }
 0x173   :  { %v907_v12 = vld [vmem:[#allocation2 + $0x5c] sm:$0x1]  ;;  %1625 = vst.msk [vmem:[#allocation3 + $0x25] sm:$0x1] %vm27_vm0, %v1481_v4  ;;  %v1483_v14 = vmax.f32 %v1194_v5, %v1339_v6  ;;  %v1341_v16 = vld [vmem:[#allocation2 + $0x5e] sm:$0x1] }
 0x174   :  { %v1196_v15 = vmax.f32 %v907_v12, %v1052_v13  ;;  %v908_v17 = vld [vmem:[#allocation2 + $0x5e] sm:$0x1]  ;;  %v1053_v18 = vld [vmem:[#allocation2 + $0x5f] sm:$0x1]  ;;  %1626 = vst.msk [vmem:[#allocation3 + $0x26] sm:$0x1] %vm27_vm0, %v1482_v9  ;;  %v1484_v19 = vmax.f32 %v1195_v10, %v1340_v11 }
 0x175   :  { %v1197_v20 = vmax.f32 %v908_v17, %v1053_v18  ;;  %v1342_v21 = vld [vmem:[#allocation2 + $0x60] sm:$0x1]  ;;  %v1054_v23 = vld [vmem:[#allocation2 + $0x61] sm:$0x1]  ;;  %1627 = vst.msk [vmem:[#allocation3 + $0x27] sm:$0x1] %vm27_vm0, %v1483_v14 }
 0x176   :  { %v909_v22 = vld [vmem:[#allocation2 + $0x60] sm:$0x1]  ;;  %v1485_v24 = vmax.f32 %v1196_v15, %v1341_v16  ;;  %v1343_v26 = vld [vmem:[#allocation2 + $0x62] sm:$0x1]  ;;  %v1055_v28 = vld [vmem:[#allocation2 + $0x63] sm:$0x1] }
 0x177   :  { %v1198_v25 = vmax.f32 %v909_v22, %v1054_v23  ;;  %v910_v27 = vld [vmem:[#allocation2 + $0x62] sm:$0x1]  ;;  %1628 = vst.msk [vmem:[#allocation3 + $0x28] sm:$0x1] %vm27_vm0, %v1484_v19  ;;  %v1486_v29 = vmax.f32 %v1197_v20, %v1342_v21  ;;  %v1344_v31 = vld [vmem:[#allocation2 + $0x64] sm:$0x1] }
 0x178   :  { %v1199_v30 = vmax.f32 %v910_v27, %v1055_v28  ;;  %v911_v32 = vld [vmem:[#allocation2 + $0x64] sm:$0x1]  ;;  %v1056_v33 = vld [vmem:[#allocation2 + $0x65] sm:$0x1]  ;;  %1629 = vst.msk [vmem:[#allocation3 + $0x29] sm:$0x1] %vm27_vm0, %v1485_v24 }
 0x179   :  { %v1487_v34 = vmax.f32 %v1198_v25, %v1343_v26  ;;  %v1200_v35 = vmax.f32 %v911_v32, %v1056_v33  ;;  %v1345_v36 = vld [vmem:[#allocation2 + $0x66] sm:$0x1]  ;;  %v1057_v38 = vld [vmem:[#allocation2 + $0x67] sm:$0x1]  ;;  %1630 = vst.msk [vmem:[#allocation3 + $0x2a] sm:$0x1] %vm27_vm0, %v1486_v29 }
 0x17a   :  { %v912_v37 = vld [vmem:[#allocation2 + $0x66] sm:$0x1]  ;;  %v1488_v39 = vmax.f32 %v1199_v30, %v1344_v31  ;;  %v1346_v41 = vld [vmem:[#allocation2 + $0x68] sm:$0x1]  ;;  %v1058_v43 = vld [vmem:[#allocation2 + $0x69] sm:$0x1] }
 0x17b   :  { %v1201_v40 = vmax.f32 %v912_v37, %v1057_v38  ;;  %v913_v42 = vld [vmem:[#allocation2 + $0x68] sm:$0x1]  ;;  %1631 = vst.msk [vmem:[#allocation3 + $0x2b] sm:$0x1] %vm27_vm0, %v1487_v34  ;;  %v1489_v44 = vmax.f32 %v1200_v35, %v1345_v36  ;;  %v1347_v46 = vld [vmem:[#allocation2 + $0x6a] sm:$0x1] }
 0x17c   :  { %v1202_v45 = vmax.f32 %v913_v42, %v1058_v43  ;;  %v914_v47 = vld [vmem:[#allocation2 + $0x6c] sm:$0x1]  ;;  %v1059_v48 = vld [vmem:[#allocation2 + $0x6d] sm:$0x1]  ;;  %1632 = vst.msk [vmem:[#allocation3 + $0x2c] sm:$0x1] %vm27_vm0, %v1488_v39 }
 0x17d   :  { %v1490_v49 = vmax.f32 %v1201_v40, %v1346_v41  ;;  %v1203_v50 = vmax.f32 %v914_v47, %v1059_v48  ;;  %v1348_v51 = vld [vmem:[#allocation2 + $0x6e] sm:$0x1]  ;;  %v1060_v53 = vld [vmem:[#allocation2 + $0x6f] sm:$0x1]  ;;  %1633 = vst.msk [vmem:[#allocation3 + $0x2d] sm:$0x1] %vm27_vm0, %v1489_v44 }
 0x17e   :  { %v915_v52 = vld [vmem:[#allocation2 + $0x6e] sm:$0x1]  ;;  %v1491_v54 = vmax.f32 %v1202_v45, %v1347_v46  ;;  %v1349_v56 = vld [vmem:[#allocation2 + $0x70] sm:$0x1]  ;;  %v1061_v58 = vld [vmem:[#allocation2 + $0x71] sm:$0x1] }
 0x17f   :  { %v1204_v55 = vmax.f32 %v915_v52, %v1060_v53  ;;  %v916_v57 = vld [vmem:[#allocation2 + $0x70] sm:$0x1]  ;;  %1634 = vst.msk [vmem:[#allocation3 + $0x2e] sm:$0x1] %vm27_vm0, %v1490_v49  ;;  %v1492_v59 = vmax.f32 %v1203_v50, %v1348_v51  ;;  %v1350_v61 = vld [vmem:[#allocation2 + $0x72] sm:$0x1] }
 0x180   :  { %v1205_v60 = vmax.f32 %v916_v57, %v1061_v58  ;;  %v917_v62 = vld [vmem:[#allocation2 + $0x72] sm:$0x1]  ;;  %v1062_v63 = vld [vmem:[#allocation2 + $0x73] sm:$0x1]  ;;  %1635 = vst.msk [vmem:[#allocation3 + $0x2f] sm:$0x1] %vm27_vm0, %v1491_v54 }
 0x181   :  { %v1493_v0 = vmax.f32 %v1204_v55, %v1349_v56  ;;  %v1206_v1 = vmax.f32 %v917_v62, %v1062_v63  ;;  %v1351_v2 = vld [vmem:[#allocation2 + $0x74] sm:$0x1]  ;;  %v1063_v4 = vld [vmem:[#allocation2 + $0x75] sm:$0x1]  ;;  %1636 = vst.msk [vmem:[#allocation3 + $0x30] sm:$0x1] %vm27_vm0, %v1492_v59 }
 0x182   :  { %v918_v3 = vld [vmem:[#allocation2 + $0x74] sm:$0x1]  ;;  %v1494_v5 = vmax.f32 %v1205_v60, %v1350_v61  ;;  %v1352_v7 = vld [vmem:[#allocation2 + $0x76] sm:$0x1]  ;;  %v1064_v9 = vld [vmem:[#allocation2 + $0x77] sm:$0x1] }
 0x183   :  { %v1207_v6 = vmax.f32 %v918_v3, %v1063_v4  ;;  %v919_v8 = vld [vmem:[#allocation2 + $0x76] sm:$0x1]  ;;  %1637 = vst.msk [vmem:[#allocation3 + $0x31] sm:$0x1] %vm27_vm0, %v1493_v0  ;;  %v1495_v10 = vmax.f32 %v1206_v1, %v1351_v2  ;;  %v1353_v12 = vld [vmem:[#allocation2 + $0x78] sm:$0x1] }
 0x184   :  { %v1208_v11 = vmax.f32 %v919_v8, %v1064_v9  ;;  %v920_v13 = vld [vmem:[#allocation2 + $0x78] sm:$0x1]  ;;  %v1065_v14 = vld [vmem:[#allocation2 + $0x79] sm:$0x1]  ;;  %1638 = vst.msk [vmem:[#allocation3 + $0x32] sm:$0x1] %vm27_vm0, %v1494_v5 }
 0x185   :  { %v1496_v15 = vmax.f32 %v1207_v6, %v1352_v7  ;;  %v1209_v16 = vmax.f32 %v920_v13, %v1065_v14  ;;  %v1354_v17 = vld [vmem:[#allocation2 + $0x7a] sm:$0x1]  ;;  %v1066_v19 = vld [vmem:[#allocation2 + $0x7b] sm:$0x1]  ;;  %1639 = vst.msk [vmem:[#allocation3 + $0x33] sm:$0x1] %vm27_vm0, %v1495_v10 }
 0x186   :  { %v921_v18 = vld [vmem:[#allocation2 + $0x7a] sm:$0x1]  ;;  %v1497_v20 = vmax.f32 %v1208_v11, %v1353_v12  ;;  %v1355_v22 = vld [vmem:[#allocation2 + $0x7c] sm:$0x1]  ;;  %v922_v23 = vld [vmem:[#allocation2 + $0x7e] sm:$0x1] }
 0x187   :  { %v1210_v21 = vmax.f32 %v921_v18, %v1066_v19  ;;  %v1067_v24 = vld [vmem:[#allocation2 + $0x7f] sm:$0x1]  ;;  %1640 = vst.msk [vmem:[#allocation3 + $0x34] sm:$0x1] %vm27_vm0, %v1496_v15  ;;  %v1498_v25 = vmax.f32 %v1209_v16, %v1354_v17  ;;  %v1356_v27 = vld [vmem:[#allocation2 + $0x80] sm:$0x1] }
 0x188   :  { %v1211_v26 = vmax.f32 %v922_v23, %v1067_v24  ;;  %v923_v28 = vld [vmem:[#allocation2 + $0x80] sm:$0x1]  ;;  %v1068_v29 = vld [vmem:[#allocation2 + $0x81] sm:$0x1]  ;;  %1641 = vst.msk [vmem:[#allocation3 + $0x35] sm:$0x1] %vm27_vm0, %v1497_v20 }
 0x189   :  { %v1499_v30 = vmax.f32 %v1210_v21, %v1355_v22  ;;  %v1212_v31 = vmax.f32 %v923_v28, %v1068_v29  ;;  %v1357_v32 = vld [vmem:[#allocation2 + $0x82] sm:$0x1]  ;;  %v1069_v34 = vld [vmem:[#allocation2 + $0x83] sm:$0x1]  ;;  %1642 = vst.msk [vmem:[#allocation3 + $0x36] sm:$0x1] %vm27_vm0, %v1498_v25 }
 0x18a   :  { %v924_v33 = vld [vmem:[#allocation2 + $0x82] sm:$0x1]  ;;  %v1500_v35 = vmax.f32 %v1211_v26, %v1356_v27  ;;  %v1358_v37 = vld [vmem:[#allocation2 + $0x84] sm:$0x1]  ;;  %v1070_v39 = vld [vmem:[#allocation2 + $0x85] sm:$0x1] }
 0x18b   :  { %v1213_v36 = vmax.f32 %v924_v33, %v1069_v34  ;;  %v925_v38 = vld [vmem:[#allocation2 + $0x84] sm:$0x1]  ;;  %1643 = vst.msk [vmem:[#allocation3 + $0x37] sm:$0x1] %vm27_vm0, %v1499_v30  ;;  %v1501_v40 = vmax.f32 %v1212_v31, %v1357_v32  ;;  %v1359_v42 = vld [vmem:[#allocation2 + $0x86] sm:$0x1] }
 0x18c   :  { %v1214_v41 = vmax.f32 %v925_v38, %v1070_v39  ;;  %v926_v43 = vld [vmem:[#allocation2 + $0x86] sm:$0x1]  ;;  %v1071_v44 = vld [vmem:[#allocation2 + $0x87] sm:$0x1]  ;;  %1644 = vst.msk [vmem:[#allocation3 + $0x38] sm:$0x1] %vm27_vm0, %v1500_v35 }
 0x18d   :  { %v1502_v45 = vmax.f32 %v1213_v36, %v1358_v37  ;;  %v1215_v46 = vmax.f32 %v926_v43, %v1071_v44  ;;  %v1360_v47 = vld [vmem:[#allocation2 + $0x88] sm:$0x1]  ;;  %v1072_v49 = vld [vmem:[#allocation2 + $0x89] sm:$0x1]  ;;  %1645 = vst.msk [vmem:[#allocation3 + $0x39] sm:$0x1] %vm27_vm0, %v1501_v40 }
 0x18e   :  { %v927_v48 = vld [vmem:[#allocation2 + $0x88] sm:$0x1]  ;;  %v1503_v50 = vmax.f32 %v1214_v41, %v1359_v42  ;;  %v1361_v52 = vld [vmem:[#allocation2 + $0x8a] sm:$0x1]  ;;  %v1073_v54 = vld [vmem:[#allocation2 + $0x8b] sm:$0x1] }
 0x18f   :  { %v1216_v51 = vmax.f32 %v927_v48, %v1072_v49  ;;  %v928_v53 = vld [vmem:[#allocation2 + $0x8a] sm:$0x1]  ;;  %1646 = vst.msk [vmem:[#allocation3 + $0x3a] sm:$0x1] %vm27_vm0, %v1502_v45  ;;  %v1504_v55 = vmax.f32 %v1215_v46, %v1360_v47  ;;  %v1362_v57 = vld [vmem:[#allocation2 + $0x8c] sm:$0x1] }
 0x190   :  { %v1217_v56 = vmax.f32 %v928_v53, %v1073_v54  ;;  %v929_v58 = vld [vmem:[#allocation2 + $0x8c] sm:$0x1]  ;;  %v1074_v59 = vld [vmem:[#allocation2 + $0x8d] sm:$0x1]  ;;  %1647 = vst.msk [vmem:[#allocation3 + $0x3b] sm:$0x1] %vm27_vm0, %v1503_v50 }
 0x191   :  { %v1505_v60 = vmax.f32 %v1216_v51, %v1361_v52  ;;  %v1218_v61 = vmax.f32 %v929_v58, %v1074_v59  ;;  %v1363_v62 = vld [vmem:[#allocation2 + $0x8e] sm:$0x1]  ;;  %v930_v63 = vld [vmem:[#allocation2 + $0x90] sm:$0x1]  ;;  %v1075_v0 = vld [vmem:[#allocation2 + $0x91] sm:$0x1] }
 0x192   :  { %1648 = vst.msk [vmem:[#allocation3 + $0x3c] sm:$0x1] %vm27_vm0, %v1504_v55  ;;  %v1506_v1 = vmax.f32 %v1217_v56, %v1362_v57  ;;  %v1219_v2 = vmax.f32 %v930_v63, %v1075_v0  ;;  %v1364_v3 = vld [vmem:[#allocation2 + $0x92] sm:$0x1]  ;;  %v1076_v5 = vld [vmem:[#allocation2 + $0x93] sm:$0x1] }
 0x193   :  { %v931_v4 = vld [vmem:[#allocation2 + $0x92] sm:$0x1]  ;;  %1649 = vst.msk [vmem:[#allocation3 + $0x3d] sm:$0x1] %vm27_vm0, %v1505_v60  ;;  %v1507_v6 = vmax.f32 %v1218_v61, %v1363_v62  ;;  %v1365_v8 = vld [vmem:[#allocation2 + $0x94] sm:$0x1] }
 0x194   :  { %v1220_v7 = vmax.f32 %v931_v4, %v1076_v5  ;;  %v932_v9 = vld [vmem:[#allocation2 + $0x94] sm:$0x1]  ;;  %v1077_v10 = vld [vmem:[#allocation2 + $0x95] sm:$0x1]  ;;  %1650 = vst.msk [vmem:[#allocation3 + $0x3e] sm:$0x1] %vm27_vm0, %v1506_v1  ;;  %v1508_v11 = vmax.f32 %v1219_v2, %v1364_v3 }
 0x195   :  { %v1221_v12 = vmax.f32 %v932_v9, %v1077_v10  ;;  %v1366_v13 = vld [vmem:[#allocation2 + $0x96] sm:$0x1]  ;;  %v1078_v15 = vld [vmem:[#allocation2 + $0x97] sm:$0x1]  ;;  %1651 = vst.msk [vmem:[#allocation3 + $0x3f] sm:$0x1] %vm27_vm0, %v1507_v6 }
 0x196   :  { %v933_v14 = vld [vmem:[#allocation2 + $0x96] sm:$0x1]  ;;  %v1509_v16 = vmax.f32 %v1220_v7, %v1365_v8  ;;  %v1367_v18 = vld [vmem:[#allocation2 + $0x98] sm:$0x1]  ;;  %v1079_v20 = vld [vmem:[#allocation2 + $0x99] sm:$0x1] }
 0x197   :  { %v1222_v17 = vmax.f32 %v933_v14, %v1078_v15  ;;  %v934_v19 = vld [vmem:[#allocation2 + $0x98] sm:$0x1]  ;;  %1652 = vst.msk [vmem:[#allocation3 + $0x40] sm:$0x1] %vm27_vm0, %v1508_v11  ;;  %v1510_v21 = vmax.f32 %v1221_v12, %v1366_v13  ;;  %v1368_v23 = vld [vmem:[#allocation2 + $0x9a] sm:$0x1] }
 0x198   :  { %v1223_v22 = vmax.f32 %v934_v19, %v1079_v20  ;;  %v935_v24 = vld [vmem:[#allocation2 + $0x9a] sm:$0x1]  ;;  %v1080_v25 = vld [vmem:[#allocation2 + $0x9b] sm:$0x1]  ;;  %1653 = vst.msk [vmem:[#allocation3 + $0x41] sm:$0x1] %vm27_vm0, %v1509_v16 }
 0x199   :  { %v1511_v26 = vmax.f32 %v1222_v17, %v1367_v18  ;;  %v1224_v27 = vmax.f32 %v935_v24, %v1080_v25  ;;  %v1369_v28 = vld [vmem:[#allocation2 + $0x9c] sm:$0x1]  ;;  %v1081_v30 = vld [vmem:[#allocation2 + $0x9d] sm:$0x1]  ;;  %1654 = vst.msk [vmem:[#allocation3 + $0x42] sm:$0x1] %vm27_vm0, %v1510_v21 }
 0x19a   :  { %v936_v29 = vld [vmem:[#allocation2 + $0x9c] sm:$0x1]  ;;  %v1512_v31 = vmax.f32 %v1223_v22, %v1368_v23  ;;  %v1370_v33 = vld [vmem:[#allocation2 + $0x9e] sm:$0x1]  ;;  %v1082_v35 = vld [vmem:[#allocation2 + $0x9f] sm:$0x1] }
 0x19b   :  { %v1225_v32 = vmax.f32 %v936_v29, %v1081_v30  ;;  %v937_v34 = vld [vmem:[#allocation2 + $0x9e] sm:$0x1]  ;;  %1655 = vst.msk [vmem:[#allocation3 + $0x43] sm:$0x1] %vm27_vm0, %v1511_v26  ;;  %v1513_v36 = vmax.f32 %v1224_v27, %v1369_v28  ;;  %v1371_v38 = vld [vmem:[#allocation2 + $0xa0] sm:$0x1] }
 0x19c   :  { %v1226_v37 = vmax.f32 %v937_v34, %v1082_v35  ;;  %v938_v39 = vld [vmem:[#allocation2 + $0xa2] sm:$0x1]  ;;  %v1083_v40 = vld [vmem:[#allocation2 + $0xa3] sm:$0x1]  ;;  %1656 = vst.msk [vmem:[#allocation3 + $0x44] sm:$0x1] %vm27_vm0, %v1512_v31 }
 0x19d   :  { %v1514_v41 = vmax.f32 %v1225_v32, %v1370_v33  ;;  %v1227_v42 = vmax.f32 %v938_v39, %v1083_v40  ;;  %v1372_v43 = vld [vmem:[#allocation2 + $0xa4] sm:$0x1]  ;;  %v1084_v45 = vld [vmem:[#allocation2 + $0xa5] sm:$0x1]  ;;  %1657 = vst.msk [vmem:[#allocation3 + $0x45] sm:$0x1] %vm27_vm0, %v1513_v36 }
 0x19e   :  { %v939_v44 = vld [vmem:[#allocation2 + $0xa4] sm:$0x1]  ;;  %v1515_v46 = vmax.f32 %v1226_v37, %v1371_v38  ;;  %v1373_v48 = vld [vmem:[#allocation2 + $0xa6] sm:$0x1]  ;;  %v1085_v50 = vld [vmem:[#allocation2 + $0xa7] sm:$0x1] }
 0x19f   :  { %v1228_v47 = vmax.f32 %v939_v44, %v1084_v45  ;;  %v940_v49 = vld [vmem:[#allocation2 + $0xa6] sm:$0x1]  ;;  %1658 = vst.msk [vmem:[#allocation3 + $0x46] sm:$0x1] %vm27_vm0, %v1514_v41  ;;  %v1516_v51 = vmax.f32 %v1227_v42, %v1372_v43  ;;  %v1374_v53 = vld [vmem:[#allocation2 + $0xa8] sm:$0x1] }
 0x1a0   :  { %v1229_v52 = vmax.f32 %v940_v49, %v1085_v50  ;;  %v941_v54 = vld [vmem:[#allocation2 + $0xa8] sm:$0x1]  ;;  %v1086_v55 = vld [vmem:[#allocation2 + $0xa9] sm:$0x1]  ;;  %1659 = vst.msk [vmem:[#allocation3 + $0x47] sm:$0x1] %vm27_vm0, %v1515_v46 }
 0x1a1   :  { %v1517_v56 = vmax.f32 %v1228_v47, %v1373_v48  ;;  %v1230_v57 = vmax.f32 %v941_v54, %v1086_v55  ;;  %v1375_v58 = vld [vmem:[#allocation2 + $0xaa] sm:$0x1]  ;;  %v1087_v60 = vld [vmem:[#allocation2 + $0xab] sm:$0x1]  ;;  %1660 = vst.msk [vmem:[#allocation3 + $0x48] sm:$0x1] %vm27_vm0, %v1516_v51 }
 0x1a2   :  { %v942_v59 = vld [vmem:[#allocation2 + $0xaa] sm:$0x1]  ;;  %v1518_v61 = vmax.f32 %v1229_v52, %v1374_v53  ;;  %v1376_v63 = vld [vmem:[#allocation2 + $0xac] sm:$0x1]  ;;  %v1088_v1 = vld [vmem:[#allocation2 + $0xad] sm:$0x1] }
 0x1a3   :  { %v1231_v62 = vmax.f32 %v942_v59, %v1087_v60  ;;  %v943_v0 = vld [vmem:[#allocation2 + $0xac] sm:$0x1]  ;;  %1661 = vst.msk [vmem:[#allocation3 + $0x49] sm:$0x1] %vm27_vm0, %v1517_v56  ;;  %v1519_v2 = vmax.f32 %v1230_v57, %v1375_v58  ;;  %v1377_v4 = vld [vmem:[#allocation2 + $0xae] sm:$0x1] }
 0x1a4   :  { %v1232_v3 = vmax.f32 %v943_v0, %v1088_v1  ;;  %v944_v5 = vld [vmem:[#allocation2 + $0xae] sm:$0x1]  ;;  %v1089_v6 = vld [vmem:[#allocation2 + $0xaf] sm:$0x1]  ;;  %1662 = vst.msk [vmem:[#allocation3 + $0x4a] sm:$0x1] %vm27_vm0, %v1518_v61 }
 0x1a5   :  { %v1520_v7 = vmax.f32 %v1231_v62, %v1376_v63  ;;  %v1233_v8 = vmax.f32 %v944_v5, %v1089_v6  ;;  %v1378_v9 = vld [vmem:[#allocation2 + $0xb0] sm:$0x1]  ;;  %v1090_v11 = vld [vmem:[#allocation2 + $0xb1] sm:$0x1]  ;;  %1663 = vst.msk [vmem:[#allocation3 + $0x4b] sm:$0x1] %vm27_vm0, %v1519_v2 }
 0x1a6   :  { %v945_v10 = vld [vmem:[#allocation2 + $0xb0] sm:$0x1]  ;;  %v1521_v12 = vmax.f32 %v1232_v3, %v1377_v4  ;;  %v1379_v14 = vld [vmem:[#allocation2 + $0xb2] sm:$0x1]  ;;  %v946_v15 = vld [vmem:[#allocation2 + $0xb4] sm:$0x1] }
 0x1a7   :  { %v1234_v13 = vmax.f32 %v945_v10, %v1090_v11  ;;  %v1091_v16 = vld [vmem:[#allocation2 + $0xb5] sm:$0x1]  ;;  %1664 = vst.msk [vmem:[#allocation3 + $0x4c] sm:$0x1] %vm27_vm0, %v1520_v7  ;;  %v1522_v17 = vmax.f32 %v1233_v8, %v1378_v9  ;;  %v1380_v19 = vld [vmem:[#allocation2 + $0xb6] sm:$0x1] }
 0x1a8   :  { %v1235_v18 = vmax.f32 %v946_v15, %v1091_v16  ;;  %v947_v20 = vld [vmem:[#allocation2 + $0xb6] sm:$0x1]  ;;  %v1092_v21 = vld [vmem:[#allocation2 + $0xb7] sm:$0x1]  ;;  %1665 = vst.msk [vmem:[#allocation3 + $0x4d] sm:$0x1] %vm27_vm0, %v1521_v12 }
 0x1a9   :  { %v1523_v22 = vmax.f32 %v1234_v13, %v1379_v14  ;;  %v1236_v23 = vmax.f32 %v947_v20, %v1092_v21  ;;  %v1381_v24 = vld [vmem:[#allocation2 + $0xb8] sm:$0x1]  ;;  %v1093_v26 = vld [vmem:[#allocation2 + $0xb9] sm:$0x1]  ;;  %1666 = vst.msk [vmem:[#allocation3 + $0x4e] sm:$0x1] %vm27_vm0, %v1522_v17 }
 0x1aa   :  { %v948_v25 = vld [vmem:[#allocation2 + $0xb8] sm:$0x1]  ;;  %v1524_v27 = vmax.f32 %v1235_v18, %v1380_v19  ;;  %v1382_v29 = vld [vmem:[#allocation2 + $0xba] sm:$0x1]  ;;  %v1094_v31 = vld [vmem:[#allocation2 + $0xbb] sm:$0x1] }
 0x1ab   :  { %v1237_v28 = vmax.f32 %v948_v25, %v1093_v26  ;;  %v949_v30 = vld [vmem:[#allocation2 + $0xba] sm:$0x1]  ;;  %1667 = vst.msk [vmem:[#allocation3 + $0x4f] sm:$0x1] %vm27_vm0, %v1523_v22  ;;  %v1525_v32 = vmax.f32 %v1236_v23, %v1381_v24  ;;  %v1383_v34 = vld [vmem:[#allocation2 + $0xbc] sm:$0x1] }
 0x1ac   :  { %v1238_v33 = vmax.f32 %v949_v30, %v1094_v31  ;;  %v950_v35 = vld [vmem:[#allocation2 + $0xbc] sm:$0x1]  ;;  %v1095_v36 = vld [vmem:[#allocation2 + $0xbd] sm:$0x1]  ;;  %1668 = vst.msk [vmem:[#allocation3 + $0x50] sm:$0x1] %vm27_vm0, %v1524_v27 }
 0x1ad   :  { %v1526_v37 = vmax.f32 %v1237_v28, %v1382_v29  ;;  %v1239_v38 = vmax.f32 %v950_v35, %v1095_v36  ;;  %v1384_v39 = vld [vmem:[#allocation2 + $0xbe] sm:$0x1]  ;;  %v1096_v41 = vld [vmem:[#allocation2 + $0xbf] sm:$0x1]  ;;  %1669 = vst.msk [vmem:[#allocation3 + $0x51] sm:$0x1] %vm27_vm0, %v1525_v32 }
 0x1ae   :  { %v951_v40 = vld [vmem:[#allocation2 + $0xbe] sm:$0x1]  ;;  %v1527_v42 = vmax.f32 %v1238_v33, %v1383_v34  ;;  %v1385_v44 = vld [vmem:[#allocation2 + $0xc0] sm:$0x1]  ;;  %v1097_v46 = vld [vmem:[#allocation2 + $0xc1] sm:$0x1] }
 0x1af   :  { %v1240_v43 = vmax.f32 %v951_v40, %v1096_v41  ;;  %v952_v45 = vld [vmem:[#allocation2 + $0xc0] sm:$0x1]  ;;  %1670 = vst.msk [vmem:[#allocation3 + $0x52] sm:$0x1] %vm27_vm0, %v1526_v37  ;;  %v1528_v47 = vmax.f32 %v1239_v38, %v1384_v39  ;;  %v1386_v49 = vld [vmem:[#allocation2 + $0xc2] sm:$0x1] }
 0x1b0   :  { %v1241_v48 = vmax.f32 %v952_v45, %v1097_v46  ;;  %v953_v50 = vld [vmem:[#allocation2 + $0xc2] sm:$0x1]  ;;  %v1098_v51 = vld [vmem:[#allocation2 + $0xc3] sm:$0x1]  ;;  %1671 = vst.msk [vmem:[#allocation3 + $0x53] sm:$0x1] %vm27_vm0, %v1527_v42 }
 0x1b1   :  { %v1529_v52 = vmax.f32 %v1240_v43, %v1385_v44  ;;  %v1242_v53 = vmax.f32 %v953_v50, %v1098_v51  ;;  %v1387_v54 = vld [vmem:[#allocation2 + $0xc4] sm:$0x1]  ;;  %v954_v55 = vld [vmem:[#allocation2 + $0xc6] sm:$0x1]  ;;  %v1099_v56 = vld [vmem:[#allocation2 + $0xc7] sm:$0x1] }
 0x1b2   :  { %1672 = vst.msk [vmem:[#allocation3 + $0x54] sm:$0x1] %vm27_vm0, %v1528_v47  ;;  %v1530_v57 = vmax.f32 %v1241_v48, %v1386_v49  ;;  %v1243_v58 = vmax.f32 %v954_v55, %v1099_v56  ;;  %v1388_v59 = vld [vmem:[#allocation2 + $0xc8] sm:$0x1]  ;;  %v1100_v61 = vld [vmem:[#allocation2 + $0xc9] sm:$0x1] }
 0x1b3   :  { %v955_v60 = vld [vmem:[#allocation2 + $0xc8] sm:$0x1]  ;;  %1673 = vst.msk [vmem:[#allocation3 + $0x55] sm:$0x1] %vm27_vm0, %v1529_v52  ;;  %v1531_v62 = vmax.f32 %v1242_v53, %v1387_v54  ;;  %v1389_v0 = vld [vmem:[#allocation2 + $0xca] sm:$0x1] }
 0x1b4   :  { %v1244_v63 = vmax.f32 %v955_v60, %v1100_v61  ;;  %v956_v1 = vld [vmem:[#allocation2 + $0xca] sm:$0x1]  ;;  %v1101_v2 = vld [vmem:[#allocation2 + $0xcb] sm:$0x1]  ;;  %1674 = vst.msk [vmem:[#allocation3 + $0x56] sm:$0x1] %vm27_vm0, %v1530_v57  ;;  %v1532_v3 = vmax.f32 %v1243_v58, %v1388_v59 }
 0x1b5   :  { %v1245_v4 = vmax.f32 %v956_v1, %v1101_v2  ;;  %v1390_v5 = vld [vmem:[#allocation2 + $0xcc] sm:$0x1]  ;;  %v1102_v7 = vld [vmem:[#allocation2 + $0xcd] sm:$0x1]  ;;  %1675 = vst.msk [vmem:[#allocation3 + $0x57] sm:$0x1] %vm27_vm0, %v1531_v62 }
 0x1b6   :  { %v957_v6 = vld [vmem:[#allocation2 + $0xcc] sm:$0x1]  ;;  %v1533_v8 = vmax.f32 %v1244_v63, %v1389_v0  ;;  %v1391_v10 = vld [vmem:[#allocation2 + $0xce] sm:$0x1]  ;;  %v1103_v12 = vld [vmem:[#allocation2 + $0xcf] sm:$0x1] }
 0x1b7   :  { %v1246_v9 = vmax.f32 %v957_v6, %v1102_v7  ;;  %v958_v11 = vld [vmem:[#allocation2 + $0xce] sm:$0x1]  ;;  %1676 = vst.msk [vmem:[#allocation3 + $0x58] sm:$0x1] %vm27_vm0, %v1532_v3  ;;  %v1534_v13 = vmax.f32 %v1245_v4, %v1390_v5  ;;  %v1392_v15 = vld [vmem:[#allocation2 + $0xd0] sm:$0x1] }
 0x1b8   :  { %v1247_v14 = vmax.f32 %v958_v11, %v1103_v12  ;;  %v959_v16 = vld [vmem:[#allocation2 + $0xd0] sm:$0x1]  ;;  %v1104_v17 = vld [vmem:[#allocation2 + $0xd1] sm:$0x1]  ;;  %1677 = vst.msk [vmem:[#allocation3 + $0x59] sm:$0x1] %vm27_vm0, %v1533_v8 }
 0x1b9   :  { %v1535_v18 = vmax.f32 %v1246_v9, %v1391_v10  ;;  %v1248_v19 = vmax.f32 %v959_v16, %v1104_v17  ;;  %v1393_v20 = vld [vmem:[#allocation2 + $0xd2] sm:$0x1]  ;;  %v1105_v22 = vld [vmem:[#allocation2 + $0xd3] sm:$0x1]  ;;  %1678 = vst.msk [vmem:[#allocation3 + $0x5a] sm:$0x1] %vm27_vm0, %v1534_v13 }
 0x1ba   :  { %v960_v21 = vld [vmem:[#allocation2 + $0xd2] sm:$0x1]  ;;  %v1536_v23 = vmax.f32 %v1247_v14, %v1392_v15  ;;  %v1394_v25 = vld [vmem:[#allocation2 + $0xd4] sm:$0x1]  ;;  %v1106_v27 = vld [vmem:[#allocation2 + $0xd5] sm:$0x1] }
 0x1bb   :  { %v1249_v24 = vmax.f32 %v960_v21, %v1105_v22  ;;  %v961_v26 = vld [vmem:[#allocation2 + $0xd4] sm:$0x1]  ;;  %1679 = vst.msk [vmem:[#allocation3 + $0x5b] sm:$0x1] %vm27_vm0, %v1535_v18  ;;  %v1537_v28 = vmax.f32 %v1248_v19, %v1393_v20  ;;  %v1395_v30 = vld [vmem:[#allocation2 + $0xd6] sm:$0x1] }
 0x1bc   :  { %v1250_v29 = vmax.f32 %v961_v26, %v1106_v27  ;;  %v962_v31 = vld [vmem:[#allocation2 + $0xd8] sm:$0x1]  ;;  %v1107_v32 = vld [vmem:[#allocation2 + $0xd9] sm:$0x1]  ;;  %1680 = vst.msk [vmem:[#allocation3 + $0x5c] sm:$0x1] %vm27_vm0, %v1536_v23 }
 0x1bd   :  { %v1538_v33 = vmax.f32 %v1249_v24, %v1394_v25  ;;  %v1251_v34 = vmax.f32 %v962_v31, %v1107_v32  ;;  %v1396_v35 = vld [vmem:[#allocation2 + $0xda] sm:$0x1]  ;;  %v1108_v37 = vld [vmem:[#allocation2 + $0xdb] sm:$0x1]  ;;  %1681 = vst.msk [vmem:[#allocation3 + $0x5d] sm:$0x1] %vm27_vm0, %v1537_v28 }
 0x1be   :  { %v963_v36 = vld [vmem:[#allocation2 + $0xda] sm:$0x1]  ;;  %v1539_v38 = vmax.f32 %v1250_v29, %v1395_v30  ;;  %v1397_v40 = vld [vmem:[#allocation2 + $0xdc] sm:$0x1]  ;;  %v1109_v42 = vld [vmem:[#allocation2 + $0xdd] sm:$0x1] }
 0x1bf   :  { %v1252_v39 = vmax.f32 %v963_v36, %v1108_v37  ;;  %v964_v41 = vld [vmem:[#allocation2 + $0xdc] sm:$0x1]  ;;  %1682 = vst.msk [vmem:[#allocation3 + $0x5e] sm:$0x1] %vm27_vm0, %v1538_v33  ;;  %v1540_v43 = vmax.f32 %v1251_v34, %v1396_v35  ;;  %v1398_v45 = vld [vmem:[#allocation2 + $0xde] sm:$0x1] }
 0x1c0   :  { %v1253_v44 = vmax.f32 %v964_v41, %v1109_v42  ;;  %v965_v46 = vld [vmem:[#allocation2 + $0xde] sm:$0x1]  ;;  %v1110_v47 = vld [vmem:[#allocation2 + $0xdf] sm:$0x1]  ;;  %1683 = vst.msk [vmem:[#allocation3 + $0x5f] sm:$0x1] %vm27_vm0, %v1539_v38 }
 0x1c1   :  { %v1541_v48 = vmax.f32 %v1252_v39, %v1397_v40  ;;  %v1254_v49 = vmax.f32 %v965_v46, %v1110_v47  ;;  %v1399_v50 = vld [vmem:[#allocation2 + $0xe0] sm:$0x1]  ;;  %v1111_v52 = vld [vmem:[#allocation2 + $0xe1] sm:$0x1]  ;;  %1684 = vst.msk [vmem:[#allocation3 + $0x60] sm:$0x1] %vm27_vm0, %v1540_v43 }
 0x1c2   :  { %v966_v51 = vld [vmem:[#allocation2 + $0xe0] sm:$0x1]  ;;  %v1542_v53 = vmax.f32 %v1253_v44, %v1398_v45  ;;  %v1400_v55 = vld [vmem:[#allocation2 + $0xe2] sm:$0x1]  ;;  %v1112_v57 = vld [vmem:[#allocation2 + $0xe3] sm:$0x1] }
 0x1c3   :  { %v1255_v54 = vmax.f32 %v966_v51, %v1111_v52  ;;  %v967_v56 = vld [vmem:[#allocation2 + $0xe2] sm:$0x1]  ;;  %1685 = vst.msk [vmem:[#allocation3 + $0x61] sm:$0x1] %vm27_vm0, %v1541_v48  ;;  %v1543_v58 = vmax.f32 %v1254_v49, %v1399_v50  ;;  %v1401_v60 = vld [vmem:[#allocation2 + $0xe4] sm:$0x1] }
 0x1c4   :  { %v1256_v59 = vmax.f32 %v967_v56, %v1112_v57  ;;  %v968_v61 = vld [vmem:[#allocation2 + $0xe4] sm:$0x1]  ;;  %v1113_v62 = vld [vmem:[#allocation2 + $0xe5] sm:$0x1]  ;;  %1686 = vst.msk [vmem:[#allocation3 + $0x62] sm:$0x1] %vm27_vm0, %v1542_v53 }
 0x1c5   :  { %v1544_v63 = vmax.f32 %v1255_v54, %v1400_v55  ;;  %v1257_v0 = vmax.f32 %v968_v61, %v1113_v62  ;;  %v1402_v1 = vld [vmem:[#allocation2 + $0xe6] sm:$0x1]  ;;  %v1114_v3 = vld [vmem:[#allocation2 + $0xe7] sm:$0x1]  ;;  %1687 = vst.msk [vmem:[#allocation3 + $0x63] sm:$0x1] %vm27_vm0, %v1543_v58 }
 0x1c6   :  { %v969_v2 = vld [vmem:[#allocation2 + $0xe6] sm:$0x1]  ;;  %v1545_v4 = vmax.f32 %v1256_v59, %v1401_v60  ;;  %v1403_v6 = vld [vmem:[#allocation2 + $0xe8] sm:$0x1]  ;;  %v970_v7 = vld [vmem:[#allocation2 + $0xea] sm:$0x1] }
 0x1c7   :  { %v1258_v5 = vmax.f32 %v969_v2, %v1114_v3  ;;  %v1115_v8 = vld [vmem:[#allocation2 + $0xeb] sm:$0x1]  ;;  %1688 = vst.msk [vmem:[#allocation3 + $0x64] sm:$0x1] %vm27_vm0, %v1544_v63  ;;  %v1546_v9 = vmax.f32 %v1257_v0, %v1402_v1  ;;  %v1404_v11 = vld [vmem:[#allocation2 + $0xec] sm:$0x1] }
 0x1c8   :  { %v1259_v10 = vmax.f32 %v970_v7, %v1115_v8  ;;  %v971_v12 = vld [vmem:[#allocation2 + $0xec] sm:$0x1]  ;;  %v1116_v13 = vld [vmem:[#allocation2 + $0xed] sm:$0x1]  ;;  %1689 = vst.msk [vmem:[#allocation3 + $0x65] sm:$0x1] %vm27_vm0, %v1545_v4 }
 0x1c9   :  { %v1547_v14 = vmax.f32 %v1258_v5, %v1403_v6  ;;  %v1260_v15 = vmax.f32 %v971_v12, %v1116_v13  ;;  %v1405_v16 = vld [vmem:[#allocation2 + $0xee] sm:$0x1]  ;;  %v1117_v18 = vld [vmem:[#allocation2 + $0xef] sm:$0x1]  ;;  %1690 = vst.msk [vmem:[#allocation3 + $0x66] sm:$0x1] %vm27_vm0, %v1546_v9 }
 0x1ca   :  { %v972_v17 = vld [vmem:[#allocation2 + $0xee] sm:$0x1]  ;;  %v1548_v19 = vmax.f32 %v1259_v10, %v1404_v11  ;;  %v1406_v21 = vld [vmem:[#allocation2 + $0xf0] sm:$0x1]  ;;  %v1118_v23 = vld [vmem:[#allocation2 + $0xf1] sm:$0x1] }
 0x1cb   :  { %v1261_v20 = vmax.f32 %v972_v17, %v1117_v18  ;;  %v973_v22 = vld [vmem:[#allocation2 + $0xf0] sm:$0x1]  ;;  %1691 = vst.msk [vmem:[#allocation3 + $0x67] sm:$0x1] %vm27_vm0, %v1547_v14  ;;  %v1549_v24 = vmax.f32 %v1260_v15, %v1405_v16  ;;  %v1407_v26 = vld [vmem:[#allocation2 + $0xf2] sm:$0x1] }
 0x1cc   :  { %v1262_v25 = vmax.f32 %v973_v22, %v1118_v23  ;;  %v974_v27 = vld [vmem:[#allocation2 + $0xf2] sm:$0x1]  ;;  %v1119_v28 = vld [vmem:[#allocation2 + $0xf3] sm:$0x1]  ;;  %1692 = vst.msk [vmem:[#allocation3 + $0x68] sm:$0x1] %vm27_vm0, %v1548_v19 }
 0x1cd   :  { %v1550_v29 = vmax.f32 %v1261_v20, %v1406_v21  ;;  %v1263_v30 = vmax.f32 %v974_v27, %v1119_v28  ;;  %v1408_v31 = vld [vmem:[#allocation2 + $0xf4] sm:$0x1]  ;;  %v1120_v33 = vld [vmem:[#allocation2 + $0xf5] sm:$0x1]  ;;  %1693 = vst.msk [vmem:[#allocation3 + $0x69] sm:$0x1] %vm27_vm0, %v1549_v24 }
 0x1ce   :  { %v975_v32 = vld [vmem:[#allocation2 + $0xf4] sm:$0x1]  ;;  %v1551_v34 = vmax.f32 %v1262_v25, %v1407_v26  ;;  %v1409_v36 = vld [vmem:[#allocation2 + $0xf6] sm:$0x1]  ;;  %v1121_v38 = vld [vmem:[#allocation2 + $0xf7] sm:$0x1] }
 0x1cf   :  { %v1264_v35 = vmax.f32 %v975_v32, %v1120_v33  ;;  %v976_v37 = vld [vmem:[#allocation2 + $0xf6] sm:$0x1]  ;;  %1694 = vst.msk [vmem:[#allocation3 + $0x6a] sm:$0x1] %vm27_vm0, %v1550_v29  ;;  %v1552_v39 = vmax.f32 %v1263_v30, %v1408_v31  ;;  %v1410_v41 = vld [vmem:[#allocation2 + $0xf8] sm:$0x1] }
 0x1d0   :  { %v1265_v40 = vmax.f32 %v976_v37, %v1121_v38  ;;  %v977_v42 = vld [vmem:[#allocation2 + $0xf8] sm:$0x1]  ;;  %v1122_v43 = vld [vmem:[#allocation2 + $0xf9] sm:$0x1]  ;;  %1695 = vst.msk [vmem:[#allocation3 + $0x6b] sm:$0x1] %vm27_vm0, %v1551_v34 }
 0x1d1   :  { %v1553_v44 = vmax.f32 %v1264_v35, %v1409_v36  ;;  %v1266_v45 = vmax.f32 %v977_v42, %v1122_v43  ;;  %v1411_v46 = vld [vmem:[#allocation2 + $0xfa] sm:$0x1]  ;;  %v978_v47 = vld [vmem:[#allocation2 + $0xfc] sm:$0x1]  ;;  %v1123_v48 = vld [vmem:[#allocation2 + $0xfd] sm:$0x1] }
 0x1d2   :  { %1696 = vst.msk [vmem:[#allocation3 + $0x6c] sm:$0x1] %vm27_vm0, %v1552_v39  ;;  %v1554_v49 = vmax.f32 %v1265_v40, %v1410_v41  ;;  %v1267_v50 = vmax.f32 %v978_v47, %v1123_v48  ;;  %v1412_v51 = vld [vmem:[#allocation2 + $0xfe] sm:$0x1]  ;;  %v1124_v53 = vld [vmem:[#allocation2 + $0xff] sm:$0x1] }
 0x1d3   :  { %v979_v52 = vld [vmem:[#allocation2 + $0xfe] sm:$0x1]  ;;  %1697 = vst.msk [vmem:[#allocation3 + $0x6d] sm:$0x1] %vm27_vm0, %v1553_v44  ;;  %v1555_v54 = vmax.f32 %v1266_v45, %v1411_v46  ;;  %v1413_v56 = vld [vmem:[#allocation2 + $0x100] sm:$0x1] }
 0x1d4   :  { %v1268_v55 = vmax.f32 %v979_v52, %v1124_v53  ;;  %v980_v57 = vld [vmem:[#allocation2 + $0x100] sm:$0x1]  ;;  %v1125_v58 = vld [vmem:[#allocation2 + $0x101] sm:$0x1]  ;;  %1698 = vst.msk [vmem:[#allocation3 + $0x6e] sm:$0x1] %vm27_vm0, %v1554_v49  ;;  %v1556_v59 = vmax.f32 %v1267_v50, %v1412_v51 }
 0x1d5   :  { %v1269_v60 = vmax.f32 %v980_v57, %v1125_v58  ;;  %v1414_v61 = vld [vmem:[#allocation2 + $0x102] sm:$0x1]  ;;  %v1126_v63 = vld [vmem:[#allocation2 + $0x103] sm:$0x1]  ;;  %1699 = vst.msk [vmem:[#allocation3 + $0x6f] sm:$0x1] %vm27_vm0, %v1555_v54 }
 0x1d6   :  { %v981_v62 = vld [vmem:[#allocation2 + $0x102] sm:$0x1]  ;;  %v1557_v0 = vmax.f32 %v1268_v55, %v1413_v56  ;;  %v1415_v2 = vld [vmem:[#allocation2 + $0x104] sm:$0x1]  ;;  %v1127_v4 = vld [vmem:[#allocation2 + $0x105] sm:$0x1] }
 0x1d7   :  { %v1270_v1 = vmax.f32 %v981_v62, %v1126_v63  ;;  %v982_v3 = vld [vmem:[#allocation2 + $0x104] sm:$0x1]  ;;  %1700 = vst.msk [vmem:[#allocation3 + $0x70] sm:$0x1] %vm27_vm0, %v1556_v59  ;;  %v1558_v5 = vmax.f32 %v1269_v60, %v1414_v61  ;;  %v1416_v7 = vld [vmem:[#allocation2 + $0x106] sm:$0x1] }
 0x1d8   :  { %v1271_v6 = vmax.f32 %v982_v3, %v1127_v4  ;;  %v983_v8 = vld [vmem:[#allocation2 + $0x106] sm:$0x1]  ;;  %v1128_v9 = vld [vmem:[#allocation2 + $0x107] sm:$0x1]  ;;  %1701 = vst.msk [vmem:[#allocation3 + $0x71] sm:$0x1] %vm27_vm0, %v1557_v0 }
 0x1d9   :  { %v1559_v10 = vmax.f32 %v1270_v1, %v1415_v2  ;;  %v1272_v11 = vmax.f32 %v983_v8, %v1128_v9  ;;  %v1417_v12 = vld [vmem:[#allocation2 + $0x108] sm:$0x1]  ;;  %v1129_v14 = vld [vmem:[#allocation2 + $0x109] sm:$0x1]  ;;  %1702 = vst.msk [vmem:[#allocation3 + $0x72] sm:$0x1] %vm27_vm0, %v1558_v5 }
 0x1da   :  { %v984_v13 = vld [vmem:[#allocation2 + $0x108] sm:$0x1]  ;;  %v1560_v15 = vmax.f32 %v1271_v6, %v1416_v7  ;;  %v1418_v17 = vld [vmem:[#allocation2 + $0x10a] sm:$0x1]  ;;  %v1130_v19 = vld [vmem:[#allocation2 + $0x10b] sm:$0x1] }
 0x1db   :  { %v1273_v16 = vmax.f32 %v984_v13, %v1129_v14  ;;  %v985_v18 = vld [vmem:[#allocation2 + $0x10a] sm:$0x1]  ;;  %1703 = vst.msk [vmem:[#allocation3 + $0x73] sm:$0x1] %vm27_vm0, %v1559_v10  ;;  %v1561_v20 = vmax.f32 %v1272_v11, %v1417_v12  ;;  %v1419_v22 = vld [vmem:[#allocation2 + $0x10c] sm:$0x1] }
 0x1dc   :  { %v1274_v21 = vmax.f32 %v985_v18, %v1130_v19  ;;  %v986_v23 = vld [vmem:[#allocation2 + $0x10e] sm:$0x1]  ;;  %v1131_v24 = vld [vmem:[#allocation2 + $0x10f] sm:$0x1]  ;;  %1704 = vst.msk [vmem:[#allocation3 + $0x74] sm:$0x1] %vm27_vm0, %v1560_v15 }
 0x1dd   :  { %v1562_v25 = vmax.f32 %v1273_v16, %v1418_v17  ;;  %v1275_v26 = vmax.f32 %v986_v23, %v1131_v24  ;;  %v1420_v27 = vld [vmem:[#allocation2 + $0x110] sm:$0x1]  ;;  %v1132_v29 = vld [vmem:[#allocation2 + $0x111] sm:$0x1]  ;;  %1705 = vst.msk [vmem:[#allocation3 + $0x75] sm:$0x1] %vm27_vm0, %v1561_v20 }
 0x1de   :  { %v987_v28 = vld [vmem:[#allocation2 + $0x110] sm:$0x1]  ;;  %v1563_v30 = vmax.f32 %v1274_v21, %v1419_v22  ;;  %v1421_v32 = vld [vmem:[#allocation2 + $0x112] sm:$0x1]  ;;  %v1133_v34 = vld [vmem:[#allocation2 + $0x113] sm:$0x1] }
 0x1df   :  { %v1276_v31 = vmax.f32 %v987_v28, %v1132_v29  ;;  %v988_v33 = vld [vmem:[#allocation2 + $0x112] sm:$0x1]  ;;  %1706 = vst.msk [vmem:[#allocation3 + $0x76] sm:$0x1] %vm27_vm0, %v1562_v25  ;;  %v1564_v35 = vmax.f32 %v1275_v26, %v1420_v27  ;;  %v1422_v37 = vld [vmem:[#allocation2 + $0x114] sm:$0x1] }
 0x1e0   :  { %v1277_v36 = vmax.f32 %v988_v33, %v1133_v34  ;;  %v989_v38 = vld [vmem:[#allocation2 + $0x114] sm:$0x1]  ;;  %v1134_v39 = vld [vmem:[#allocation2 + $0x115] sm:$0x1]  ;;  %1707 = vst.msk [vmem:[#allocation3 + $0x77] sm:$0x1] %vm27_vm0, %v1563_v30 }
 0x1e1   :  { %v1565_v40 = vmax.f32 %v1276_v31, %v1421_v32  ;;  %v1278_v41 = vmax.f32 %v989_v38, %v1134_v39  ;;  %v1423_v42 = vld [vmem:[#allocation2 + $0x116] sm:$0x1]  ;;  %v1135_v44 = vld [vmem:[#allocation2 + $0x117] sm:$0x1]  ;;  %1708 = vst.msk [vmem:[#allocation3 + $0x78] sm:$0x1] %vm27_vm0, %v1564_v35 }
 0x1e2   :  { %v990_v43 = vld [vmem:[#allocation2 + $0x116] sm:$0x1]  ;;  %v1566_v45 = vmax.f32 %v1277_v36, %v1422_v37  ;;  %v1424_v47 = vld [vmem:[#allocation2 + $0x118] sm:$0x1]  ;;  %v1136_v49 = vld [vmem:[#allocation2 + $0x119] sm:$0x1] }
 0x1e3   :  { %v1279_v46 = vmax.f32 %v990_v43, %v1135_v44  ;;  %v991_v48 = vld [vmem:[#allocation2 + $0x118] sm:$0x1]  ;;  %1709 = vst.msk [vmem:[#allocation3 + $0x79] sm:$0x1] %vm27_vm0, %v1565_v40  ;;  %v1567_v50 = vmax.f32 %v1278_v41, %v1423_v42  ;;  %v1425_v52 = vld [vmem:[#allocation2 + $0x11a] sm:$0x1] }
 0x1e4   :  { %v1280_v51 = vmax.f32 %v991_v48, %v1136_v49  ;;  %v992_v53 = vld [vmem:[#allocation2 + $0x11a] sm:$0x1]  ;;  %v1137_v54 = vld [vmem:[#allocation2 + $0x11b] sm:$0x1]  ;;  %1710 = vst.msk [vmem:[#allocation3 + $0x7a] sm:$0x1] %vm27_vm0, %v1566_v45 }
 0x1e5   :  { %v1568_v55 = vmax.f32 %v1279_v46, %v1424_v47  ;;  %v1281_v56 = vmax.f32 %v992_v53, %v1137_v54  ;;  %v1426_v57 = vld [vmem:[#allocation2 + $0x11c] sm:$0x1]  ;;  %v1138_v59 = vld [vmem:[#allocation2 + $0x11d] sm:$0x1]  ;;  %1711 = vst.msk [vmem:[#allocation3 + $0x7b] sm:$0x1] %vm27_vm0, %v1567_v50 }
 0x1e6   :  { %v993_v58 = vld [vmem:[#allocation2 + $0x11c] sm:$0x1]  ;;  %v1569_v60 = vmax.f32 %v1280_v51, %v1425_v52  ;;  %v1427_v62 = vld [vmem:[#allocation2 + $0x11e] sm:$0x1]  ;;  %v994_v63 = vld [vmem:[#allocation2 + $0x120] sm:$0x1] }
 0x1e7   :  { %v1282_v61 = vmax.f32 %v993_v58, %v1138_v59  ;;  %v1139_v0 = vld [vmem:[#allocation2 + $0x121] sm:$0x1]  ;;  %1712 = vst.msk [vmem:[#allocation3 + $0x7c] sm:$0x1] %vm27_vm0, %v1568_v55  ;;  %v1570_v1 = vmax.f32 %v1281_v56, %v1426_v57  ;;  %v1428_v3 = vld [vmem:[#allocation2 + $0x122] sm:$0x1] }
 0x1e8   :  { %v1283_v2 = vmax.f32 %v994_v63, %v1139_v0  ;;  %v995_v4 = vld [vmem:[#allocation2 + $0x122] sm:$0x1]  ;;  %v1140_v5 = vld [vmem:[#allocation2 + $0x123] sm:$0x1]  ;;  %1713 = vst.msk [vmem:[#allocation3 + $0x7d] sm:$0x1] %vm27_vm0, %v1569_v60 }
 0x1e9   :  { %v1571_v6 = vmax.f32 %v1282_v61, %v1427_v62  ;;  %v1284_v7 = vmax.f32 %v995_v4, %v1140_v5  ;;  %v1429_v8 = vld [vmem:[#allocation2 + $0x124] sm:$0x1]  ;;  %v1141_v10 = vld [vmem:[#allocation2 + $0x125] sm:$0x1]  ;;  %1714 = vst.msk [vmem:[#allocation3 + $0x7e] sm:$0x1] %vm27_vm0, %v1570_v1 }
 0x1ea   :  { %v996_v9 = vld [vmem:[#allocation2 + $0x124] sm:$0x1]  ;;  %v1572_v11 = vmax.f32 %v1283_v2, %v1428_v3  ;;  %v1430_v13 = vld [vmem:[#allocation2 + $0x126] sm:$0x1]  ;;  %v1142_v15 = vld [vmem:[#allocation2 + $0x127] sm:$0x1] }
 0x1eb   :  { %v1285_v12 = vmax.f32 %v996_v9, %v1141_v10  ;;  %v997_v14 = vld [vmem:[#allocation2 + $0x126] sm:$0x1]  ;;  %1715 = vst.msk [vmem:[#allocation3 + $0x7f] sm:$0x1] %vm27_vm0, %v1571_v6  ;;  %v1573_v16 = vmax.f32 %v1284_v7, %v1429_v8  ;;  %v1431_v18 = vld [vmem:[#allocation2 + $0x128] sm:$0x1] }
 0x1ec   :  { %v1286_v17 = vmax.f32 %v997_v14, %v1142_v15  ;;  %v998_v19 = vld [vmem:[#allocation2 + $0x128] sm:$0x1]  ;;  %v1143_v20 = vld [vmem:[#allocation2 + $0x129] sm:$0x1]  ;;  %1716 = vst.msk [vmem:[#allocation3 + $0x80] sm:$0x1] %vm27_vm0, %v1572_v11 }
 0x1ed   :  { %v1574_v21 = vmax.f32 %v1285_v12, %v1430_v13  ;;  %v1287_v22 = vmax.f32 %v998_v19, %v1143_v20  ;;  %v1432_v23 = vld [vmem:[#allocation2 + $0x12a] sm:$0x1]  ;;  %v1144_v25 = vld [vmem:[#allocation2 + $0x12b] sm:$0x1]  ;;  %1717 = vst.msk [vmem:[#allocation3 + $0x81] sm:$0x1] %vm27_vm0, %v1573_v16 }
 0x1ee   :  { %v999_v24 = vld [vmem:[#allocation2 + $0x12a] sm:$0x1]  ;;  %v1575_v26 = vmax.f32 %v1286_v17, %v1431_v18  ;;  %v1433_v28 = vld [vmem:[#allocation2 + $0x12c] sm:$0x1]  ;;  %v1145_v30 = vld [vmem:[#allocation2 + $0x12d] sm:$0x1] }
 0x1ef   :  { %v1288_v27 = vmax.f32 %v999_v24, %v1144_v25  ;;  %v1000_v29 = vld [vmem:[#allocation2 + $0x12c] sm:$0x1]  ;;  %1718 = vst.msk [vmem:[#allocation3 + $0x82] sm:$0x1] %vm27_vm0, %v1574_v21  ;;  %v1576_v31 = vmax.f32 %v1287_v22, %v1432_v23  ;;  %v1434_v33 = vld [vmem:[#allocation2 + $0x12e] sm:$0x1] }
 0x1f0   :  { %v1289_v32 = vmax.f32 %v1000_v29, %v1145_v30  ;;  %v1001_v34 = vld [vmem:[#allocation2 + $0x12e] sm:$0x1]  ;;  %v1146_v35 = vld [vmem:[#allocation2 + $0x12f] sm:$0x1]  ;;  %1719 = vst.msk [vmem:[#allocation3 + $0x83] sm:$0x1] %vm27_vm0, %v1575_v26 }
 0x1f1   :  { %v1577_v36 = vmax.f32 %v1288_v27, %v1433_v28  ;;  %v1290_v37 = vmax.f32 %v1001_v34, %v1146_v35  ;;  %v1435_v38 = vld [vmem:[#allocation2 + $0x130] sm:$0x1]  ;;  %1720 = vst.msk [vmem:[#allocation3 + $0x84] sm:$0x1] %vm27_vm0, %v1576_v31  ;;  %v1732_v41 = vld [vmem:[#allocation3] sm:$0x1] }
 0x1f2   :  { %v1578_v39 = vmax.f32 %v1289_v32, %v1434_v33  ;;  %v1797_v42 = vld [vmem:[#allocation3 + $0x8] sm:$0x1]  ;;  %v1926_v44 = vld [vmem:[#allocation3 + $0x10] sm:$0x1]  ;;  %v1733_v45 = vld [vmem:[#allocation3 + $0x1] sm:$0x1] }
 0x1f3   :  { %1721 = vst.msk [vmem:[#allocation3 + $0x85] sm:$0x1] %vm27_vm0, %v1577_v36  ;;  %v1579_v40 = vmax.f32 %v1290_v37, %v1435_v38  ;;  %v1861_v43 = vmax.f32 %v1732_v41, %v1797_v42  ;;  %v1798_v46 = vld [vmem:[#allocation3 + $0x9] sm:$0x1]  ;;  %v1927_v48 = vld [vmem:[#allocation3 + $0x11] sm:$0x1] }
 0x1f4   :  { %1722 = vst.msk [vmem:[#allocation3 + $0x86] sm:$0x1] %vm27_vm0, %v1578_v39  ;;  %v1862_v47 = vmax.f32 %v1733_v45, %v1798_v46  ;;  %v1734_v49 = vld [vmem:[#allocation3 + $0x2] sm:$0x1]  ;;  %v1799_v50 = vld [vmem:[#allocation3 + $0xa] sm:$0x1] }
 0x1f5   :  { %1723 = vst.msk [vmem:[#allocation3 + $0x87] sm:$0x1] %vm27_vm0, %v1579_v40  ;;  %v1990_v51 = vmax.f32 %v1861_v43, %v1926_v44  ;;  %v1863_v52 = vmax.f32 %v1734_v49, %v1799_v50  ;;  %v1928_v53 = vld [vmem:[#allocation3 + $0x12] sm:$0x1]  ;;  %v1735_v54 = vld [vmem:[#allocation3 + $0x3] sm:$0x1] }
 0x1f6   :  { %v1800_v55 = vld [vmem:[#allocation3 + $0xb] sm:$0x1]  ;;  %v1991_v56 = vmax.f32 %v1862_v47, %v1927_v48  ;;  %v1929_v58 = vld [vmem:[#allocation3 + $0x13] sm:$0x1]  ;;  %v1736_v59 = vld [vmem:[#allocation3 + $0x4] sm:$0x1] }
 0x1f7   :  { %v1864_v57 = vmax.f32 %v1735_v54, %v1800_v55  ;;  %v1801_v60 = vld [vmem:[#allocation3 + $0xc] sm:$0x1]  ;;  %2054 = vst.msk [vmem:[#allocation7] sm:$0x1] %vm27_vm0, %v1990_v51  ;;  %v1992_v61 = vmax.f32 %v1863_v52, %v1928_v53  ;;  %v1930_v63 = vld [vmem:[#allocation3 + $0x14] sm:$0x1] }
 0x1f8   :  { %v1865_v62 = vmax.f32 %v1736_v59, %v1801_v60  ;;  %v1737_v0 = vld [vmem:[#allocation3 + $0x5] sm:$0x1]  ;;  %v1802_v1 = vld [vmem:[#allocation3 + $0xd] sm:$0x1]  ;;  %2055 = vst.msk [vmem:[#allocation7 + $0x1] sm:$0x1] %vm27_vm0, %v1991_v56 }
 0x1f9   :  { %v1993_v2 = vmax.f32 %v1864_v57, %v1929_v58  ;;  %v1866_v3 = vmax.f32 %v1737_v0, %v1802_v1  ;;  %v1931_v4 = vld [vmem:[#allocation3 + $0x15] sm:$0x1]  ;;  %v1738_v5 = vld [vmem:[#allocation3 + $0x6] sm:$0x1]  ;;  %v1803_v6 = vld [vmem:[#allocation3 + $0xe] sm:$0x1] }
 0x1fa   :  { %2056 = vst.msk [vmem:[#allocation7 + $0x2] sm:$0x1] %vm27_vm0, %v1992_v61  ;;  %v1994_v7 = vmax.f32 %v1865_v62, %v1930_v63  ;;  %v1867_v8 = vmax.f32 %v1738_v5, %v1803_v6  ;;  %v1932_v9 = vld [vmem:[#allocation3 + $0x16] sm:$0x1]  ;;  %v1739_v10 = vld [vmem:[#allocation3 + $0x7] sm:$0x1] }
 0x1fb   :  { %v1804_v11 = vld [vmem:[#allocation3 + $0xf] sm:$0x1]  ;;  %2057 = vst.msk [vmem:[#allocation7 + $0x3] sm:$0x1] %vm27_vm0, %v1993_v2  ;;  %v1995_v12 = vmax.f32 %v1866_v3, %v1931_v4  ;;  %v1933_v14 = vld [vmem:[#allocation3 + $0x17] sm:$0x1] }
 0x1fc   :  { %v1868_v13 = vmax.f32 %v1739_v10, %v1804_v11  ;;  %v1740_v15 = vld [vmem:[#allocation3 + $0x10] sm:$0x1]  ;;  %v1805_v16 = vld [vmem:[#allocation3 + $0x18] sm:$0x1]  ;;  %2058 = vst.msk [vmem:[#allocation7 + $0x4] sm:$0x1] %vm27_vm0, %v1994_v7  ;;  %v1996_v17 = vmax.f32 %v1867_v8, %v1932_v9 }
 0x1fd   :  { %v1869_v18 = vmax.f32 %v1740_v15, %v1805_v16  ;;  %v1934_v19 = vld [vmem:[#allocation3 + $0x20] sm:$0x1]  ;;  %v1741_v20 = vld [vmem:[#allocation3 + $0x11] sm:$0x1]  ;;  %v1806_v21 = vld [vmem:[#allocation3 + $0x19] sm:$0x1] }
 0x1fe   :  { %2059 = vst.msk [vmem:[#allocation7 + $0x5] sm:$0x1] %vm27_vm0, %v1995_v12  ;;  %v1997_v22 = vmax.f32 %v1868_v13, %v1933_v14  ;;  %v1870_v23 = vmax.f32 %v1741_v20, %v1806_v21  ;;  %v1935_v24 = vld [vmem:[#allocation3 + $0x21] sm:$0x1]  ;;  %v1742_v25 = vld [vmem:[#allocation3 + $0x12] sm:$0x1] }
 0x1ff   :  { %v1807_v26 = vld [vmem:[#allocation3 + $0x1a] sm:$0x1]  ;;  %2060 = vst.msk [vmem:[#allocation7 + $0x6] sm:$0x1] %vm27_vm0, %v1996_v17  ;;  %v1998_v27 = vmax.f32 %v1869_v18, %v1934_v19  ;;  %v1936_v29 = vld [vmem:[#allocation3 + $0x22] sm:$0x1] }
 0x200   :  { %v1871_v28 = vmax.f32 %v1742_v25, %v1807_v26  ;;  %v1743_v30 = vld [vmem:[#allocation3 + $0x13] sm:$0x1]  ;;  %v1808_v31 = vld [vmem:[#allocation3 + $0x1b] sm:$0x1]  ;;  %2061 = vst.msk [vmem:[#allocation7 + $0x7] sm:$0x1] %vm27_vm0, %v1997_v22  ;;  %v1999_v32 = vmax.f32 %v1870_v23, %v1935_v24 }
 0x201   :  { %v1872_v33 = vmax.f32 %v1743_v30, %v1808_v31  ;;  %v1937_v34 = vld [vmem:[#allocation3 + $0x23] sm:$0x1]  ;;  %v1744_v35 = vld [vmem:[#allocation3 + $0x14] sm:$0x1]  ;;  %v1809_v36 = vld [vmem:[#allocation3 + $0x1c] sm:$0x1] }
 0x202   :  { %2062 = vst.msk [vmem:[#allocation7 + $0x8] sm:$0x1] %vm27_vm0, %v1998_v27  ;;  %v2000_v37 = vmax.f32 %v1871_v28, %v1936_v29  ;;  %v1873_v38 = vmax.f32 %v1744_v35, %v1809_v36  ;;  %v1938_v39 = vld [vmem:[#allocation3 + $0x24] sm:$0x1]  ;;  %v1745_v40 = vld [vmem:[#allocation3 + $0x15] sm:$0x1] }
 0x203   :  { %v1810_v41 = vld [vmem:[#allocation3 + $0x1d] sm:$0x1]  ;;  %2063 = vst.msk [vmem:[#allocation7 + $0x9] sm:$0x1] %vm27_vm0, %v1999_v32  ;;  %v2001_v42 = vmax.f32 %v1872_v33, %v1937_v34  ;;  %v1939_v44 = vld [vmem:[#allocation3 + $0x25] sm:$0x1] }
 0x204   :  { %v1874_v43 = vmax.f32 %v1745_v40, %v1810_v41  ;;  %v1746_v45 = vld [vmem:[#allocation3 + $0x16] sm:$0x1]  ;;  %v1811_v46 = vld [vmem:[#allocation3 + $0x1e] sm:$0x1]  ;;  %2064 = vst.msk [vmem:[#allocation7 + $0xa] sm:$0x1] %vm27_vm0, %v2000_v37  ;;  %v2002_v47 = vmax.f32 %v1873_v38, %v1938_v39 }
 0x205   :  { %v1875_v48 = vmax.f32 %v1746_v45, %v1811_v46  ;;  %v1940_v49 = vld [vmem:[#allocation3 + $0x26] sm:$0x1]  ;;  %v1747_v50 = vld [vmem:[#allocation3 + $0x17] sm:$0x1]  ;;  %v1812_v51 = vld [vmem:[#allocation3 + $0x1f] sm:$0x1] }
 0x206   :  { %2065 = vst.msk [vmem:[#allocation7 + $0xb] sm:$0x1] %vm27_vm0, %v2001_v42  ;;  %v2003_v52 = vmax.f32 %v1874_v43, %v1939_v44  ;;  %v1876_v53 = vmax.f32 %v1747_v50, %v1812_v51  ;;  %v1941_v54 = vld [vmem:[#allocation3 + $0x27] sm:$0x1]  ;;  %v1748_v55 = vld [vmem:[#allocation3 + $0x20] sm:$0x1] }
 0x207   :  { %v1813_v56 = vld [vmem:[#allocation3 + $0x28] sm:$0x1]  ;;  %2066 = vst.msk [vmem:[#allocation7 + $0xc] sm:$0x1] %vm27_vm0, %v2002_v47  ;;  %v2004_v57 = vmax.f32 %v1875_v48, %v1940_v49  ;;  %v1942_v59 = vld [vmem:[#allocation3 + $0x30] sm:$0x1] }
 0x208   :  { %v1877_v58 = vmax.f32 %v1748_v55, %v1813_v56  ;;  %v1749_v60 = vld [vmem:[#allocation3 + $0x21] sm:$0x1]  ;;  %v1814_v61 = vld [vmem:[#allocation3 + $0x29] sm:$0x1]  ;;  %2067 = vst.msk [vmem:[#allocation7 + $0xd] sm:$0x1] %vm27_vm0, %v2003_v52  ;;  %v2005_v62 = vmax.f32 %v1876_v53, %v1941_v54 }
 0x209   :  { %v1878_v63 = vmax.f32 %v1749_v60, %v1814_v61  ;;  %v1943_v0 = vld [vmem:[#allocation3 + $0x31] sm:$0x1]  ;;  %v1750_v1 = vld [vmem:[#allocation3 + $0x22] sm:$0x1]  ;;  %v1815_v2 = vld [vmem:[#allocation3 + $0x2a] sm:$0x1] }
 0x20a   :  { %2068 = vst.msk [vmem:[#allocation7 + $0xe] sm:$0x1] %vm27_vm0, %v2004_v57  ;;  %v2006_v3 = vmax.f32 %v1877_v58, %v1942_v59  ;;  %v1879_v4 = vmax.f32 %v1750_v1, %v1815_v2  ;;  %v1944_v5 = vld [vmem:[#allocation3 + $0x32] sm:$0x1]  ;;  %v1751_v6 = vld [vmem:[#allocation3 + $0x23] sm:$0x1] }
 0x20b   :  { %v1816_v7 = vld [vmem:[#allocation3 + $0x2b] sm:$0x1]  ;;  %2069 = vst.msk [vmem:[#allocation7 + $0xf] sm:$0x1] %vm27_vm0, %v2005_v62  ;;  %v2007_v8 = vmax.f32 %v1878_v63, %v1943_v0  ;;  %v1945_v10 = vld [vmem:[#allocation3 + $0x33] sm:$0x1] }
 0x20c   :  { %v1880_v9 = vmax.f32 %v1751_v6, %v1816_v7  ;;  %v1752_v11 = vld [vmem:[#allocation3 + $0x24] sm:$0x1]  ;;  %v1817_v12 = vld [vmem:[#allocation3 + $0x2c] sm:$0x1]  ;;  %2070 = vst.msk [vmem:[#allocation7 + $0x10] sm:$0x1] %vm27_vm0, %v2006_v3  ;;  %v2008_v13 = vmax.f32 %v1879_v4, %v1944_v5 }
 0x20d   :  { %v1881_v14 = vmax.f32 %v1752_v11, %v1817_v12  ;;  %v1946_v15 = vld [vmem:[#allocation3 + $0x34] sm:$0x1]  ;;  %v1753_v16 = vld [vmem:[#allocation3 + $0x25] sm:$0x1]  ;;  %v1818_v17 = vld [vmem:[#allocation3 + $0x2d] sm:$0x1] }
 0x20e   :  { %2071 = vst.msk [vmem:[#allocation7 + $0x11] sm:$0x1] %vm27_vm0, %v2007_v8  ;;  %v2009_v18 = vmax.f32 %v1880_v9, %v1945_v10  ;;  %v1882_v19 = vmax.f32 %v1753_v16, %v1818_v17  ;;  %v1947_v20 = vld [vmem:[#allocation3 + $0x35] sm:$0x1]  ;;  %v1754_v21 = vld [vmem:[#allocation3 + $0x26] sm:$0x1] }
 0x20f   :  { %v1819_v22 = vld [vmem:[#allocation3 + $0x2e] sm:$0x1]  ;;  %2072 = vst.msk [vmem:[#allocation7 + $0x12] sm:$0x1] %vm27_vm0, %v2008_v13  ;;  %v2010_v23 = vmax.f32 %v1881_v14, %v1946_v15  ;;  %v1948_v25 = vld [vmem:[#allocation3 + $0x36] sm:$0x1] }
 0x210   :  { %v1883_v24 = vmax.f32 %v1754_v21, %v1819_v22  ;;  %v1755_v26 = vld [vmem:[#allocation3 + $0x27] sm:$0x1]  ;;  %v1820_v27 = vld [vmem:[#allocation3 + $0x2f] sm:$0x1]  ;;  %2073 = vst.msk [vmem:[#allocation7 + $0x13] sm:$0x1] %vm27_vm0, %v2009_v18  ;;  %v2011_v28 = vmax.f32 %v1882_v19, %v1947_v20 }
 0x211   :  { %v1884_v29 = vmax.f32 %v1755_v26, %v1820_v27  ;;  %v1949_v30 = vld [vmem:[#allocation3 + $0x37] sm:$0x1]  ;;  %v1756_v31 = vld [vmem:[#allocation3 + $0x30] sm:$0x1]  ;;  %v1821_v32 = vld [vmem:[#allocation3 + $0x38] sm:$0x1] }
 0x212   :  { %2074 = vst.msk [vmem:[#allocation7 + $0x14] sm:$0x1] %vm27_vm0, %v2010_v23  ;;  %v2012_v33 = vmax.f32 %v1883_v24, %v1948_v25  ;;  %v1885_v34 = vmax.f32 %v1756_v31, %v1821_v32  ;;  %v1950_v35 = vld [vmem:[#allocation3 + $0x40] sm:$0x1]  ;;  %v1757_v36 = vld [vmem:[#allocation3 + $0x31] sm:$0x1] }
 0x213   :  { %v1822_v37 = vld [vmem:[#allocation3 + $0x39] sm:$0x1]  ;;  %2075 = vst.msk [vmem:[#allocation7 + $0x15] sm:$0x1] %vm27_vm0, %v2011_v28  ;;  %v2013_v38 = vmax.f32 %v1884_v29, %v1949_v30  ;;  %v1951_v40 = vld [vmem:[#allocation3 + $0x41] sm:$0x1] }
 0x214   :  { %v1886_v39 = vmax.f32 %v1757_v36, %v1822_v37  ;;  %v1758_v41 = vld [vmem:[#allocation3 + $0x32] sm:$0x1]  ;;  %v1823_v42 = vld [vmem:[#allocation3 + $0x3a] sm:$0x1]  ;;  %2076 = vst.msk [vmem:[#allocation7 + $0x16] sm:$0x1] %vm27_vm0, %v2012_v33  ;;  %v2014_v43 = vmax.f32 %v1885_v34, %v1950_v35 }
 0x215   :  { %v1887_v44 = vmax.f32 %v1758_v41, %v1823_v42  ;;  %v1952_v45 = vld [vmem:[#allocation3 + $0x42] sm:$0x1]  ;;  %v1759_v46 = vld [vmem:[#allocation3 + $0x33] sm:$0x1]  ;;  %v1824_v47 = vld [vmem:[#allocation3 + $0x3b] sm:$0x1] }
 0x216   :  { %2077 = vst.msk [vmem:[#allocation7 + $0x17] sm:$0x1] %vm27_vm0, %v2013_v38  ;;  %v2015_v48 = vmax.f32 %v1886_v39, %v1951_v40  ;;  %v1888_v49 = vmax.f32 %v1759_v46, %v1824_v47  ;;  %v1953_v50 = vld [vmem:[#allocation3 + $0x43] sm:$0x1]  ;;  %v1760_v51 = vld [vmem:[#allocation3 + $0x34] sm:$0x1] }
 0x217   :  { %v1825_v52 = vld [vmem:[#allocation3 + $0x3c] sm:$0x1]  ;;  %2078 = vst.msk [vmem:[#allocation7 + $0x18] sm:$0x1] %vm27_vm0, %v2014_v43  ;;  %v2016_v53 = vmax.f32 %v1887_v44, %v1952_v45  ;;  %v1954_v55 = vld [vmem:[#allocation3 + $0x44] sm:$0x1] }
 0x218   :  { %v1889_v54 = vmax.f32 %v1760_v51, %v1825_v52  ;;  %v1761_v56 = vld [vmem:[#allocation3 + $0x35] sm:$0x1]  ;;  %v1826_v57 = vld [vmem:[#allocation3 + $0x3d] sm:$0x1]  ;;  %2079 = vst.msk [vmem:[#allocation7 + $0x19] sm:$0x1] %vm27_vm0, %v2015_v48  ;;  %v2017_v58 = vmax.f32 %v1888_v49, %v1953_v50 }
 0x219   :  { %v1890_v59 = vmax.f32 %v1761_v56, %v1826_v57  ;;  %v1955_v60 = vld [vmem:[#allocation3 + $0x45] sm:$0x1]  ;;  %v1762_v61 = vld [vmem:[#allocation3 + $0x36] sm:$0x1]  ;;  %v1827_v62 = vld [vmem:[#allocation3 + $0x3e] sm:$0x1] }
 0x21a   :  { %2080 = vst.msk [vmem:[#allocation7 + $0x1a] sm:$0x1] %vm27_vm0, %v2016_v53  ;;  %v2018_v63 = vmax.f32 %v1889_v54, %v1954_v55  ;;  %v1891_v0 = vmax.f32 %v1762_v61, %v1827_v62  ;;  %v1956_v1 = vld [vmem:[#allocation3 + $0x46] sm:$0x1]  ;;  %v1763_v2 = vld [vmem:[#allocation3 + $0x37] sm:$0x1] }
 0x21b   :  { %v1828_v3 = vld [vmem:[#allocation3 + $0x3f] sm:$0x1]  ;;  %2081 = vst.msk [vmem:[#allocation7 + $0x1b] sm:$0x1] %vm27_vm0, %v2017_v58  ;;  %v2019_v4 = vmax.f32 %v1890_v59, %v1955_v60  ;;  %v1957_v6 = vld [vmem:[#allocation3 + $0x47] sm:$0x1] }
 0x21c   :  { %v1892_v5 = vmax.f32 %v1763_v2, %v1828_v3  ;;  %v1764_v7 = vld [vmem:[#allocation3 + $0x40] sm:$0x1]  ;;  %v1829_v8 = vld [vmem:[#allocation3 + $0x48] sm:$0x1]  ;;  %2082 = vst.msk [vmem:[#allocation7 + $0x1c] sm:$0x1] %vm27_vm0, %v2018_v63  ;;  %v2020_v9 = vmax.f32 %v1891_v0, %v1956_v1 }
 0x21d   :  { %v1893_v10 = vmax.f32 %v1764_v7, %v1829_v8  ;;  %v1958_v11 = vld [vmem:[#allocation3 + $0x50] sm:$0x1]  ;;  %v1765_v12 = vld [vmem:[#allocation3 + $0x41] sm:$0x1]  ;;  %v1830_v13 = vld [vmem:[#allocation3 + $0x49] sm:$0x1] }
 0x21e   :  { %2083 = vst.msk [vmem:[#allocation7 + $0x1d] sm:$0x1] %vm27_vm0, %v2019_v4  ;;  %v2021_v14 = vmax.f32 %v1892_v5, %v1957_v6  ;;  %v1894_v15 = vmax.f32 %v1765_v12, %v1830_v13  ;;  %v1959_v16 = vld [vmem:[#allocation3 + $0x51] sm:$0x1]  ;;  %v1766_v17 = vld [vmem:[#allocation3 + $0x42] sm:$0x1] }
 0x21f   :  { %v1831_v18 = vld [vmem:[#allocation3 + $0x4a] sm:$0x1]  ;;  %2084 = vst.msk [vmem:[#allocation7 + $0x1e] sm:$0x1] %vm27_vm0, %v2020_v9  ;;  %v2022_v19 = vmax.f32 %v1893_v10, %v1958_v11  ;;  %v1960_v21 = vld [vmem:[#allocation3 + $0x52] sm:$0x1] }
 0x220   :  { %v1895_v20 = vmax.f32 %v1766_v17, %v1831_v18  ;;  %v1767_v22 = vld [vmem:[#allocation3 + $0x43] sm:$0x1]  ;;  %v1832_v23 = vld [vmem:[#allocation3 + $0x4b] sm:$0x1]  ;;  %2085 = vst.msk [vmem:[#allocation7 + $0x1f] sm:$0x1] %vm27_vm0, %v2021_v14  ;;  %v2023_v24 = vmax.f32 %v1894_v15, %v1959_v16 }
 0x221   :  { %v1896_v25 = vmax.f32 %v1767_v22, %v1832_v23  ;;  %v1961_v26 = vld [vmem:[#allocation3 + $0x53] sm:$0x1]  ;;  %v1768_v27 = vld [vmem:[#allocation3 + $0x44] sm:$0x1]  ;;  %v1833_v28 = vld [vmem:[#allocation3 + $0x4c] sm:$0x1] }
 0x222   :  { %2086 = vst.msk [vmem:[#allocation7 + $0x20] sm:$0x1] %vm27_vm0, %v2022_v19  ;;  %v2024_v29 = vmax.f32 %v1895_v20, %v1960_v21  ;;  %v1897_v30 = vmax.f32 %v1768_v27, %v1833_v28  ;;  %v1962_v31 = vld [vmem:[#allocation3 + $0x54] sm:$0x1]  ;;  %v1769_v32 = vld [vmem:[#allocation3 + $0x45] sm:$0x1] }
 0x223   :  { %v1834_v33 = vld [vmem:[#allocation3 + $0x4d] sm:$0x1]  ;;  %2087 = vst.msk [vmem:[#allocation7 + $0x21] sm:$0x1] %vm27_vm0, %v2023_v24  ;;  %v2025_v34 = vmax.f32 %v1896_v25, %v1961_v26  ;;  %v1963_v36 = vld [vmem:[#allocation3 + $0x55] sm:$0x1] }
 0x224   :  { %v1898_v35 = vmax.f32 %v1769_v32, %v1834_v33  ;;  %v1770_v37 = vld [vmem:[#allocation3 + $0x46] sm:$0x1]  ;;  %v1835_v38 = vld [vmem:[#allocation3 + $0x4e] sm:$0x1]  ;;  %2088 = vst.msk [vmem:[#allocation7 + $0x22] sm:$0x1] %vm27_vm0, %v2024_v29  ;;  %v2026_v39 = vmax.f32 %v1897_v30, %v1962_v31 }
 0x225   :  { %v1899_v40 = vmax.f32 %v1770_v37, %v1835_v38  ;;  %v1964_v41 = vld [vmem:[#allocation3 + $0x56] sm:$0x1]  ;;  %v1771_v42 = vld [vmem:[#allocation3 + $0x47] sm:$0x1]  ;;  %v1836_v43 = vld [vmem:[#allocation3 + $0x4f] sm:$0x1] }
 0x226   :  { %2089 = vst.msk [vmem:[#allocation7 + $0x23] sm:$0x1] %vm27_vm0, %v2025_v34  ;;  %v2027_v44 = vmax.f32 %v1898_v35, %v1963_v36  ;;  %v1900_v45 = vmax.f32 %v1771_v42, %v1836_v43  ;;  %v1965_v46 = vld [vmem:[#allocation3 + $0x57] sm:$0x1]  ;;  %v1772_v47 = vld [vmem:[#allocation3 + $0x50] sm:$0x1] }
 0x227   :  { %v1837_v48 = vld [vmem:[#allocation3 + $0x58] sm:$0x1]  ;;  %2090 = vst.msk [vmem:[#allocation7 + $0x24] sm:$0x1] %vm27_vm0, %v2026_v39  ;;  %v2028_v49 = vmax.f32 %v1899_v40, %v1964_v41  ;;  %v1966_v51 = vld [vmem:[#allocation3 + $0x60] sm:$0x1] }
 0x228   :  { %v1901_v50 = vmax.f32 %v1772_v47, %v1837_v48  ;;  %v1773_v52 = vld [vmem:[#allocation3 + $0x51] sm:$0x1]  ;;  %v1838_v53 = vld [vmem:[#allocation3 + $0x59] sm:$0x1]  ;;  %2091 = vst.msk [vmem:[#allocation7 + $0x25] sm:$0x1] %vm27_vm0, %v2027_v44  ;;  %v2029_v54 = vmax.f32 %v1900_v45, %v1965_v46 }
 0x229   :  { %v1902_v55 = vmax.f32 %v1773_v52, %v1838_v53  ;;  %v1967_v56 = vld [vmem:[#allocation3 + $0x61] sm:$0x1]  ;;  %v1774_v57 = vld [vmem:[#allocation3 + $0x52] sm:$0x1]  ;;  %v1839_v58 = vld [vmem:[#allocation3 + $0x5a] sm:$0x1] }
 0x22a   :  { %2092 = vst.msk [vmem:[#allocation7 + $0x26] sm:$0x1] %vm27_vm0, %v2028_v49  ;;  %v2030_v59 = vmax.f32 %v1901_v50, %v1966_v51  ;;  %v1903_v60 = vmax.f32 %v1774_v57, %v1839_v58  ;;  %v1968_v61 = vld [vmem:[#allocation3 + $0x62] sm:$0x1]  ;;  %v1775_v62 = vld [vmem:[#allocation3 + $0x53] sm:$0x1] }
 0x22b   :  { %v1840_v63 = vld [vmem:[#allocation3 + $0x5b] sm:$0x1]  ;;  %2093 = vst.msk [vmem:[#allocation7 + $0x27] sm:$0x1] %vm27_vm0, %v2029_v54  ;;  %v2031_v0 = vmax.f32 %v1902_v55, %v1967_v56  ;;  %v1969_v2 = vld [vmem:[#allocation3 + $0x63] sm:$0x1] }
 0x22c   :  { %v1904_v1 = vmax.f32 %v1775_v62, %v1840_v63  ;;  %v1776_v3 = vld [vmem:[#allocation3 + $0x54] sm:$0x1]  ;;  %v1841_v4 = vld [vmem:[#allocation3 + $0x5c] sm:$0x1]  ;;  %2094 = vst.msk [vmem:[#allocation7 + $0x28] sm:$0x1] %vm27_vm0, %v2030_v59  ;;  %v2032_v5 = vmax.f32 %v1903_v60, %v1968_v61 }
 0x22d   :  { %v1905_v6 = vmax.f32 %v1776_v3, %v1841_v4  ;;  %v1970_v7 = vld [vmem:[#allocation3 + $0x64] sm:$0x1]  ;;  %v1777_v8 = vld [vmem:[#allocation3 + $0x55] sm:$0x1]  ;;  %v1842_v9 = vld [vmem:[#allocation3 + $0x5d] sm:$0x1] }
 0x22e   :  { %2095 = vst.msk [vmem:[#allocation7 + $0x29] sm:$0x1] %vm27_vm0, %v2031_v0  ;;  %v2033_v10 = vmax.f32 %v1904_v1, %v1969_v2  ;;  %v1906_v11 = vmax.f32 %v1777_v8, %v1842_v9  ;;  %v1971_v12 = vld [vmem:[#allocation3 + $0x65] sm:$0x1]  ;;  %v1778_v13 = vld [vmem:[#allocation3 + $0x56] sm:$0x1] }
 0x22f   :  { %v1843_v14 = vld [vmem:[#allocation3 + $0x5e] sm:$0x1]  ;;  %2096 = vst.msk [vmem:[#allocation7 + $0x2a] sm:$0x1] %vm27_vm0, %v2032_v5  ;;  %v2034_v15 = vmax.f32 %v1905_v6, %v1970_v7  ;;  %v1972_v17 = vld [vmem:[#allocation3 + $0x66] sm:$0x1] }
 0x230   :  { %v1907_v16 = vmax.f32 %v1778_v13, %v1843_v14  ;;  %v1779_v18 = vld [vmem:[#allocation3 + $0x57] sm:$0x1]  ;;  %v1844_v19 = vld [vmem:[#allocation3 + $0x5f] sm:$0x1]  ;;  %2097 = vst.msk [vmem:[#allocation7 + $0x2b] sm:$0x1] %vm27_vm0, %v2033_v10  ;;  %v2035_v20 = vmax.f32 %v1906_v11, %v1971_v12 }
 0x231   :  { %v1908_v21 = vmax.f32 %v1779_v18, %v1844_v19  ;;  %v1973_v22 = vld [vmem:[#allocation3 + $0x67] sm:$0x1]  ;;  %v1780_v23 = vld [vmem:[#allocation3 + $0x60] sm:$0x1]  ;;  %v1845_v24 = vld [vmem:[#allocation3 + $0x68] sm:$0x1] }
 0x232   :  { %2098 = vst.msk [vmem:[#allocation7 + $0x2c] sm:$0x1] %vm27_vm0, %v2034_v15  ;;  %v2036_v25 = vmax.f32 %v1907_v16, %v1972_v17  ;;  %v1909_v26 = vmax.f32 %v1780_v23, %v1845_v24  ;;  %v1974_v27 = vld [vmem:[#allocation3 + $0x70] sm:$0x1]  ;;  %v1781_v28 = vld [vmem:[#allocation3 + $0x61] sm:$0x1] }
 0x233   :  { %v1846_v29 = vld [vmem:[#allocation3 + $0x69] sm:$0x1]  ;;  %2099 = vst.msk [vmem:[#allocation7 + $0x2d] sm:$0x1] %vm27_vm0, %v2035_v20  ;;  %v2037_v30 = vmax.f32 %v1908_v21, %v1973_v22  ;;  %v1975_v32 = vld [vmem:[#allocation3 + $0x71] sm:$0x1] }
 0x234   :  { %v1910_v31 = vmax.f32 %v1781_v28, %v1846_v29  ;;  %v1782_v33 = vld [vmem:[#allocation3 + $0x62] sm:$0x1]  ;;  %v1847_v34 = vld [vmem:[#allocation3 + $0x6a] sm:$0x1]  ;;  %2100 = vst.msk [vmem:[#allocation7 + $0x2e] sm:$0x1] %vm27_vm0, %v2036_v25  ;;  %v2038_v35 = vmax.f32 %v1909_v26, %v1974_v27 }
 0x235   :  { %v1911_v36 = vmax.f32 %v1782_v33, %v1847_v34  ;;  %v1976_v37 = vld [vmem:[#allocation3 + $0x72] sm:$0x1]  ;;  %v1783_v38 = vld [vmem:[#allocation3 + $0x63] sm:$0x1]  ;;  %v1848_v39 = vld [vmem:[#allocation3 + $0x6b] sm:$0x1] }
 0x236   :  { %2101 = vst.msk [vmem:[#allocation7 + $0x2f] sm:$0x1] %vm27_vm0, %v2037_v30  ;;  %v2039_v40 = vmax.f32 %v1910_v31, %v1975_v32  ;;  %v1912_v41 = vmax.f32 %v1783_v38, %v1848_v39  ;;  %v1977_v42 = vld [vmem:[#allocation3 + $0x73] sm:$0x1]  ;;  %v1784_v43 = vld [vmem:[#allocation3 + $0x64] sm:$0x1] }
 0x237   :  { %v1849_v44 = vld [vmem:[#allocation3 + $0x6c] sm:$0x1]  ;;  %2102 = vst.msk [vmem:[#allocation7 + $0x30] sm:$0x1] %vm27_vm0, %v2038_v35  ;;  %v2040_v45 = vmax.f32 %v1911_v36, %v1976_v37  ;;  %v1978_v47 = vld [vmem:[#allocation3 + $0x74] sm:$0x1] }
 0x238   :  { %v1913_v46 = vmax.f32 %v1784_v43, %v1849_v44  ;;  %v1785_v48 = vld [vmem:[#allocation3 + $0x65] sm:$0x1]  ;;  %v1850_v49 = vld [vmem:[#allocation3 + $0x6d] sm:$0x1]  ;;  %2103 = vst.msk [vmem:[#allocation7 + $0x31] sm:$0x1] %vm27_vm0, %v2039_v40  ;;  %v2041_v50 = vmax.f32 %v1912_v41, %v1977_v42 }
 0x239   :  { %v1914_v51 = vmax.f32 %v1785_v48, %v1850_v49  ;;  %v1979_v52 = vld [vmem:[#allocation3 + $0x75] sm:$0x1]  ;;  %v1786_v53 = vld [vmem:[#allocation3 + $0x66] sm:$0x1]  ;;  %v1851_v54 = vld [vmem:[#allocation3 + $0x6e] sm:$0x1] }
 0x23a   :  { %2104 = vst.msk [vmem:[#allocation7 + $0x32] sm:$0x1] %vm27_vm0, %v2040_v45  ;;  %v2042_v55 = vmax.f32 %v1913_v46, %v1978_v47  ;;  %v1915_v56 = vmax.f32 %v1786_v53, %v1851_v54  ;;  %v1980_v57 = vld [vmem:[#allocation3 + $0x76] sm:$0x1]  ;;  %v1787_v58 = vld [vmem:[#allocation3 + $0x67] sm:$0x1] }
 0x23b   :  { %v1852_v59 = vld [vmem:[#allocation3 + $0x6f] sm:$0x1]  ;;  %2105 = vst.msk [vmem:[#allocation7 + $0x33] sm:$0x1] %vm27_vm0, %v2041_v50  ;;  %v2043_v60 = vmax.f32 %v1914_v51, %v1979_v52  ;;  %v1981_v62 = vld [vmem:[#allocation3 + $0x77] sm:$0x1] }
 0x23c   :  { %v1916_v61 = vmax.f32 %v1787_v58, %v1852_v59  ;;  %v1788_v63 = vld [vmem:[#allocation3 + $0x70] sm:$0x1]  ;;  %v1853_v0 = vld [vmem:[#allocation3 + $0x78] sm:$0x1]  ;;  %2106 = vst.msk [vmem:[#allocation7 + $0x34] sm:$0x1] %vm27_vm0, %v2042_v55  ;;  %v2044_v1 = vmax.f32 %v1915_v56, %v1980_v57 }
 0x23d   :  { %v1917_v2 = vmax.f32 %v1788_v63, %v1853_v0  ;;  %v1982_v3 = vld [vmem:[#allocation3 + $0x80] sm:$0x1]  ;;  %v1789_v4 = vld [vmem:[#allocation3 + $0x71] sm:$0x1]  ;;  %v1854_v5 = vld [vmem:[#allocation3 + $0x79] sm:$0x1] }
 0x23e   :  { %2107 = vst.msk [vmem:[#allocation7 + $0x35] sm:$0x1] %vm27_vm0, %v2043_v60  ;;  %v2045_v6 = vmax.f32 %v1916_v61, %v1981_v62  ;;  %v1918_v7 = vmax.f32 %v1789_v4, %v1854_v5  ;;  %v1983_v8 = vld [vmem:[#allocation3 + $0x81] sm:$0x1]  ;;  %v1790_v9 = vld [vmem:[#allocation3 + $0x72] sm:$0x1] }
 0x23f   :  { %v1855_v10 = vld [vmem:[#allocation3 + $0x7a] sm:$0x1]  ;;  %2108 = vst.msk [vmem:[#allocation7 + $0x36] sm:$0x1] %vm27_vm0, %v2044_v1  ;;  %v2046_v11 = vmax.f32 %v1917_v2, %v1982_v3  ;;  %v1984_v13 = vld [vmem:[#allocation3 + $0x82] sm:$0x1] }
 0x240   :  { %v1919_v12 = vmax.f32 %v1790_v9, %v1855_v10  ;;  %v1791_v14 = vld [vmem:[#allocation3 + $0x73] sm:$0x1]  ;;  %v1856_v15 = vld [vmem:[#allocation3 + $0x7b] sm:$0x1]  ;;  %2109 = vst.msk [vmem:[#allocation7 + $0x37] sm:$0x1] %vm27_vm0, %v2045_v6  ;;  %v2047_v16 = vmax.f32 %v1918_v7, %v1983_v8 }
 0x241   :  { %v1920_v17 = vmax.f32 %v1791_v14, %v1856_v15  ;;  %v1985_v18 = vld [vmem:[#allocation3 + $0x83] sm:$0x1]  ;;  %v1792_v19 = vld [vmem:[#allocation3 + $0x74] sm:$0x1]  ;;  %v1857_v20 = vld [vmem:[#allocation3 + $0x7c] sm:$0x1] }
 0x242   :  { %2110 = vst.msk [vmem:[#allocation7 + $0x38] sm:$0x1] %vm27_vm0, %v2046_v11  ;;  %v2048_v21 = vmax.f32 %v1919_v12, %v1984_v13  ;;  %v1921_v22 = vmax.f32 %v1792_v19, %v1857_v20  ;;  %v1986_v23 = vld [vmem:[#allocation3 + $0x84] sm:$0x1]  ;;  %v1793_v24 = vld [vmem:[#allocation3 + $0x75] sm:$0x1] }
 0x243   :  { %v1858_v25 = vld [vmem:[#allocation3 + $0x7d] sm:$0x1]  ;;  %2111 = vst.msk [vmem:[#allocation7 + $0x39] sm:$0x1] %vm27_vm0, %v2047_v16  ;;  %v2049_v26 = vmax.f32 %v1920_v17, %v1985_v18  ;;  %v1987_v28 = vld [vmem:[#allocation3 + $0x85] sm:$0x1] }
 0x244   :  { %v1922_v27 = vmax.f32 %v1793_v24, %v1858_v25  ;;  %v1794_v29 = vld [vmem:[#allocation3 + $0x76] sm:$0x1]  ;;  %v1859_v30 = vld [vmem:[#allocation3 + $0x7e] sm:$0x1]  ;;  %2112 = vst.msk [vmem:[#allocation7 + $0x3a] sm:$0x1] %vm27_vm0, %v2048_v21  ;;  %v2050_v31 = vmax.f32 %v1921_v22, %v1986_v23 }
 0x245   :  { %v1923_v32 = vmax.f32 %v1794_v29, %v1859_v30  ;;  %v1988_v33 = vld [vmem:[#allocation3 + $0x86] sm:$0x1]  ;;  %v1795_v34 = vld [vmem:[#allocation3 + $0x77] sm:$0x1]  ;;  %v1860_v35 = vld [vmem:[#allocation3 + $0x7f] sm:$0x1] }
 0x246   :  { %2113 = vst.msk [vmem:[#allocation7 + $0x3b] sm:$0x1] %vm27_vm0, %v2049_v26  ;;  %v2051_v36 = vmax.f32 %v1922_v27, %v1987_v28  ;;  %v1924_v37 = vmax.f32 %v1795_v34, %v1860_v35  ;;  %v1989_v38 = vld [vmem:[#allocation3 + $0x87] sm:$0x1]  ;;  %2114 = vst.msk [vmem:[#allocation7 + $0x3c] sm:$0x1] %vm27_vm0, %v2050_v31 }
 0x247   :  { %v2052_v39 = vmax.f32 %v1923_v32, %v1988_v33 }
 0x248   :  { %2115 = vst.msk [vmem:[#allocation7 + $0x3d] sm:$0x1] %vm27_vm0, %v2051_v36  ;;  %v2053_v40 = vmax.f32 %v1924_v37, %v1989_v38 }
 0x249   :  { %2116 = vst.msk [vmem:[#allocation7 + $0x3e] sm:$0x1] %vm27_vm0, %v2052_v39 }
 0x24a   :  { %2117 = vst.msk [vmem:[#allocation7 + $0x3f] sm:$0x1] %vm27_vm0, %v2053_v40 }
 0x24b   :  { %2171 = shalt.err (!%p2168_p9)
}
 0x24c   :  { %2129 = dma.vmem_to_hbm [thread:$0]  %s2124_s13, 1024, %s3280_s1, [#allocation6], %s2185_s9, %s2185_s9, %s2186_s10  }
 0x24d   :  { %2182 = dma.done.wait [#allocation6], 1024  }
 0x24e   :  { %2183 = vsyncadd [#allocation6], 4294966272 }
 0x24f   :  { %2133 = vsyncpa [#allocation5], 1 }
 0x250   :  { %2134 = vsyncpa [#allocation6], 1 }

</bundles_post_ra>
